<compile_context>
chip_gen: v6e
topology: v6e:2x2x1
jax: 0.10.0
libtpu: 0.0.40
codegen_flags: <defaults>
</compile_context>

<pallas_src>
import jax
import jax.numpy as jnp
from jax.experimental import pallas as pl
from jax.experimental.pallas import tpu as pltpu

IMG = 16            # image_high
KS = 3              # conv kernel_size
C1_IN, C1_OUT = 1, 2
C2_OUT = 4          # out_channels * 2
POOL = 3            # poolKernel_size
OUT_FEATURES = 3
F32 = jnp.float32

# Only conv1 rows 0..11, pool1 rows/cols 0..3 and the conv2 3x3 region feed the
# final features of the original 16x16 -> 5x5 -> 1x1 pipeline; nothing else is
# computed.
C1_ROWS = 12        # conv1 output rows consumed by pool1's first 4 windows
P1_USED = 4         # pool1 rows/cols read by the restricted conv2
C2_REGION = 3       # conv2 output region pooled by the second max-pool

# Route the two W-shifted maps through the XLU (pltpu.roll + edge-column mask)
# instead of a zero-column concat + sublane slice.  Default-off: the concat
# path uses only ops proven to lower cleanly here, and either way only TWO
# shifted maps per input channel are materialized (the review's per-tap copies
# are gone).  Flip after confirming sublane rotate lowering on the target.
USE_XLU_ROLL_FOR_W_SHIFT = False


def _shifted_w(x3, delta):
    """out[:, j, :] = x3[:, j - delta, :], zero where j - delta is out of range.
    delta = +1 (left zero column) or -1 (right zero column)."""
    H, W, TB = x3.shape
    if USE_XLU_ROLL_FOR_W_SHIFT:
        # Layout-preserving flatten (W=16 is a multiple of the sublane tile 8),
        # single XLU sublane roll, then mask the wrapped-in edge column.
        flat = x3.reshape(H * W, TB)
        r = pltpu.roll(flat, delta % (H * W), axis=0).reshape(H, W, TB)
        col = jax.lax.broadcasted_iota(jnp.int32, (H, W, TB), 1)
        if delta > 0:
            return jnp.where(col < delta, 0.0, r)
        return jnp.where(col >= W + delta, 0.0, r)
    # Proven-lowering path: one zero-column concat + one misaligned sublane
    # slice per shifted map (2 realignment passes per input channel total).
    z = jnp.zeros((H, 1, TB), F32)
    if delta > 0:                                   # out[:, j] = x[:, j-1]
        return jnp.concatenate([z, x3[:, :W - 1]], axis=1)
    return jnp.concatenate([x3[:, 1:], z], axis=1)  # out[:, j] = x[:, j+1]


def cnn_kernel(x_ref, w1_ref, b1_ref, w2_ref, b2_ref, wf_ref, bf_ref, out_ref):
    x_full = x_ref[...]                 # (16, 16, TB): W on sublanes, batch on lanes
    TB = x_full.shape[-1]
    xs = x_full[:C1_ROWS + 1]           # rows 0..12 are all conv1 ever reads (free view)

    # ---- conv1 (3x3 'same') + ReLU, restricted to the 12 rows pool1 uses ----
    # W taps: two shifted maps (dl=0 / dl=2); dl=1 is the input itself.
    # H taps: one zero row on top, then free leading-axis slices per dk.
    zrow = jnp.zeros((1, IMG, TB), F32)
    xw = (_shifted_w(xs, +1), xs, _shifted_w(xs, -1))
    xp = [jnp.concatenate([zrow, w], axis=0) for w in xw]        # (14, 16, TB)

    c1 = []
    for oc in range(C1_OUT):
        acc = jnp.full((C1_ROWS, IMG, TB), b1_ref[oc], F32)      # bias-filled init
        base = oc * KS * KS                                      # single input channel
        for dk in range(KS):
            for dl in range(KS):
                acc = acc + w1_ref[base + dk * KS + dl] * xp[dl][dk:dk + C1_ROWS]
        c1.append(jnp.maximum(acc, 0.0))                         # fused ReLU

    # ---- maxpool 3x3/3, only the 4x4 window conv2 reads --------------------
    p1pad = []                       # per channel: (5,5,TB) = pool1[0:4,0:4] with
    for oc in range(C1_OUT):         # zero 'same' padding on the top/left edge only
        r4 = c1[oc].reshape(P1_USED, POOL, IMG, TB)              # free regroup
        rowmax = jnp.maximum(jnp.maximum(r4[:, 0], r4[:, 1]), r4[:, 2])  # (4,16,TB)
        cols = [jnp.zeros((P1_USED, 1, TB), F32)]                # left zero pad col
        for q in range(P1_USED):
            c = jnp.maximum(jnp.maximum(rowmax[:, 3 * q:3 * q + 1],
                                        rowmax[:, 3 * q + 1:3 * q + 2]),
                            rowmax[:, 3 * q + 2:3 * q + 3])      # (4,1,TB)
            cols.append(c)
        pad = jnp.concatenate(cols, axis=1)                      # (4,5,TB)
        pad = jnp.concatenate([jnp.zeros((1, P1_USED + 1, TB), F32), pad], axis=0)
        p1pad.append(pad)                                        # (5,5,TB)

    # ---- conv2 (3x3 'same') + ReLU + maxpool3, 3x3 region only -------------
    cviews = [[p1pad[ic][:, dl:dl + C2_REGION] for dl in range(KS)]
              for ic in range(C1_OUT)]                           # (5,3,TB) views
    feats = []
    for oc in range(C2_OUT):
        acc = jnp.full((C2_REGION, C2_REGION, TB), b2_ref[oc], F32)
        for ic in range(C1_OUT):
            base = (oc * C1_OUT + ic) * KS * KS
            for dk in range(KS):
                for dl in range(KS):
                    acc = acc + (w2_ref[base + dk * KS + dl]
                                 * cviews[ic][dl][dk:dk + C2_REGION])
        r = jnp.maximum(acc, 0.0)                                # (3,3,TB)
        m = jnp.maximum(jnp.maximum(r[0], r[1]), r[2])           # (3,TB)
        feats.append(jnp.maximum(jnp.maximum(m[0:1], m[1:2]), m[2:3]))  # (1,TB)

    # ---- Linear 4 -> 3 as scalar-splat FMAs; single lane-dense store --------
    rows = []
    for o in range(OUT_FEATURES):
        acc = jnp.full((1, TB), bf_ref[o], F32)
        for c in range(C2_OUT):
            acc = acc + wf_ref[o * C2_OUT + c] * feats[c]
        rows.append(acc)
    out_ref[...] = jnp.concatenate(rows, axis=0).astype(out_ref.dtype)


def _round_up(n, m):
    return ((n + m - 1) // m) * m


def cnn_forward_hwb(x_hwb, params, block_b=1024):
    """Preferred entry point: x_hwb is (16, 16, B) float32 (rows, cols, batch),
    so no HBM-side layout transpose is needed.  Returns (B, 3)."""
    w1, b1, w2, b2, wf, bf = params
    assert block_b % 128 == 0 and block_b >= 128
    H, W, B = x_hwb.shape
    assert (H, W) == (IMG, IMG)

    # Lane-dense batch tile.  Guarantee >= 2 grid steps whenever the batch
    # allows it so dimension_semantics=("parallel",) shards across v7x's two
    # TensorCores; cap at block_b (sweep per generation: ~512 on v5e, 1024 on
    # v6e/v7x now that no per-tap copies inflate VMEM).
    b128 = _round_up(B, 128)
    tb = min(block_b, _round_up(b128 // 2, 128))
    bp = _round_up(B, tb)

    x3 = x_hwb.astype(F32)
    if bp != B:
        x3 = jnp.pad(x3, ((0, 0), (0, 0), (0, bp - B)))

    w1_flat = w1.reshape(-1).astype(F32)              # (18,)  OIHW row-major
    w2_flat = w2.reshape(-1).astype(F32)              # (72,)
    wf_flat = wf.reshape(-1).astype(F32)              # (12,)  (out, in) row-major

    out = pl.pallas_call(
        cnn_kernel,
        out_shape=jax.ShapeDtypeStruct((OUT_FEATURES, bp), F32),
        grid=(bp // tb,),
        in_specs=[
            pl.BlockSpec((IMG, IMG, tb), lambda b: (0, 0, b)),   # batched images
            pl.BlockSpec(memory_space=pltpu.SMEM),               # conv1 weights
            pl.BlockSpec(memory_space=pltpu.SMEM),               # conv1 bias
            pl.BlockSpec(memory_space=pltpu.SMEM),               # conv2 weights
            pl.BlockSpec(memory_space=pltpu.SMEM),               # conv2 bias
            pl.BlockSpec(memory_space=pltpu.SMEM),               # fc weights
            pl.BlockSpec(memory_space=pltpu.SMEM),               # fc bias
        ],
        out_specs=pl.BlockSpec((OUT_FEATURES, tb), lambda b: (0, b)),
        compiler_params=pltpu.CompilerParams(
            dimension_semantics=("parallel",),
            vmem_limit_bytes=32 * 1024 * 1024),
    )(x3, w1_flat, b1.astype(F32), w2_flat, b2.astype(F32), wf_flat,
      bf.astype(F32))
    return out[:, :B].T                               # (B, 3)


def cnn_forward(x, params, block_b=1024):
    """x: (B, 1, 16, 16) float32 (NCHW, like PyTorch).  The (H, W, B) relayout
    below is wrapper-side plumbing only; feed cnn_forward_hwb directly (or fuse
    the transpose upstream) to avoid the extra HBM round-trip on large batches."""
    B = x.shape[0]
    x_hwb = x.reshape(B, IMG, IMG).transpose(1, 2, 0)
    return cnn_forward_hwb(x_hwb, params, block_b=block_b)


def cnn_reference(x, params):
    """Plain-JAX reference matching the PyTorch forward."""
    w1, b1, w2, b2, wf, bf = params

    def conv_same(inp, w, b):
        out = jax.lax.conv_general_dilated(
            inp, w, window_strides=(1, 1), padding="SAME",
            dimension_numbers=("NCHW", "OIHW", "NCHW"),
            precision=jax.lax.Precision.HIGHEST)
        return out + b[None, :, None, None]

    def maxpool3(inp):
        return jax.lax.reduce_window(
            inp, -jnp.inf, jax.lax.max,
            window_dimensions=(1, 1, POOL, POOL),
            window_strides=(1, 1, POOL, POOL), padding="VALID")

    h = jnp.maximum(conv_same(x, w1, b1), 0.0)
    h = maxpool3(h)
    h = jnp.maximum(conv_same(h, w2, b2), 0.0)
    h = maxpool3(h)
    h = h.reshape(h.shape[0], -1)
    return h @ wf.T + bf


if __name__ == "__main__":
    key = jax.random.PRNGKey(0)
    k1, k2, k3, k4, k5, k6, kx, kx2 = jax.random.split(key, 8)
    # Deterministic synthetic parameters (shapes from CNN.__init__).
    w1 = jax.random.normal(k1, (C1_OUT, C1_IN, KS, KS), F32) * 0.3
    b1 = jax.random.normal(k2, (C1_OUT,), F32) * 0.1
    w2 = jax.random.normal(k3, (C2_OUT, C1_OUT, KS, KS), F32) * 0.2
    b2 = jax.random.normal(k4, (C2_OUT,), F32) * 0.1
    wf = jax.random.normal(k5, (OUT_FEATURES, C2_OUT), F32) * 0.2
    bf = jax.random.normal(k6, (OUT_FEATURES,), F32) * 0.1
    params = (w1, b1, w2, b2, wf, bf)

    # Small batch (like content_tensor with batch=2).
    x = jax.random.normal(kx, (2, 1, IMG, IMG), F32)
    y = jax.block_until_ready(cnn_forward(x, params))
    y_ref = cnn_reference(x, params)
    assert y.shape == (2, OUT_FEATURES)
    assert jnp.allclose(y, y_ref, atol=1e-3, rtol=1e-3), (y, y_ref)

    # Larger batch exercising padding + a multi-step ("parallel") grid.
    x2 = jax.random.normal(kx2, (200, 1, IMG, IMG), F32)
    y2 = jax.block_until_ready(cnn_forward(x2, params, block_b=128))
    y2_ref = cnn_reference(x2, params)
    assert y2.shape == (200, OUT_FEATURES)
    assert jnp.allclose(y2, y2_ref, atol=1e-3, rtol=1e-3)

    print("KERNEL_OK")
</pallas_src>

<mosaic_0001>
module attributes {stable_mosaic.version = 11 : i64} {
  func.func @cnn_kernel(%arg0: i32, %arg1: memref<16x16x128xf32, #tpu.memory_space<vmem>>, %arg2: memref<18xf32, #tpu.memory_space<smem>>, %arg3: memref<2xf32, #tpu.memory_space<smem>>, %arg4: memref<72xf32, #tpu.memory_space<smem>>, %arg5: memref<4xf32, #tpu.memory_space<smem>>, %arg6: memref<12xf32, #tpu.memory_space<smem>>, %arg7: memref<3xf32, #tpu.memory_space<smem>>, %arg8: memref<3x128xf32, #tpu.memory_space<vmem>>) attributes {dimension_semantics = [#tpu.dimension_semantics<parallel>], iteration_bounds = array<i64: 1>, scalar_prefetch = 0 : i64, scratch_operands = 0 : i64, tpu.core_type = #tpu.core_type<tc>, window_params = [{transform_indices = @transform_0, window_bounds = array<i64: 16, 16, 128>}, {transform_indices = @transform_1, window_bounds = array<i64: 18>}, {transform_indices = @transform_2, window_bounds = array<i64: 2>}, {transform_indices = @transform_3, window_bounds = array<i64: 72>}, {transform_indices = @transform_4, window_bounds = array<i64: 4>}, {transform_indices = @transform_5, window_bounds = array<i64: 12>}, {transform_indices = @transform_6, window_bounds = array<i64: 3>}, {transform_indices = @transform_7, window_bounds = array<i64: 3, 128>}]} {
    %c0 = arith.constant 0 : index
    %c0_0 = arith.constant 0 : index
    %c0_1 = arith.constant 0 : index
    %0 = vector.load %arg1[%c0, %c0_0, %c0_1] : memref<16x16x128xf32, #tpu.memory_space<vmem>>, vector<16x16x128xf32>
    %1 = vector.extract_strided_slice %0 {offsets = [0, 0, 0], sizes = [13, 16, 128], strides = [1, 1, 1]} : vector<16x16x128xf32> to vector<13x16x128xf32>
    %cst = arith.constant 0.000000e+00 : f32
    %2 = vector.broadcast %cst : f32 to vector<1x16x128xf32>
    %cst_2 = arith.constant 0.000000e+00 : f32
    %3 = vector.broadcast %cst_2 : f32 to vector<13x1x128xf32>
    %4 = vector.extract_strided_slice %1 {offsets = [0, 0, 0], sizes = [13, 15, 128], strides = [1, 1, 1]} : vector<13x16x128xf32> to vector<13x15x128xf32>
    %5 = tpu.concatenate %3, %4 in 1 : vector<13x1x128xf32>, vector<13x15x128xf32> -> vector<13x16x128xf32>
    %cst_3 = arith.constant 0.000000e+00 : f32
    %6 = vector.broadcast %cst_3 : f32 to vector<13x1x128xf32>
    %7 = vector.extract_strided_slice %1 {offsets = [0, 1, 0], sizes = [13, 15, 128], strides = [1, 1, 1]} : vector<13x16x128xf32> to vector<13x15x128xf32>
    %8 = tpu.concatenate %7, %6 in 1 : vector<13x15x128xf32>, vector<13x1x128xf32> -> vector<13x16x128xf32>
    %9 = tpu.concatenate %2, %5 in 0 : vector<1x16x128xf32>, vector<13x16x128xf32> -> vector<14x16x128xf32>
    %10 = tpu.concatenate %2, %1 in 0 : vector<1x16x128xf32>, vector<13x16x128xf32> -> vector<14x16x128xf32>
    %11 = tpu.concatenate %2, %8 in 0 : vector<1x16x128xf32>, vector<13x16x128xf32> -> vector<14x16x128xf32>
    %c0_4 = arith.constant 0 : index
    %12 = memref.load %arg3[%c0_4] : memref<2xf32, #tpu.memory_space<smem>>
    %13 = vector.broadcast %12 : f32 to vector<12x16x128xf32>
    %c0_5 = arith.constant 0 : index
    %14 = memref.load %arg2[%c0_5] : memref<18xf32, #tpu.memory_space<smem>>
    %15 = vector.extract_strided_slice %9 {offsets = [0, 0, 0], sizes = [12, 16, 128], strides = [1, 1, 1]} : vector<14x16x128xf32> to vector<12x16x128xf32>
    %16 = vector.broadcast %14 : f32 to vector<12x16x128xf32>
    %17 = arith.mulf %16, %15 : vector<12x16x128xf32>
    %18 = arith.addf %13, %17 : vector<12x16x128xf32>
    %c1 = arith.constant 1 : index
    %19 = memref.load %arg2[%c1] : memref<18xf32, #tpu.memory_space<smem>>
    %20 = vector.extract_strided_slice %10 {offsets = [0, 0, 0], sizes = [12, 16, 128], strides = [1, 1, 1]} : vector<14x16x128xf32> to vector<12x16x128xf32>
    %21 = vector.broadcast %19 : f32 to vector<12x16x128xf32>
    %22 = arith.mulf %21, %20 : vector<12x16x128xf32>
    %23 = arith.addf %18, %22 : vector<12x16x128xf32>
    %c2 = arith.constant 2 : index
    %24 = memref.load %arg2[%c2] : memref<18xf32, #tpu.memory_space<smem>>
    %25 = vector.extract_strided_slice %11 {offsets = [0, 0, 0], sizes = [12, 16, 128], strides = [1, 1, 1]} : vector<14x16x128xf32> to vector<12x16x128xf32>
    %26 = vector.broadcast %24 : f32 to vector<12x16x128xf32>
    %27 = arith.mulf %26, %25 : vector<12x16x128xf32>
    %28 = arith.addf %23, %27 : vector<12x16x128xf32>
    %c3 = arith.constant 3 : index
    %29 = memref.load %arg2[%c3] : memref<18xf32, #tpu.memory_space<smem>>
    %30 = vector.extract_strided_slice %9 {offsets = [1, 0, 0], sizes = [12, 16, 128], strides = [1, 1, 1]} : vector<14x16x128xf32> to vector<12x16x128xf32>
    %31 = vector.broadcast %29 : f32 to vector<12x16x128xf32>
    %32 = arith.mulf %31, %30 : vector<12x16x128xf32>
    %33 = arith.addf %28, %32 : vector<12x16x128xf32>
    %c4 = arith.constant 4 : index
    %34 = memref.load %arg2[%c4] : memref<18xf32, #tpu.memory_space<smem>>
    %35 = vector.extract_strided_slice %10 {offsets = [1, 0, 0], sizes = [12, 16, 128], strides = [1, 1, 1]} : vector<14x16x128xf32> to vector<12x16x128xf32>
    %36 = vector.broadcast %34 : f32 to vector<12x16x128xf32>
    %37 = arith.mulf %36, %35 : vector<12x16x128xf32>
    %38 = arith.addf %33, %37 : vector<12x16x128xf32>
    %c5 = arith.constant 5 : index
    %39 = memref.load %arg2[%c5] : memref<18xf32, #tpu.memory_space<smem>>
    %40 = vector.extract_strided_slice %11 {offsets = [1, 0, 0], sizes = [12, 16, 128], strides = [1, 1, 1]} : vector<14x16x128xf32> to vector<12x16x128xf32>
    %41 = vector.broadcast %39 : f32 to vector<12x16x128xf32>
    %42 = arith.mulf %41, %40 : vector<12x16x128xf32>
    %43 = arith.addf %38, %42 : vector<12x16x128xf32>
    %c6 = arith.constant 6 : index
    %44 = memref.load %arg2[%c6] : memref<18xf32, #tpu.memory_space<smem>>
    %45 = vector.extract_strided_slice %9 {offsets = [2, 0, 0], sizes = [12, 16, 128], strides = [1, 1, 1]} : vector<14x16x128xf32> to vector<12x16x128xf32>
    %46 = vector.broadcast %44 : f32 to vector<12x16x128xf32>
    %47 = arith.mulf %46, %45 : vector<12x16x128xf32>
    %48 = arith.addf %43, %47 : vector<12x16x128xf32>
    %c7 = arith.constant 7 : index
    %49 = memref.load %arg2[%c7] : memref<18xf32, #tpu.memory_space<smem>>
    %50 = vector.extract_strided_slice %10 {offsets = [2, 0, 0], sizes = [12, 16, 128], strides = [1, 1, 1]} : vector<14x16x128xf32> to vector<12x16x128xf32>
    %51 = vector.broadcast %49 : f32 to vector<12x16x128xf32>
    %52 = arith.mulf %51, %50 : vector<12x16x128xf32>
    %53 = arith.addf %48, %52 : vector<12x16x128xf32>
    %c8 = arith.constant 8 : index
    %54 = memref.load %arg2[%c8] : memref<18xf32, #tpu.memory_space<smem>>
    %55 = vector.extract_strided_slice %11 {offsets = [2, 0, 0], sizes = [12, 16, 128], strides = [1, 1, 1]} : vector<14x16x128xf32> to vector<12x16x128xf32>
    %56 = vector.broadcast %54 : f32 to vector<12x16x128xf32>
    %57 = arith.mulf %56, %55 : vector<12x16x128xf32>
    %58 = arith.addf %53, %57 : vector<12x16x128xf32>
    %cst_6 = arith.constant 0.000000e+00 : f32
    %59 = vector.broadcast %cst_6 : f32 to vector<12x16x128xf32>
    %60 = arith.maximumf %58, %59 : vector<12x16x128xf32>
    %c1_7 = arith.constant 1 : index
    %61 = memref.load %arg3[%c1_7] : memref<2xf32, #tpu.memory_space<smem>>
    %62 = vector.broadcast %61 : f32 to vector<12x16x128xf32>
    %c9 = arith.constant 9 : index
    %63 = memref.load %arg2[%c9] : memref<18xf32, #tpu.memory_space<smem>>
    %64 = vector.extract_strided_slice %9 {offsets = [0, 0, 0], sizes = [12, 16, 128], strides = [1, 1, 1]} : vector<14x16x128xf32> to vector<12x16x128xf32>
    %65 = vector.broadcast %63 : f32 to vector<12x16x128xf32>
    %66 = arith.mulf %65, %64 : vector<12x16x128xf32>
    %67 = arith.addf %62, %66 : vector<12x16x128xf32>
    %c10 = arith.constant 10 : index
    %68 = memref.load %arg2[%c10] : memref<18xf32, #tpu.memory_space<smem>>
    %69 = vector.extract_strided_slice %10 {offsets = [0, 0, 0], sizes = [12, 16, 128], strides = [1, 1, 1]} : vector<14x16x128xf32> to vector<12x16x128xf32>
    %70 = vector.broadcast %68 : f32 to vector<12x16x128xf32>
    %71 = arith.mulf %70, %69 : vector<12x16x128xf32>
    %72 = arith.addf %67, %71 : vector<12x16x128xf32>
    %c11 = arith.constant 11 : index
    %73 = memref.load %arg2[%c11] : memref<18xf32, #tpu.memory_space<smem>>
    %74 = vector.extract_strided_slice %11 {offsets = [0, 0, 0], sizes = [12, 16, 128], strides = [1, 1, 1]} : vector<14x16x128xf32> to vector<12x16x128xf32>
    %75 = vector.broadcast %73 : f32 to vector<12x16x128xf32>
    %76 = arith.mulf %75, %74 : vector<12x16x128xf32>
    %77 = arith.addf %72, %76 : vector<12x16x128xf32>
    %c12 = arith.constant 12 : index
    %78 = memref.load %arg2[%c12] : memref<18xf32, #tpu.memory_space<smem>>
    %79 = vector.extract_strided_slice %9 {offsets = [1, 0, 0], sizes = [12, 16, 128], strides = [1, 1, 1]} : vector<14x16x128xf32> to vector<12x16x128xf32>
    %80 = vector.broadcast %78 : f32 to vector<12x16x128xf32>
    %81 = arith.mulf %80, %79 : vector<12x16x128xf32>
    %82 = arith.addf %77, %81 : vector<12x16x128xf32>
    %c13 = arith.constant 13 : index
    %83 = memref.load %arg2[%c13] : memref<18xf32, #tpu.memory_space<smem>>
    %84 = vector.extract_strided_slice %10 {offsets = [1, 0, 0], sizes = [12, 16, 128], strides = [1, 1, 1]} : vector<14x16x128xf32> to vector<12x16x128xf32>
    %85 = vector.broadcast %83 : f32 to vector<12x16x128xf32>
    %86 = arith.mulf %85, %84 : vector<12x16x128xf32>
    %87 = arith.addf %82, %86 : vector<12x16x128xf32>
    %c14 = arith.constant 14 : index
    %88 = memref.load %arg2[%c14] : memref<18xf32, #tpu.memory_space<smem>>
    %89 = vector.extract_strided_slice %11 {offsets = [1, 0, 0], sizes = [12, 16, 128], strides = [1, 1, 1]} : vector<14x16x128xf32> to vector<12x16x128xf32>
    %90 = vector.broadcast %88 : f32 to vector<12x16x128xf32>
    %91 = arith.mulf %90, %89 : vector<12x16x128xf32>
    %92 = arith.addf %87, %91 : vector<12x16x128xf32>
    %c15 = arith.constant 15 : index
    %93 = memref.load %arg2[%c15] : memref<18xf32, #tpu.memory_space<smem>>
    %94 = vector.extract_strided_slice %9 {offsets = [2, 0, 0], sizes = [12, 16, 128], strides = [1, 1, 1]} : vector<14x16x128xf32> to vector<12x16x128xf32>
    %95 = vector.broadcast %93 : f32 to vector<12x16x128xf32>
    %96 = arith.mulf %95, %94 : vector<12x16x128xf32>
    %97 = arith.addf %92, %96 : vector<12x16x128xf32>
    %c16 = arith.constant 16 : index
    %98 = memref.load %arg2[%c16] : memref<18xf32, #tpu.memory_space<smem>>
    %99 = vector.extract_strided_slice %10 {offsets = [2, 0, 0], sizes = [12, 16, 128], strides = [1, 1, 1]} : vector<14x16x128xf32> to vector<12x16x128xf32>
    %100 = vector.broadcast %98 : f32 to vector<12x16x128xf32>
    %101 = arith.mulf %100, %99 : vector<12x16x128xf32>
    %102 = arith.addf %97, %101 : vector<12x16x128xf32>
    %c17 = arith.constant 17 : index
    %103 = memref.load %arg2[%c17] : memref<18xf32, #tpu.memory_space<smem>>
    %104 = vector.extract_strided_slice %11 {offsets = [2, 0, 0], sizes = [12, 16, 128], strides = [1, 1, 1]} : vector<14x16x128xf32> to vector<12x16x128xf32>
    %105 = vector.broadcast %103 : f32 to vector<12x16x128xf32>
    %106 = arith.mulf %105, %104 : vector<12x16x128xf32>
    %107 = arith.addf %102, %106 : vector<12x16x128xf32>
    %cst_8 = arith.constant 0.000000e+00 : f32
    %108 = vector.broadcast %cst_8 : f32 to vector<12x16x128xf32>
    %109 = arith.maximumf %107, %108 : vector<12x16x128xf32>
    %110 = vector.shape_cast %60 : vector<12x16x128xf32> to vector<4x3x16x128xf32>
    %111 = vector.extract_strided_slice %110 {offsets = [0, 0, 0, 0], sizes = [4, 1, 16, 128], strides = [1, 1, 1, 1]} : vector<4x3x16x128xf32> to vector<4x1x16x128xf32>
    %112 = vector.shape_cast %111 : vector<4x1x16x128xf32> to vector<4x16x128xf32>
    %113 = vector.extract_strided_slice %110 {offsets = [0, 1, 0, 0], sizes = [4, 1, 16, 128], strides = [1, 1, 1, 1]} : vector<4x3x16x128xf32> to vector<4x1x16x128xf32>
    %114 = vector.shape_cast %113 : vector<4x1x16x128xf32> to vector<4x16x128xf32>
    %115 = arith.maximumf %112, %114 : vector<4x16x128xf32>
    %116 = vector.extract_strided_slice %110 {offsets = [0, 2, 0, 0], sizes = [4, 1, 16, 128], strides = [1, 1, 1, 1]} : vector<4x3x16x128xf32> to vector<4x1x16x128xf32>
    %117 = vector.shape_cast %116 : vector<4x1x16x128xf32> to vector<4x16x128xf32>
    %118 = arith.maximumf %115, %117 : vector<4x16x128xf32>
    %cst_9 = arith.constant 0.000000e+00 : f32
    %119 = vector.broadcast %cst_9 : f32 to vector<4x1x128xf32>
    %120 = vector.extract_strided_slice %118 {offsets = [0, 0, 0], sizes = [4, 1, 128], strides = [1, 1, 1]} : vector<4x16x128xf32> to vector<4x1x128xf32>
    %121 = vector.extract_strided_slice %118 {offsets = [0, 1, 0], sizes = [4, 1, 128], strides = [1, 1, 1]} : vector<4x16x128xf32> to vector<4x1x128xf32>
    %122 = arith.maximumf %120, %121 : vector<4x1x128xf32>
    %123 = vector.extract_strided_slice %118 {offsets = [0, 2, 0], sizes = [4, 1, 128], strides = [1, 1, 1]} : vector<4x16x128xf32> to vector<4x1x128xf32>
    %124 = arith.maximumf %122, %123 : vector<4x1x128xf32>
    %125 = vector.extract_strided_slice %118 {offsets = [0, 3, 0], sizes = [4, 1, 128], strides = [1, 1, 1]} : vector<4x16x128xf32> to vector<4x1x128xf32>
    %126 = vector.extract_strided_slice %118 {offsets = [0, 4, 0], sizes = [4, 1, 128], strides = [1, 1, 1]} : vector<4x16x128xf32> to vector<4x1x128xf32>
    %127 = arith.maximumf %125, %126 : vector<4x1x128xf32>
    %128 = vector.extract_strided_slice %118 {offsets = [0, 5, 0], sizes = [4, 1, 128], strides = [1, 1, 1]} : vector<4x16x128xf32> to vector<4x1x128xf32>
    %129 = arith.maximumf %127, %128 : vector<4x1x128xf32>
    %130 = vector.extract_strided_slice %118 {offsets = [0, 6, 0], sizes = [4, 1, 128], strides = [1, 1, 1]} : vector<4x16x128xf32> to vector<4x1x128xf32>
    %131 = vector.extract_strided_slice %118 {offsets = [0, 7, 0], sizes = [4, 1, 128], strides = [1, 1, 1]} : vector<4x16x128xf32> to vector<4x1x128xf32>
    %132 = arith.maximumf %130, %131 : vector<4x1x128xf32>
    %133 = vector.extract_strided_slice %118 {offsets = [0, 8, 0], sizes = [4, 1, 128], strides = [1, 1, 1]} : vector<4x16x128xf32> to vector<4x1x128xf32>
    %134 = arith.maximumf %132, %133 : vector<4x1x128xf32>
    %135 = vector.extract_strided_slice %118 {offsets = [0, 9, 0], sizes = [4, 1, 128], strides = [1, 1, 1]} : vector<4x16x128xf32> to vector<4x1x128xf32>
    %136 = vector.extract_strided_slice %118 {offsets = [0, 10, 0], sizes = [4, 1, 128], strides = [1, 1, 1]} : vector<4x16x128xf32> to vector<4x1x128xf32>
    %137 = arith.maximumf %135, %136 : vector<4x1x128xf32>
    %138 = vector.extract_strided_slice %118 {offsets = [0, 11, 0], sizes = [4, 1, 128], strides = [1, 1, 1]} : vector<4x16x128xf32> to vector<4x1x128xf32>
    %139 = arith.maximumf %137, %138 : vector<4x1x128xf32>
    %140 = tpu.concatenate %119, %124, %129, %134, %139 in 1 : vector<4x1x128xf32>, vector<4x1x128xf32>, vector<4x1x128xf32>, vector<4x1x128xf32>, vector<4x1x128xf32> -> vector<4x5x128xf32>
    %cst_10 = arith.constant 0.000000e+00 : f32
    %141 = vector.broadcast %cst_10 : f32 to vector<1x5x128xf32>
    %142 = tpu.concatenate %141, %140 in 0 : vector<1x5x128xf32>, vector<4x5x128xf32> -> vector<5x5x128xf32>
    %143 = vector.shape_cast %109 : vector<12x16x128xf32> to vector<4x3x16x128xf32>
    %144 = vector.extract_strided_slice %143 {offsets = [0, 0, 0, 0], sizes = [4, 1, 16, 128], strides = [1, 1, 1, 1]} : vector<4x3x16x128xf32> to vector<4x1x16x128xf32>
    %145 = vector.shape_cast %144 : vector<4x1x16x128xf32> to vector<4x16x128xf32>
    %146 = vector.extract_strided_slice %143 {offsets = [0, 1, 0, 0], sizes = [4, 1, 16, 128], strides = [1, 1, 1, 1]} : vector<4x3x16x128xf32> to vector<4x1x16x128xf32>
    %147 = vector.shape_cast %146 : vector<4x1x16x128xf32> to vector<4x16x128xf32>
    %148 = arith.maximumf %145, %147 : vector<4x16x128xf32>
    %149 = vector.extract_strided_slice %143 {offsets = [0, 2, 0, 0], sizes = [4, 1, 16, 128], strides = [1, 1, 1, 1]} : vector<4x3x16x128xf32> to vector<4x1x16x128xf32>
    %150 = vector.shape_cast %149 : vector<4x1x16x128xf32> to vector<4x16x128xf32>
    %151 = arith.maximumf %148, %150 : vector<4x16x128xf32>
    %cst_11 = arith.constant 0.000000e+00 : f32
    %152 = vector.broadcast %cst_11 : f32 to vector<4x1x128xf32>
    %153 = vector.extract_strided_slice %151 {offsets = [0, 0, 0], sizes = [4, 1, 128], strides = [1, 1, 1]} : vector<4x16x128xf32> to vector<4x1x128xf32>
    %154 = vector.extract_strided_slice %151 {offsets = [0, 1, 0], sizes = [4, 1, 128], strides = [1, 1, 1]} : vector<4x16x128xf32> to vector<4x1x128xf32>
    %155 = arith.maximumf %153, %154 : vector<4x1x128xf32>
    %156 = vector.extract_strided_slice %151 {offsets = [0, 2, 0], sizes = [4, 1, 128], strides = [1, 1, 1]} : vector<4x16x128xf32> to vector<4x1x128xf32>
    %157 = arith.maximumf %155, %156 : vector<4x1x128xf32>
    %158 = vector.extract_strided_slice %151 {offsets = [0, 3, 0], sizes = [4, 1, 128], strides = [1, 1, 1]} : vector<4x16x128xf32> to vector<4x1x128xf32>
    %159 = vector.extract_strided_slice %151 {offsets = [0, 4, 0], sizes = [4, 1, 128], strides = [1, 1, 1]} : vector<4x16x128xf32> to vector<4x1x128xf32>
    %160 = arith.maximumf %158, %159 : vector<4x1x128xf32>
    %161 = vector.extract_strided_slice %151 {offsets = [0, 5, 0], sizes = [4, 1, 128], strides = [1, 1, 1]} : vector<4x16x128xf32> to vector<4x1x128xf32>
    %162 = arith.maximumf %160, %161 : vector<4x1x128xf32>
    %163 = vector.extract_strided_slice %151 {offsets = [0, 6, 0], sizes = [4, 1, 128], strides = [1, 1, 1]} : vector<4x16x128xf32> to vector<4x1x128xf32>
    %164 = vector.extract_strided_slice %151 {offsets = [0, 7, 0], sizes = [4, 1, 128], strides = [1, 1, 1]} : vector<4x16x128xf32> to vector<4x1x128xf32>
    %165 = arith.maximumf %163, %164 : vector<4x1x128xf32>
    %166 = vector.extract_strided_slice %151 {offsets = [0, 8, 0], sizes = [4, 1, 128], strides = [1, 1, 1]} : vector<4x16x128xf32> to vector<4x1x128xf32>
    %167 = arith.maximumf %165, %166 : vector<4x1x128xf32>
    %168 = vector.extract_strided_slice %151 {offsets = [0, 9, 0], sizes = [4, 1, 128], strides = [1, 1, 1]} : vector<4x16x128xf32> to vector<4x1x128xf32>
    %169 = vector.extract_strided_slice %151 {offsets = [0, 10, 0], sizes = [4, 1, 128], strides = [1, 1, 1]} : vector<4x16x128xf32> to vector<4x1x128xf32>
    %170 = arith.maximumf %168, %169 : vector<4x1x128xf32>
    %171 = vector.extract_strided_slice %151 {offsets = [0, 11, 0], sizes = [4, 1, 128], strides = [1, 1, 1]} : vector<4x16x128xf32> to vector<4x1x128xf32>
    %172 = arith.maximumf %170, %171 : vector<4x1x128xf32>
    %173 = tpu.concatenate %152, %157, %162, %167, %172 in 1 : vector<4x1x128xf32>, vector<4x1x128xf32>, vector<4x1x128xf32>, vector<4x1x128xf32>, vector<4x1x128xf32> -> vector<4x5x128xf32>
    %cst_12 = arith.constant 0.000000e+00 : f32
    %174 = vector.broadcast %cst_12 : f32 to vector<1x5x128xf32>
    %175 = tpu.concatenate %174, %173 in 0 : vector<1x5x128xf32>, vector<4x5x128xf32> -> vector<5x5x128xf32>
    %176 = vector.extract_strided_slice %142 {offsets = [0, 0, 0], sizes = [5, 3, 128], strides = [1, 1, 1]} : vector<5x5x128xf32> to vector<5x3x128xf32>
    %177 = vector.extract_strided_slice %142 {offsets = [0, 1, 0], sizes = [5, 3, 128], strides = [1, 1, 1]} : vector<5x5x128xf32> to vector<5x3x128xf32>
    %178 = vector.extract_strided_slice %142 {offsets = [0, 2, 0], sizes = [5, 3, 128], strides = [1, 1, 1]} : vector<5x5x128xf32> to vector<5x3x128xf32>
    %179 = vector.extract_strided_slice %175 {offsets = [0, 0, 0], sizes = [5, 3, 128], strides = [1, 1, 1]} : vector<5x5x128xf32> to vector<5x3x128xf32>
    %180 = vector.extract_strided_slice %175 {offsets = [0, 1, 0], sizes = [5, 3, 128], strides = [1, 1, 1]} : vector<5x5x128xf32> to vector<5x3x128xf32>
    %181 = vector.extract_strided_slice %175 {offsets = [0, 2, 0], sizes = [5, 3, 128], strides = [1, 1, 1]} : vector<5x5x128xf32> to vector<5x3x128xf32>
    %c0_13 = arith.constant 0 : index
    %182 = memref.load %arg5[%c0_13] : memref<4xf32, #tpu.memory_space<smem>>
    %183 = vector.broadcast %182 : f32 to vector<3x3x128xf32>
    %c0_14 = arith.constant 0 : index
    %184 = memref.load %arg4[%c0_14] : memref<72xf32, #tpu.memory_space<smem>>
    %185 = vector.extract_strided_slice %176 {offsets = [0, 0, 0], sizes = [3, 3, 128], strides = [1, 1, 1]} : vector<5x3x128xf32> to vector<3x3x128xf32>
    %186 = vector.broadcast %184 : f32 to vector<3x3x128xf32>
    %187 = arith.mulf %186, %185 : vector<3x3x128xf32>
    %188 = arith.addf %183, %187 : vector<3x3x128xf32>
    %c1_15 = arith.constant 1 : index
    %189 = memref.load %arg4[%c1_15] : memref<72xf32, #tpu.memory_space<smem>>
    %190 = vector.extract_strided_slice %177 {offsets = [0, 0, 0], sizes = [3, 3, 128], strides = [1, 1, 1]} : vector<5x3x128xf32> to vector<3x3x128xf32>
    %191 = vector.broadcast %189 : f32 to vector<3x3x128xf32>
    %192 = arith.mulf %191, %190 : vector<3x3x128xf32>
    %193 = arith.addf %188, %192 : vector<3x3x128xf32>
    %c2_16 = arith.constant 2 : index
    %194 = memref.load %arg4[%c2_16] : memref<72xf32, #tpu.memory_space<smem>>
    %195 = vector.extract_strided_slice %178 {offsets = [0, 0, 0], sizes = [3, 3, 128], strides = [1, 1, 1]} : vector<5x3x128xf32> to vector<3x3x128xf32>
    %196 = vector.broadcast %194 : f32 to vector<3x3x128xf32>
    %197 = arith.mulf %196, %195 : vector<3x3x128xf32>
    %198 = arith.addf %193, %197 : vector<3x3x128xf32>
    %c3_17 = arith.constant 3 : index
    %199 = memref.load %arg4[%c3_17] : memref<72xf32, #tpu.memory_space<smem>>
    %200 = vector.extract_strided_slice %176 {offsets = [1, 0, 0], sizes = [3, 3, 128], strides = [1, 1, 1]} : vector<5x3x128xf32> to vector<3x3x128xf32>
    %201 = vector.broadcast %199 : f32 to vector<3x3x128xf32>
    %202 = arith.mulf %201, %200 : vector<3x3x128xf32>
    %203 = arith.addf %198, %202 : vector<3x3x128xf32>
    %c4_18 = arith.constant 4 : index
    %204 = memref.load %arg4[%c4_18] : memref<72xf32, #tpu.memory_space<smem>>
    %205 = vector.extract_strided_slice %177 {offsets = [1, 0, 0], sizes = [3, 3, 128], strides = [1, 1, 1]} : vector<5x3x128xf32> to vector<3x3x128xf32>
    %206 = vector.broadcast %204 : f32 to vector<3x3x128xf32>
    %207 = arith.mulf %206, %205 : vector<3x3x128xf32>
    %208 = arith.addf %203, %207 : vector<3x3x128xf32>
    %c5_19 = arith.constant 5 : index
    %209 = memref.load %arg4[%c5_19] : memref<72xf32, #tpu.memory_space<smem>>
    %210 = vector.extract_strided_slice %178 {offsets = [1, 0, 0], sizes = [3, 3, 128], strides = [1, 1, 1]} : vector<5x3x128xf32> to vector<3x3x128xf32>
    %211 = vector.broadcast %209 : f32 to vector<3x3x128xf32>
    %212 = arith.mulf %211, %210 : vector<3x3x128xf32>
    %213 = arith.addf %208, %212 : vector<3x3x128xf32>
    %c6_20 = arith.constant 6 : index
    %214 = memref.load %arg4[%c6_20] : memref<72xf32, #tpu.memory_space<smem>>
    %215 = vector.extract_strided_slice %176 {offsets = [2, 0, 0], sizes = [3, 3, 128], strides = [1, 1, 1]} : vector<5x3x128xf32> to vector<3x3x128xf32>
    %216 = vector.broadcast %214 : f32 to vector<3x3x128xf32>
    %217 = arith.mulf %216, %215 : vector<3x3x128xf32>
    %218 = arith.addf %213, %217 : vector<3x3x128xf32>
    %c7_21 = arith.constant 7 : index
    %219 = memref.load %arg4[%c7_21] : memref<72xf32, #tpu.memory_space<smem>>
    %220 = vector.extract_strided_slice %177 {offsets = [2, 0, 0], sizes = [3, 3, 128], strides = [1, 1, 1]} : vector<5x3x128xf32> to vector<3x3x128xf32>
    %221 = vector.broadcast %219 : f32 to vector<3x3x128xf32>
    %222 = arith.mulf %221, %220 : vector<3x3x128xf32>
    %223 = arith.addf %218, %222 : vector<3x3x128xf32>
    %c8_22 = arith.constant 8 : index
    %224 = memref.load %arg4[%c8_22] : memref<72xf32, #tpu.memory_space<smem>>
    %225 = vector.extract_strided_slice %178 {offsets = [2, 0, 0], sizes = [3, 3, 128], strides = [1, 1, 1]} : vector<5x3x128xf32> to vector<3x3x128xf32>
    %226 = vector.broadcast %224 : f32 to vector<3x3x128xf32>
    %227 = arith.mulf %226, %225 : vector<3x3x128xf32>
    %228 = arith.addf %223, %227 : vector<3x3x128xf32>
    %c9_23 = arith.constant 9 : index
    %229 = memref.load %arg4[%c9_23] : memref<72xf32, #tpu.memory_space<smem>>
    %230 = vector.extract_strided_slice %179 {offsets = [0, 0, 0], sizes = [3, 3, 128], strides = [1, 1, 1]} : vector<5x3x128xf32> to vector<3x3x128xf32>
    %231 = vector.broadcast %229 : f32 to vector<3x3x128xf32>
    %232 = arith.mulf %231, %230 : vector<3x3x128xf32>
    %233 = arith.addf %228, %232 : vector<3x3x128xf32>
    %c10_24 = arith.constant 10 : index
    %234 = memref.load %arg4[%c10_24] : memref<72xf32, #tpu.memory_space<smem>>
    %235 = vector.extract_strided_slice %180 {offsets = [0, 0, 0], sizes = [3, 3, 128], strides = [1, 1, 1]} : vector<5x3x128xf32> to vector<3x3x128xf32>
    %236 = vector.broadcast %234 : f32 to vector<3x3x128xf32>
    %237 = arith.mulf %236, %235 : vector<3x3x128xf32>
    %238 = arith.addf %233, %237 : vector<3x3x128xf32>
    %c11_25 = arith.constant 11 : index
    %239 = memref.load %arg4[%c11_25] : memref<72xf32, #tpu.memory_space<smem>>
    %240 = vector.extract_strided_slice %181 {offsets = [0, 0, 0], sizes = [3, 3, 128], strides = [1, 1, 1]} : vector<5x3x128xf32> to vector<3x3x128xf32>
    %241 = vector.broadcast %239 : f32 to vector<3x3x128xf32>
    %242 = arith.mulf %241, %240 : vector<3x3x128xf32>
    %243 = arith.addf %238, %242 : vector<3x3x128xf32>
    %c12_26 = arith.constant 12 : index
    %244 = memref.load %arg4[%c12_26] : memref<72xf32, #tpu.memory_space<smem>>
    %245 = vector.extract_strided_slice %179 {offsets = [1, 0, 0], sizes = [3, 3, 128], strides = [1, 1, 1]} : vector<5x3x128xf32> to vector<3x3x128xf32>
    %246 = vector.broadcast %244 : f32 to vector<3x3x128xf32>
    %247 = arith.mulf %246, %245 : vector<3x3x128xf32>
    %248 = arith.addf %243, %247 : vector<3x3x128xf32>
    %c13_27 = arith.constant 13 : index
    %249 = memref.load %arg4[%c13_27] : memref<72xf32, #tpu.memory_space<smem>>
    %250 = vector.extract_strided_slice %180 {offsets = [1, 0, 0], sizes = [3, 3, 128], strides = [1, 1, 1]} : vector<5x3x128xf32> to vector<3x3x128xf32>
    %251 = vector.broadcast %249 : f32 to vector<3x3x128xf32>
    %252 = arith.mulf %251, %250 : vector<3x3x128xf32>
    %253 = arith.addf %248, %252 : vector<3x3x128xf32>
    %c14_28 = arith.constant 14 : index
    %254 = memref.load %arg4[%c14_28] : memref<72xf32, #tpu.memory_space<smem>>
    %255 = vector.extract_strided_slice %181 {offsets = [1, 0, 0], sizes = [3, 3, 128], strides = [1, 1, 1]} : vector<5x3x128xf32> to vector<3x3x128xf32>
    %256 = vector.broadcast %254 : f32 to vector<3x3x128xf32>
    %257 = arith.mulf %256, %255 : vector<3x3x128xf32>
    %258 = arith.addf %253, %257 : vector<3x3x128xf32>
    %c15_29 = arith.constant 15 : index
    %259 = memref.load %arg4[%c15_29] : memref<72xf32, #tpu.memory_space<smem>>
    %260 = vector.extract_strided_slice %179 {offsets = [2, 0, 0], sizes = [3, 3, 128], strides = [1, 1, 1]} : vector<5x3x128xf32> to vector<3x3x128xf32>
    %261 = vector.broadcast %259 : f32 to vector<3x3x128xf32>
    %262 = arith.mulf %261, %260 : vector<3x3x128xf32>
    %263 = arith.addf %258, %262 : vector<3x3x128xf32>
    %c16_30 = arith.constant 16 : index
    %264 = memref.load %arg4[%c16_30] : memref<72xf32, #tpu.memory_space<smem>>
    %265 = vector.extract_strided_slice %180 {offsets = [2, 0, 0], sizes = [3, 3, 128], strides = [1, 1, 1]} : vector<5x3x128xf32> to vector<3x3x128xf32>
    %266 = vector.broadcast %264 : f32 to vector<3x3x128xf32>
    %267 = arith.mulf %266, %265 : vector<3x3x128xf32>
    %268 = arith.addf %263, %267 : vector<3x3x128xf32>
    %c17_31 = arith.constant 17 : index
    %269 = memref.load %arg4[%c17_31] : memref<72xf32, #tpu.memory_space<smem>>
    %270 = vector.extract_strided_slice %181 {offsets = [2, 0, 0], sizes = [3, 3, 128], strides = [1, 1, 1]} : vector<5x3x128xf32> to vector<3x3x128xf32>
    %271 = vector.broadcast %269 : f32 to vector<3x3x128xf32>
    %272 = arith.mulf %271, %270 : vector<3x3x128xf32>
    %273 = arith.addf %268, %272 : vector<3x3x128xf32>
    %cst_32 = arith.constant 0.000000e+00 : f32
    %274 = vector.broadcast %cst_32 : f32 to vector<3x3x128xf32>
    %275 = arith.maximumf %273, %274 : vector<3x3x128xf32>
    %276 = vector.extract_strided_slice %275 {offsets = [0, 0, 0], sizes = [1, 3, 128], strides = [1, 1, 1]} : vector<3x3x128xf32> to vector<1x3x128xf32>
    %277 = vector.shape_cast %276 : vector<1x3x128xf32> to vector<3x128xf32>
    %278 = vector.extract_strided_slice %275 {offsets = [1, 0, 0], sizes = [1, 3, 128], strides = [1, 1, 1]} : vector<3x3x128xf32> to vector<1x3x128xf32>
    %279 = vector.shape_cast %278 : vector<1x3x128xf32> to vector<3x128xf32>
    %280 = arith.maximumf %277, %279 : vector<3x128xf32>
    %281 = vector.extract_strided_slice %275 {offsets = [2, 0, 0], sizes = [1, 3, 128], strides = [1, 1, 1]} : vector<3x3x128xf32> to vector<1x3x128xf32>
    %282 = vector.shape_cast %281 : vector<1x3x128xf32> to vector<3x128xf32>
    %283 = arith.maximumf %280, %282 : vector<3x128xf32>
    %284 = vector.extract_strided_slice %283 {offsets = [0, 0], sizes = [1, 128], strides = [1, 1]} : vector<3x128xf32> to vector<1x128xf32>
    %285 = vector.extract_strided_slice %283 {offsets = [1, 0], sizes = [1, 128], strides = [1, 1]} : vector<3x128xf32> to vector<1x128xf32>
    %286 = arith.maximumf %284, %285 : vector<1x128xf32>
    %287 = vector.extract_strided_slice %283 {offsets = [2, 0], sizes = [1, 128], strides = [1, 1]} : vector<3x128xf32> to vector<1x128xf32>
    %288 = arith.maximumf %286, %287 : vector<1x128xf32>
    %c1_33 = arith.constant 1 : index
    %289 = memref.load %arg5[%c1_33] : memref<4xf32, #tpu.memory_space<smem>>
    %290 = vector.broadcast %289 : f32 to vector<3x3x128xf32>
    %c18 = arith.constant 18 : index
    %291 = memref.load %arg4[%c18] : memref<72xf32, #tpu.memory_space<smem>>
    %292 = vector.extract_strided_slice %176 {offsets = [0, 0, 0], sizes = [3, 3, 128], strides = [1, 1, 1]} : vector<5x3x128xf32> to vector<3x3x128xf32>
    %293 = vector.broadcast %291 : f32 to vector<3x3x128xf32>
    %294 = arith.mulf %293, %292 : vector<3x3x128xf32>
    %295 = arith.addf %290, %294 : vector<3x3x128xf32>
    %c19 = arith.constant 19 : index
    %296 = memref.load %arg4[%c19] : memref<72xf32, #tpu.memory_space<smem>>
    %297 = vector.extract_strided_slice %177 {offsets = [0, 0, 0], sizes = [3, 3, 128], strides = [1, 1, 1]} : vector<5x3x128xf32> to vector<3x3x128xf32>
    %298 = vector.broadcast %296 : f32 to vector<3x3x128xf32>
    %299 = arith.mulf %298, %297 : vector<3x3x128xf32>
    %300 = arith.addf %295, %299 : vector<3x3x128xf32>
    %c20 = arith.constant 20 : index
    %301 = memref.load %arg4[%c20] : memref<72xf32, #tpu.memory_space<smem>>
    %302 = vector.extract_strided_slice %178 {offsets = [0, 0, 0], sizes = [3, 3, 128], strides = [1, 1, 1]} : vector<5x3x128xf32> to vector<3x3x128xf32>
    %303 = vector.broadcast %301 : f32 to vector<3x3x128xf32>
    %304 = arith.mulf %303, %302 : vector<3x3x128xf32>
    %305 = arith.addf %300, %304 : vector<3x3x128xf32>
    %c21 = arith.constant 21 : index
    %306 = memref.load %arg4[%c21] : memref<72xf32, #tpu.memory_space<smem>>
    %307 = vector.extract_strided_slice %176 {offsets = [1, 0, 0], sizes = [3, 3, 128], strides = [1, 1, 1]} : vector<5x3x128xf32> to vector<3x3x128xf32>
    %308 = vector.broadcast %306 : f32 to vector<3x3x128xf32>
    %309 = arith.mulf %308, %307 : vector<3x3x128xf32>
    %310 = arith.addf %305, %309 : vector<3x3x128xf32>
    %c22 = arith.constant 22 : index
    %311 = memref.load %arg4[%c22] : memref<72xf32, #tpu.memory_space<smem>>
    %312 = vector.extract_strided_slice %177 {offsets = [1, 0, 0], sizes = [3, 3, 128], strides = [1, 1, 1]} : vector<5x3x128xf32> to vector<3x3x128xf32>
    %313 = vector.broadcast %311 : f32 to vector<3x3x128xf32>
    %314 = arith.mulf %313, %312 : vector<3x3x128xf32>
    %315 = arith.addf %310, %314 : vector<3x3x128xf32>
    %c23 = arith.constant 23 : index
    %316 = memref.load %arg4[%c23] : memref<72xf32, #tpu.memory_space<smem>>
    %317 = vector.extract_strided_slice %178 {offsets = [1, 0, 0], sizes = [3, 3, 128], strides = [1, 1, 1]} : vector<5x3x128xf32> to vector<3x3x128xf32>
    %318 = vector.broadcast %316 : f32 to vector<3x3x128xf32>
    %319 = arith.mulf %318, %317 : vector<3x3x128xf32>
    %320 = arith.addf %315, %319 : vector<3x3x128xf32>
    %c24 = arith.constant 24 : index
    %321 = memref.load %arg4[%c24] : memref<72xf32, #tpu.memory_space<smem>>
    %322 = vector.extract_strided_slice %176 {offsets = [2, 0, 0], sizes = [3, 3, 128], strides = [1, 1, 1]} : vector<5x3x128xf32> to vector<3x3x128xf32>
    %323 = vector.broadcast %321 : f32 to vector<3x3x128xf32>
    %324 = arith.mulf %323, %322 : vector<3x3x128xf32>
    %325 = arith.addf %320, %324 : vector<3x3x128xf32>
    %c25 = arith.constant 25 : index
    %326 = memref.load %arg4[%c25] : memref<72xf32, #tpu.memory_space<smem>>
    %327 = vector.extract_strided_slice %177 {offsets = [2, 0, 0], sizes = [3, 3, 128], strides = [1, 1, 1]} : vector<5x3x128xf32> to vector<3x3x128xf32>
    %328 = vector.broadcast %326 : f32 to vector<3x3x128xf32>
    %329 = arith.mulf %328, %327 : vector<3x3x128xf32>
    %330 = arith.addf %325, %329 : vector<3x3x128xf32>
    %c26 = arith.constant 26 : index
    %331 = memref.load %arg4[%c26] : memref<72xf32, #tpu.memory_space<smem>>
    %332 = vector.extract_strided_slice %178 {offsets = [2, 0, 0], sizes = [3, 3, 128], strides = [1, 1, 1]} : vector<5x3x128xf32> to vector<3x3x128xf32>
    %333 = vector.broadcast %331 : f32 to vector<3x3x128xf32>
    %334 = arith.mulf %333, %332 : vector<3x3x128xf32>
    %335 = arith.addf %330, %334 : vector<3x3x128xf32>
    %c27 = arith.constant 27 : index
    %336 = memref.load %arg4[%c27] : memref<72xf32, #tpu.memory_space<smem>>
    %337 = vector.extract_strided_slice %179 {offsets = [0, 0, 0], sizes = [3, 3, 128], strides = [1, 1, 1]} : vector<5x3x128xf32> to vector<3x3x128xf32>
    %338 = vector.broadcast %336 : f32 to vector<3x3x128xf32>
    %339 = arith.mulf %338, %337 : vector<3x3x128xf32>
    %340 = arith.addf %335, %339 : vector<3x3x128xf32>
    %c28 = arith.constant 28 : index
    %341 = memref.load %arg4[%c28] : memref<72xf32, #tpu.memory_space<smem>>
    %342 = vector.extract_strided_slice %180 {offsets = [0, 0, 0], sizes = [3, 3, 128], strides = [1, 1, 1]} : vector<5x3x128xf32> to vector<3x3x128xf32>
    %343 = vector.broadcast %341 : f32 to vector<3x3x128xf32>
    %344 = arith.mulf %343, %342 : vector<3x3x128xf32>
    %345 = arith.addf %340, %344 : vector<3x3x128xf32>
    %c29 = arith.constant 29 : index
    %346 = memref.load %arg4[%c29] : memref<72xf32, #tpu.memory_space<smem>>
    %347 = vector.extract_strided_slice %181 {offsets = [0, 0, 0], sizes = [3, 3, 128], strides = [1, 1, 1]} : vector<5x3x128xf32> to vector<3x3x128xf32>
    %348 = vector.broadcast %346 : f32 to vector<3x3x128xf32>
    %349 = arith.mulf %348, %347 : vector<3x3x128xf32>
    %350 = arith.addf %345, %349 : vector<3x3x128xf32>
    %c30 = arith.constant 30 : index
    %351 = memref.load %arg4[%c30] : memref<72xf32, #tpu.memory_space<smem>>
    %352 = vector.extract_strided_slice %179 {offsets = [1, 0, 0], sizes = [3, 3, 128], strides = [1, 1, 1]} : vector<5x3x128xf32> to vector<3x3x128xf32>
    %353 = vector.broadcast %351 : f32 to vector<3x3x128xf32>
    %354 = arith.mulf %353, %352 : vector<3x3x128xf32>
    %355 = arith.addf %350, %354 : vector<3x3x128xf32>
    %c31 = arith.constant 31 : index
    %356 = memref.load %arg4[%c31] : memref<72xf32, #tpu.memory_space<smem>>
    %357 = vector.extract_strided_slice %180 {offsets = [1, 0, 0], sizes = [3, 3, 128], strides = [1, 1, 1]} : vector<5x3x128xf32> to vector<3x3x128xf32>
    %358 = vector.broadcast %356 : f32 to vector<3x3x128xf32>
    %359 = arith.mulf %358, %357 : vector<3x3x128xf32>
    %360 = arith.addf %355, %359 : vector<3x3x128xf32>
    %c32 = arith.constant 32 : index
    %361 = memref.load %arg4[%c32] : memref<72xf32, #tpu.memory_space<smem>>
    %362 = vector.extract_strided_slice %181 {offsets = [1, 0, 0], sizes = [3, 3, 128], strides = [1, 1, 1]} : vector<5x3x128xf32> to vector<3x3x128xf32>
    %363 = vector.broadcast %361 : f32 to vector<3x3x128xf32>
    %364 = arith.mulf %363, %362 : vector<3x3x128xf32>
    %365 = arith.addf %360, %364 : vector<3x3x128xf32>
    %c33 = arith.constant 33 : index
    %366 = memref.load %arg4[%c33] : memref<72xf32, #tpu.memory_space<smem>>
    %367 = vector.extract_strided_slice %179 {offsets = [2, 0, 0], sizes = [3, 3, 128], strides = [1, 1, 1]} : vector<5x3x128xf32> to vector<3x3x128xf32>
    %368 = vector.broadcast %366 : f32 to vector<3x3x128xf32>
    %369 = arith.mulf %368, %367 : vector<3x3x128xf32>
    %370 = arith.addf %365, %369 : vector<3x3x128xf32>
    %c34 = arith.constant 34 : index
    %371 = memref.load %arg4[%c34] : memref<72xf32, #tpu.memory_space<smem>>
    %372 = vector.extract_strided_slice %180 {offsets = [2, 0, 0], sizes = [3, 3, 128], strides = [1, 1, 1]} : vector<5x3x128xf32> to vector<3x3x128xf32>
    %373 = vector.broadcast %371 : f32 to vector<3x3x128xf32>
    %374 = arith.mulf %373, %372 : vector<3x3x128xf32>
    %375 = arith.addf %370, %374 : vector<3x3x128xf32>
    %c35 = arith.constant 35 : index
    %376 = memref.load %arg4[%c35] : memref<72xf32, #tpu.memory_space<smem>>
    %377 = vector.extract_strided_slice %181 {offsets = [2, 0, 0], sizes = [3, 3, 128], strides = [1, 1, 1]} : vector<5x3x128xf32> to vector<3x3x128xf32>
    %378 = vector.broadcast %376 : f32 to vector<3x3x128xf32>
    %379 = arith.mulf %378, %377 : vector<3x3x128xf32>
    %380 = arith.addf %375, %379 : vector<3x3x128xf32>
    %cst_34 = arith.constant 0.000000e+00 : f32
    %381 = vector.broadcast %cst_34 : f32 to vector<3x3x128xf32>
    %382 = arith.maximumf %380, %381 : vector<3x3x128xf32>
    %383 = vector.extract_strided_slice %382 {offsets = [0, 0, 0], sizes = [1, 3, 128], strides = [1, 1, 1]} : vector<3x3x128xf32> to vector<1x3x128xf32>
    %384 = vector.shape_cast %383 : vector<1x3x128xf32> to vector<3x128xf32>
    %385 = vector.extract_strided_slice %382 {offsets = [1, 0, 0], sizes = [1, 3, 128], strides = [1, 1, 1]} : vector<3x3x128xf32> to vector<1x3x128xf32>
    %386 = vector.shape_cast %385 : vector<1x3x128xf32> to vector<3x128xf32>
    %387 = arith.maximumf %384, %386 : vector<3x128xf32>
    %388 = vector.extract_strided_slice %382 {offsets = [2, 0, 0], sizes = [1, 3, 128], strides = [1, 1, 1]} : vector<3x3x128xf32> to vector<1x3x128xf32>
    %389 = vector.shape_cast %388 : vector<1x3x128xf32> to vector<3x128xf32>
    %390 = arith.maximumf %387, %389 : vector<3x128xf32>
    %391 = vector.extract_strided_slice %390 {offsets = [0, 0], sizes = [1, 128], strides = [1, 1]} : vector<3x128xf32> to vector<1x128xf32>
    %392 = vector.extract_strided_slice %390 {offsets = [1, 0], sizes = [1, 128], strides = [1, 1]} : vector<3x128xf32> to vector<1x128xf32>
    %393 = arith.maximumf %391, %392 : vector<1x128xf32>
    %394 = vector.extract_strided_slice %390 {offsets = [2, 0], sizes = [1, 128], strides = [1, 1]} : vector<3x128xf32> to vector<1x128xf32>
    %395 = arith.maximumf %393, %394 : vector<1x128xf32>
    %c2_35 = arith.constant 2 : index
    %396 = memref.load %arg5[%c2_35] : memref<4xf32, #tpu.memory_space<smem>>
    %397 = vector.broadcast %396 : f32 to vector<3x3x128xf32>
    %c36 = arith.constant 36 : index
    %398 = memref.load %arg4[%c36] : memref<72xf32, #tpu.memory_space<smem>>
    %399 = vector.extract_strided_slice %176 {offsets = [0, 0, 0], sizes = [3, 3, 128], strides = [1, 1, 1]} : vector<5x3x128xf32> to vector<3x3x128xf32>
    %400 = vector.broadcast %398 : f32 to vector<3x3x128xf32>
    %401 = arith.mulf %400, %399 : vector<3x3x128xf32>
    %402 = arith.addf %397, %401 : vector<3x3x128xf32>
    %c37 = arith.constant 37 : index
    %403 = memref.load %arg4[%c37] : memref<72xf32, #tpu.memory_space<smem>>
    %404 = vector.extract_strided_slice %177 {offsets = [0, 0, 0], sizes = [3, 3, 128], strides = [1, 1, 1]} : vector<5x3x128xf32> to vector<3x3x128xf32>
    %405 = vector.broadcast %403 : f32 to vector<3x3x128xf32>
    %406 = arith.mulf %405, %404 : vector<3x3x128xf32>
    %407 = arith.addf %402, %406 : vector<3x3x128xf32>
    %c38 = arith.constant 38 : index
    %408 = memref.load %arg4[%c38] : memref<72xf32, #tpu.memory_space<smem>>
    %409 = vector.extract_strided_slice %178 {offsets = [0, 0, 0], sizes = [3, 3, 128], strides = [1, 1, 1]} : vector<5x3x128xf32> to vector<3x3x128xf32>
    %410 = vector.broadcast %408 : f32 to vector<3x3x128xf32>
    %411 = arith.mulf %410, %409 : vector<3x3x128xf32>
    %412 = arith.addf %407, %411 : vector<3x3x128xf32>
    %c39 = arith.constant 39 : index
    %413 = memref.load %arg4[%c39] : memref<72xf32, #tpu.memory_space<smem>>
    %414 = vector.extract_strided_slice %176 {offsets = [1, 0, 0], sizes = [3, 3, 128], strides = [1, 1, 1]} : vector<5x3x128xf32> to vector<3x3x128xf32>
    %415 = vector.broadcast %413 : f32 to vector<3x3x128xf32>
    %416 = arith.mulf %415, %414 : vector<3x3x128xf32>
    %417 = arith.addf %412, %416 : vector<3x3x128xf32>
    %c40 = arith.constant 40 : index
    %418 = memref.load %arg4[%c40] : memref<72xf32, #tpu.memory_space<smem>>
    %419 = vector.extract_strided_slice %177 {offsets = [1, 0, 0], sizes = [3, 3, 128], strides = [1, 1, 1]} : vector<5x3x128xf32> to vector<3x3x128xf32>
    %420 = vector.broadcast %418 : f32 to vector<3x3x128xf32>
    %421 = arith.mulf %420, %419 : vector<3x3x128xf32>
    %422 = arith.addf %417, %421 : vector<3x3x128xf32>
    %c41 = arith.constant 41 : index
    %423 = memref.load %arg4[%c41] : memref<72xf32, #tpu.memory_space<smem>>
    %424 = vector.extract_strided_slice %178 {offsets = [1, 0, 0], sizes = [3, 3, 128], strides = [1, 1, 1]} : vector<5x3x128xf32> to vector<3x3x128xf32>
    %425 = vector.broadcast %423 : f32 to vector<3x3x128xf32>
    %426 = arith.mulf %425, %424 : vector<3x3x128xf32>
    %427 = arith.addf %422, %426 : vector<3x3x128xf32>
    %c42 = arith.constant 42 : index
    %428 = memref.load %arg4[%c42] : memref<72xf32, #tpu.memory_space<smem>>
    %429 = vector.extract_strided_slice %176 {offsets = [2, 0, 0], sizes = [3, 3, 128], strides = [1, 1, 1]} : vector<5x3x128xf32> to vector<3x3x128xf32>
    %430 = vector.broadcast %428 : f32 to vector<3x3x128xf32>
    %431 = arith.mulf %430, %429 : vector<3x3x128xf32>
    %432 = arith.addf %427, %431 : vector<3x3x128xf32>
    %c43 = arith.constant 43 : index
    %433 = memref.load %arg4[%c43] : memref<72xf32, #tpu.memory_space<smem>>
    %434 = vector.extract_strided_slice %177 {offsets = [2, 0, 0], sizes = [3, 3, 128], strides = [1, 1, 1]} : vector<5x3x128xf32> to vector<3x3x128xf32>
    %435 = vector.broadcast %433 : f32 to vector<3x3x128xf32>
    %436 = arith.mulf %435, %434 : vector<3x3x128xf32>
    %437 = arith.addf %432, %436 : vector<3x3x128xf32>
    %c44 = arith.constant 44 : index
    %438 = memref.load %arg4[%c44] : memref<72xf32, #tpu.memory_space<smem>>
    %439 = vector.extract_strided_slice %178 {offsets = [2, 0, 0], sizes = [3, 3, 128], strides = [1, 1, 1]} : vector<5x3x128xf32> to vector<3x3x128xf32>
    %440 = vector.broadcast %438 : f32 to vector<3x3x128xf32>
    %441 = arith.mulf %440, %439 : vector<3x3x128xf32>
    %442 = arith.addf %437, %441 : vector<3x3x128xf32>
    %c45 = arith.constant 45 : index
    %443 = memref.load %arg4[%c45] : memref<72xf32, #tpu.memory_space<smem>>
    %444 = vector.extract_strided_slice %179 {offsets = [0, 0, 0], sizes = [3, 3, 128], strides = [1, 1, 1]} : vector<5x3x128xf32> to vector<3x3x128xf32>
    %445 = vector.broadcast %443 : f32 to vector<3x3x128xf32>
    %446 = arith.mulf %445, %444 : vector<3x3x128xf32>
    %447 = arith.addf %442, %446 : vector<3x3x128xf32>
    %c46 = arith.constant 46 : index
    %448 = memref.load %arg4[%c46] : memref<72xf32, #tpu.memory_space<smem>>
    %449 = vector.extract_strided_slice %180 {offsets = [0, 0, 0], sizes = [3, 3, 128], strides = [1, 1, 1]} : vector<5x3x128xf32> to vector<3x3x128xf32>
    %450 = vector.broadcast %448 : f32 to vector<3x3x128xf32>
    %451 = arith.mulf %450, %449 : vector<3x3x128xf32>
    %452 = arith.addf %447, %451 : vector<3x3x128xf32>
    %c47 = arith.constant 47 : index
    %453 = memref.load %arg4[%c47] : memref<72xf32, #tpu.memory_space<smem>>
    %454 = vector.extract_strided_slice %181 {offsets = [0, 0, 0], sizes = [3, 3, 128], strides = [1, 1, 1]} : vector<5x3x128xf32> to vector<3x3x128xf32>
    %455 = vector.broadcast %453 : f32 to vector<3x3x128xf32>
    %456 = arith.mulf %455, %454 : vector<3x3x128xf32>
    %457 = arith.addf %452, %456 : vector<3x3x128xf32>
    %c48 = arith.constant 48 : index
    %458 = memref.load %arg4[%c48] : memref<72xf32, #tpu.memory_space<smem>>
    %459 = vector.extract_strided_slice %179 {offsets = [1, 0, 0], sizes = [3, 3, 128], strides = [1, 1, 1]} : vector<5x3x128xf32> to vector<3x3x128xf32>
    %460 = vector.broadcast %458 : f32 to vector<3x3x128xf32>
    %461 = arith.mulf %460, %459 : vector<3x3x128xf32>
    %462 = arith.addf %457, %461 : vector<3x3x128xf32>
    %c49 = arith.constant 49 : index
    %463 = memref.load %arg4[%c49] : memref<72xf32, #tpu.memory_space<smem>>
    %464 = vector.extract_strided_slice %180 {offsets = [1, 0, 0], sizes = [3, 3, 128], strides = [1, 1, 1]} : vector<5x3x128xf32> to vector<3x3x128xf32>
    %465 = vector.broadcast %463 : f32 to vector<3x3x128xf32>
    %466 = arith.mulf %465, %464 : vector<3x3x128xf32>
    %467 = arith.addf %462, %466 : vector<3x3x128xf32>
    %c50 = arith.constant 50 : index
    %468 = memref.load %arg4[%c50] : memref<72xf32, #tpu.memory_space<smem>>
    %469 = vector.extract_strided_slice %181 {offsets = [1, 0, 0], sizes = [3, 3, 128], strides = [1, 1, 1]} : vector<5x3x128xf32> to vector<3x3x128xf32>
    %470 = vector.broadcast %468 : f32 to vector<3x3x128xf32>
    %471 = arith.mulf %470, %469 : vector<3x3x128xf32>
    %472 = arith.addf %467, %471 : vector<3x3x128xf32>
    %c51 = arith.constant 51 : index
    %473 = memref.load %arg4[%c51] : memref<72xf32, #tpu.memory_space<smem>>
    %474 = vector.extract_strided_slice %179 {offsets = [2, 0, 0], sizes = [3, 3, 128], strides = [1, 1, 1]} : vector<5x3x128xf32> to vector<3x3x128xf32>
    %475 = vector.broadcast %473 : f32 to vector<3x3x128xf32>
    %476 = arith.mulf %475, %474 : vector<3x3x128xf32>
    %477 = arith.addf %472, %476 : vector<3x3x128xf32>
    %c52 = arith.constant 52 : index
    %478 = memref.load %arg4[%c52] : memref<72xf32, #tpu.memory_space<smem>>
    %479 = vector.extract_strided_slice %180 {offsets = [2, 0, 0], sizes = [3, 3, 128], strides = [1, 1, 1]} : vector<5x3x128xf32> to vector<3x3x128xf32>
    %480 = vector.broadcast %478 : f32 to vector<3x3x128xf32>
    %481 = arith.mulf %480, %479 : vector<3x3x128xf32>
    %482 = arith.addf %477, %481 : vector<3x3x128xf32>
    %c53 = arith.constant 53 : index
    %483 = memref.load %arg4[%c53] : memref<72xf32, #tpu.memory_space<smem>>
    %484 = vector.extract_strided_slice %181 {offsets = [2, 0, 0], sizes = [3, 3, 128], strides = [1, 1, 1]} : vector<5x3x128xf32> to vector<3x3x128xf32>
    %485 = vector.broadcast %483 : f32 to vector<3x3x128xf32>
    %486 = arith.mulf %485, %484 : vector<3x3x128xf32>
    %487 = arith.addf %482, %486 : vector<3x3x128xf32>
    %cst_36 = arith.constant 0.000000e+00 : f32
    %488 = vector.broadcast %cst_36 : f32 to vector<3x3x128xf32>
    %489 = arith.maximumf %487, %488 : vector<3x3x128xf32>
    %490 = vector.extract_strided_slice %489 {offsets = [0, 0, 0], sizes = [1, 3, 128], strides = [1, 1, 1]} : vector<3x3x128xf32> to vector<1x3x128xf32>
    %491 = vector.shape_cast %490 : vector<1x3x128xf32> to vector<3x128xf32>
    %492 = vector.extract_strided_slice %489 {offsets = [1, 0, 0], sizes = [1, 3, 128], strides = [1, 1, 1]} : vector<3x3x128xf32> to vector<1x3x128xf32>
    %493 = vector.shape_cast %492 : vector<1x3x128xf32> to vector<3x128xf32>
    %494 = arith.maximumf %491, %493 : vector<3x128xf32>
    %495 = vector.extract_strided_slice %489 {offsets = [2, 0, 0], sizes = [1, 3, 128], strides = [1, 1, 1]} : vector<3x3x128xf32> to vector<1x3x128xf32>
    %496 = vector.shape_cast %495 : vector<1x3x128xf32> to vector<3x128xf32>
    %497 = arith.maximumf %494, %496 : vector<3x128xf32>
    %498 = vector.extract_strided_slice %497 {offsets = [0, 0], sizes = [1, 128], strides = [1, 1]} : vector<3x128xf32> to vector<1x128xf32>
    %499 = vector.extract_strided_slice %497 {offsets = [1, 0], sizes = [1, 128], strides = [1, 1]} : vector<3x128xf32> to vector<1x128xf32>
    %500 = arith.maximumf %498, %499 : vector<1x128xf32>
    %501 = vector.extract_strided_slice %497 {offsets = [2, 0], sizes = [1, 128], strides = [1, 1]} : vector<3x128xf32> to vector<1x128xf32>
    %502 = arith.maximumf %500, %501 : vector<1x128xf32>
    %c3_37 = arith.constant 3 : index
    %503 = memref.load %arg5[%c3_37] : memref<4xf32, #tpu.memory_space<smem>>
    %504 = vector.broadcast %503 : f32 to vector<3x3x128xf32>
    %c54 = arith.constant 54 : index
    %505 = memref.load %arg4[%c54] : memref<72xf32, #tpu.memory_space<smem>>
    %506 = vector.extract_strided_slice %176 {offsets = [0, 0, 0], sizes = [3, 3, 128], strides = [1, 1, 1]} : vector<5x3x128xf32> to vector<3x3x128xf32>
    %507 = vector.broadcast %505 : f32 to vector<3x3x128xf32>
    %508 = arith.mulf %507, %506 : vector<3x3x128xf32>
    %509 = arith.addf %504, %508 : vector<3x3x128xf32>
    %c55 = arith.constant 55 : index
    %510 = memref.load %arg4[%c55] : memref<72xf32, #tpu.memory_space<smem>>
    %511 = vector.extract_strided_slice %177 {offsets = [0, 0, 0], sizes = [3, 3, 128], strides = [1, 1, 1]} : vector<5x3x128xf32> to vector<3x3x128xf32>
    %512 = vector.broadcast %510 : f32 to vector<3x3x128xf32>
    %513 = arith.mulf %512, %511 : vector<3x3x128xf32>
    %514 = arith.addf %509, %513 : vector<3x3x128xf32>
    %c56 = arith.constant 56 : index
    %515 = memref.load %arg4[%c56] : memref<72xf32, #tpu.memory_space<smem>>
    %516 = vector.extract_strided_slice %178 {offsets = [0, 0, 0], sizes = [3, 3, 128], strides = [1, 1, 1]} : vector<5x3x128xf32> to vector<3x3x128xf32>
    %517 = vector.broadcast %515 : f32 to vector<3x3x128xf32>
    %518 = arith.mulf %517, %516 : vector<3x3x128xf32>
    %519 = arith.addf %514, %518 : vector<3x3x128xf32>
    %c57 = arith.constant 57 : index
    %520 = memref.load %arg4[%c57] : memref<72xf32, #tpu.memory_space<smem>>
    %521 = vector.extract_strided_slice %176 {offsets = [1, 0, 0], sizes = [3, 3, 128], strides = [1, 1, 1]} : vector<5x3x128xf32> to vector<3x3x128xf32>
    %522 = vector.broadcast %520 : f32 to vector<3x3x128xf32>
    %523 = arith.mulf %522, %521 : vector<3x3x128xf32>
    %524 = arith.addf %519, %523 : vector<3x3x128xf32>
    %c58 = arith.constant 58 : index
    %525 = memref.load %arg4[%c58] : memref<72xf32, #tpu.memory_space<smem>>
    %526 = vector.extract_strided_slice %177 {offsets = [1, 0, 0], sizes = [3, 3, 128], strides = [1, 1, 1]} : vector<5x3x128xf32> to vector<3x3x128xf32>
    %527 = vector.broadcast %525 : f32 to vector<3x3x128xf32>
    %528 = arith.mulf %527, %526 : vector<3x3x128xf32>
    %529 = arith.addf %524, %528 : vector<3x3x128xf32>
    %c59 = arith.constant 59 : index
    %530 = memref.load %arg4[%c59] : memref<72xf32, #tpu.memory_space<smem>>
    %531 = vector.extract_strided_slice %178 {offsets = [1, 0, 0], sizes = [3, 3, 128], strides = [1, 1, 1]} : vector<5x3x128xf32> to vector<3x3x128xf32>
    %532 = vector.broadcast %530 : f32 to vector<3x3x128xf32>
    %533 = arith.mulf %532, %531 : vector<3x3x128xf32>
    %534 = arith.addf %529, %533 : vector<3x3x128xf32>
    %c60 = arith.constant 60 : index
    %535 = memref.load %arg4[%c60] : memref<72xf32, #tpu.memory_space<smem>>
    %536 = vector.extract_strided_slice %176 {offsets = [2, 0, 0], sizes = [3, 3, 128], strides = [1, 1, 1]} : vector<5x3x128xf32> to vector<3x3x128xf32>
    %537 = vector.broadcast %535 : f32 to vector<3x3x128xf32>
    %538 = arith.mulf %537, %536 : vector<3x3x128xf32>
    %539 = arith.addf %534, %538 : vector<3x3x128xf32>
    %c61 = arith.constant 61 : index
    %540 = memref.load %arg4[%c61] : memref<72xf32, #tpu.memory_space<smem>>
    %541 = vector.extract_strided_slice %177 {offsets = [2, 0, 0], sizes = [3, 3, 128], strides = [1, 1, 1]} : vector<5x3x128xf32> to vector<3x3x128xf32>
    %542 = vector.broadcast %540 : f32 to vector<3x3x128xf32>
    %543 = arith.mulf %542, %541 : vector<3x3x128xf32>
    %544 = arith.addf %539, %543 : vector<3x3x128xf32>
    %c62 = arith.constant 62 : index
    %545 = memref.load %arg4[%c62] : memref<72xf32, #tpu.memory_space<smem>>
    %546 = vector.extract_strided_slice %178 {offsets = [2, 0, 0], sizes = [3, 3, 128], strides = [1, 1, 1]} : vector<5x3x128xf32> to vector<3x3x128xf32>
    %547 = vector.broadcast %545 : f32 to vector<3x3x128xf32>
    %548 = arith.mulf %547, %546 : vector<3x3x128xf32>
    %549 = arith.addf %544, %548 : vector<3x3x128xf32>
    %c63 = arith.constant 63 : index
    %550 = memref.load %arg4[%c63] : memref<72xf32, #tpu.memory_space<smem>>
    %551 = vector.extract_strided_slice %179 {offsets = [0, 0, 0], sizes = [3, 3, 128], strides = [1, 1, 1]} : vector<5x3x128xf32> to vector<3x3x128xf32>
    %552 = vector.broadcast %550 : f32 to vector<3x3x128xf32>
    %553 = arith.mulf %552, %551 : vector<3x3x128xf32>
    %554 = arith.addf %549, %553 : vector<3x3x128xf32>
    %c64 = arith.constant 64 : index
    %555 = memref.load %arg4[%c64] : memref<72xf32, #tpu.memory_space<smem>>
    %556 = vector.extract_strided_slice %180 {offsets = [0, 0, 0], sizes = [3, 3, 128], strides = [1, 1, 1]} : vector<5x3x128xf32> to vector<3x3x128xf32>
    %557 = vector.broadcast %555 : f32 to vector<3x3x128xf32>
    %558 = arith.mulf %557, %556 : vector<3x3x128xf32>
    %559 = arith.addf %554, %558 : vector<3x3x128xf32>
    %c65 = arith.constant 65 : index
    %560 = memref.load %arg4[%c65] : memref<72xf32, #tpu.memory_space<smem>>
    %561 = vector.extract_strided_slice %181 {offsets = [0, 0, 0], sizes = [3, 3, 128], strides = [1, 1, 1]} : vector<5x3x128xf32> to vector<3x3x128xf32>
    %562 = vector.broadcast %560 : f32 to vector<3x3x128xf32>
    %563 = arith.mulf %562, %561 : vector<3x3x128xf32>
    %564 = arith.addf %559, %563 : vector<3x3x128xf32>
    %c66 = arith.constant 66 : index
    %565 = memref.load %arg4[%c66] : memref<72xf32, #tpu.memory_space<smem>>
    %566 = vector.extract_strided_slice %179 {offsets = [1, 0, 0], sizes = [3, 3, 128], strides = [1, 1, 1]} : vector<5x3x128xf32> to vector<3x3x128xf32>
    %567 = vector.broadcast %565 : f32 to vector<3x3x128xf32>
    %568 = arith.mulf %567, %566 : vector<3x3x128xf32>
    %569 = arith.addf %564, %568 : vector<3x3x128xf32>
    %c67 = arith.constant 67 : index
    %570 = memref.load %arg4[%c67] : memref<72xf32, #tpu.memory_space<smem>>
    %571 = vector.extract_strided_slice %180 {offsets = [1, 0, 0], sizes = [3, 3, 128], strides = [1, 1, 1]} : vector<5x3x128xf32> to vector<3x3x128xf32>
    %572 = vector.broadcast %570 : f32 to vector<3x3x128xf32>
    %573 = arith.mulf %572, %571 : vector<3x3x128xf32>
    %574 = arith.addf %569, %573 : vector<3x3x128xf32>
    %c68 = arith.constant 68 : index
    %575 = memref.load %arg4[%c68] : memref<72xf32, #tpu.memory_space<smem>>
    %576 = vector.extract_strided_slice %181 {offsets = [1, 0, 0], sizes = [3, 3, 128], strides = [1, 1, 1]} : vector<5x3x128xf32> to vector<3x3x128xf32>
    %577 = vector.broadcast %575 : f32 to vector<3x3x128xf32>
    %578 = arith.mulf %577, %576 : vector<3x3x128xf32>
    %579 = arith.addf %574, %578 : vector<3x3x128xf32>
    %c69 = arith.constant 69 : index
    %580 = memref.load %arg4[%c69] : memref<72xf32, #tpu.memory_space<smem>>
    %581 = vector.extract_strided_slice %179 {offsets = [2, 0, 0], sizes = [3, 3, 128], strides = [1, 1, 1]} : vector<5x3x128xf32> to vector<3x3x128xf32>
    %582 = vector.broadcast %580 : f32 to vector<3x3x128xf32>
    %583 = arith.mulf %582, %581 : vector<3x3x128xf32>
    %584 = arith.addf %579, %583 : vector<3x3x128xf32>
    %c70 = arith.constant 70 : index
    %585 = memref.load %arg4[%c70] : memref<72xf32, #tpu.memory_space<smem>>
    %586 = vector.extract_strided_slice %180 {offsets = [2, 0, 0], sizes = [3, 3, 128], strides = [1, 1, 1]} : vector<5x3x128xf32> to vector<3x3x128xf32>
    %587 = vector.broadcast %585 : f32 to vector<3x3x128xf32>
    %588 = arith.mulf %587, %586 : vector<3x3x128xf32>
    %589 = arith.addf %584, %588 : vector<3x3x128xf32>
    %c71 = arith.constant 71 : index
    %590 = memref.load %arg4[%c71] : memref<72xf32, #tpu.memory_space<smem>>
    %591 = vector.extract_strided_slice %181 {offsets = [2, 0, 0], sizes = [3, 3, 128], strides = [1, 1, 1]} : vector<5x3x128xf32> to vector<3x3x128xf32>
    %592 = vector.broadcast %590 : f32 to vector<3x3x128xf32>
    %593 = arith.mulf %592, %591 : vector<3x3x128xf32>
    %594 = arith.addf %589, %593 : vector<3x3x128xf32>
    %cst_38 = arith.constant 0.000000e+00 : f32
    %595 = vector.broadcast %cst_38 : f32 to vector<3x3x128xf32>
    %596 = arith.maximumf %594, %595 : vector<3x3x128xf32>
    %597 = vector.extract_strided_slice %596 {offsets = [0, 0, 0], sizes = [1, 3, 128], strides = [1, 1, 1]} : vector<3x3x128xf32> to vector<1x3x128xf32>
    %598 = vector.shape_cast %597 : vector<1x3x128xf32> to vector<3x128xf32>
    %599 = vector.extract_strided_slice %596 {offsets = [1, 0, 0], sizes = [1, 3, 128], strides = [1, 1, 1]} : vector<3x3x128xf32> to vector<1x3x128xf32>
    %600 = vector.shape_cast %599 : vector<1x3x128xf32> to vector<3x128xf32>
    %601 = arith.maximumf %598, %600 : vector<3x128xf32>
    %602 = vector.extract_strided_slice %596 {offsets = [2, 0, 0], sizes = [1, 3, 128], strides = [1, 1, 1]} : vector<3x3x128xf32> to vector<1x3x128xf32>
    %603 = vector.shape_cast %602 : vector<1x3x128xf32> to vector<3x128xf32>
    %604 = arith.maximumf %601, %603 : vector<3x128xf32>
    %605 = vector.extract_strided_slice %604 {offsets = [0, 0], sizes = [1, 128], strides = [1, 1]} : vector<3x128xf32> to vector<1x128xf32>
    %606 = vector.extract_strided_slice %604 {offsets = [1, 0], sizes = [1, 128], strides = [1, 1]} : vector<3x128xf32> to vector<1x128xf32>
    %607 = arith.maximumf %605, %606 : vector<1x128xf32>
    %608 = vector.extract_strided_slice %604 {offsets = [2, 0], sizes = [1, 128], strides = [1, 1]} : vector<3x128xf32> to vector<1x128xf32>
    %609 = arith.maximumf %607, %608 : vector<1x128xf32>
    %c0_39 = arith.constant 0 : index
    %610 = memref.load %arg7[%c0_39] : memref<3xf32, #tpu.memory_space<smem>>
    %611 = vector.broadcast %610 : f32 to vector<1x128xf32>
    %c0_40 = arith.constant 0 : index
    %612 = memref.load %arg6[%c0_40] : memref<12xf32, #tpu.memory_space<smem>>
    %613 = vector.broadcast %612 : f32 to vector<1x128xf32>
    %614 = arith.mulf %613, %288 : vector<1x128xf32>
    %615 = arith.addf %611, %614 : vector<1x128xf32>
    %c1_41 = arith.constant 1 : index
    %616 = memref.load %arg6[%c1_41] : memref<12xf32, #tpu.memory_space<smem>>
    %617 = vector.broadcast %616 : f32 to vector<1x128xf32>
    %618 = arith.mulf %617, %395 : vector<1x128xf32>
    %619 = arith.addf %615, %618 : vector<1x128xf32>
    %c2_42 = arith.constant 2 : index
    %620 = memref.load %arg6[%c2_42] : memref<12xf32, #tpu.memory_space<smem>>
    %621 = vector.broadcast %620 : f32 to vector<1x128xf32>
    %622 = arith.mulf %621, %502 : vector<1x128xf32>
    %623 = arith.addf %619, %622 : vector<1x128xf32>
    %c3_43 = arith.constant 3 : index
    %624 = memref.load %arg6[%c3_43] : memref<12xf32, #tpu.memory_space<smem>>
    %625 = vector.broadcast %624 : f32 to vector<1x128xf32>
    %626 = arith.mulf %625, %609 : vector<1x128xf32>
    %627 = arith.addf %623, %626 : vector<1x128xf32>
    %c1_44 = arith.constant 1 : index
    %628 = memref.load %arg7[%c1_44] : memref<3xf32, #tpu.memory_space<smem>>
    %629 = vector.broadcast %628 : f32 to vector<1x128xf32>
    %c4_45 = arith.constant 4 : index
    %630 = memref.load %arg6[%c4_45] : memref<12xf32, #tpu.memory_space<smem>>
    %631 = vector.broadcast %630 : f32 to vector<1x128xf32>
    %632 = arith.mulf %631, %288 : vector<1x128xf32>
    %633 = arith.addf %629, %632 : vector<1x128xf32>
    %c5_46 = arith.constant 5 : index
    %634 = memref.load %arg6[%c5_46] : memref<12xf32, #tpu.memory_space<smem>>
    %635 = vector.broadcast %634 : f32 to vector<1x128xf32>
    %636 = arith.mulf %635, %395 : vector<1x128xf32>
    %637 = arith.addf %633, %636 : vector<1x128xf32>
    %c6_47 = arith.constant 6 : index
    %638 = memref.load %arg6[%c6_47] : memref<12xf32, #tpu.memory_space<smem>>
    %639 = vector.broadcast %638 : f32 to vector<1x128xf32>
    %640 = arith.mulf %639, %502 : vector<1x128xf32>
    %641 = arith.addf %637, %640 : vector<1x128xf32>
    %c7_48 = arith.constant 7 : index
    %642 = memref.load %arg6[%c7_48] : memref<12xf32, #tpu.memory_space<smem>>
    %643 = vector.broadcast %642 : f32 to vector<1x128xf32>
    %644 = arith.mulf %643, %609 : vector<1x128xf32>
    %645 = arith.addf %641, %644 : vector<1x128xf32>
    %c2_49 = arith.constant 2 : index
    %646 = memref.load %arg7[%c2_49] : memref<3xf32, #tpu.memory_space<smem>>
    %647 = vector.broadcast %646 : f32 to vector<1x128xf32>
    %c8_50 = arith.constant 8 : index
    %648 = memref.load %arg6[%c8_50] : memref<12xf32, #tpu.memory_space<smem>>
    %649 = vector.broadcast %648 : f32 to vector<1x128xf32>
    %650 = arith.mulf %649, %288 : vector<1x128xf32>
    %651 = arith.addf %647, %650 : vector<1x128xf32>
    %c9_51 = arith.constant 9 : index
    %652 = memref.load %arg6[%c9_51] : memref<12xf32, #tpu.memory_space<smem>>
    %653 = vector.broadcast %652 : f32 to vector<1x128xf32>
    %654 = arith.mulf %653, %395 : vector<1x128xf32>
    %655 = arith.addf %651, %654 : vector<1x128xf32>
    %c10_52 = arith.constant 10 : index
    %656 = memref.load %arg6[%c10_52] : memref<12xf32, #tpu.memory_space<smem>>
    %657 = vector.broadcast %656 : f32 to vector<1x128xf32>
    %658 = arith.mulf %657, %502 : vector<1x128xf32>
    %659 = arith.addf %655, %658 : vector<1x128xf32>
    %c11_53 = arith.constant 11 : index
    %660 = memref.load %arg6[%c11_53] : memref<12xf32, #tpu.memory_space<smem>>
    %661 = vector.broadcast %660 : f32 to vector<1x128xf32>
    %662 = arith.mulf %661, %609 : vector<1x128xf32>
    %663 = arith.addf %659, %662 : vector<1x128xf32>
    %664 = tpu.concatenate %627, %645, %663 in 0 : vector<1x128xf32>, vector<1x128xf32>, vector<1x128xf32> -> vector<3x128xf32>
    %c0_54 = arith.constant 0 : index
    %c0_55 = arith.constant 0 : index
    %665 = vector.load %arg8[%c0_54, %c0_55] : memref<3x128xf32, #tpu.memory_space<vmem>>, vector<3x128xf32>
    tpu.vector_store %arg8[%c0_54, %c0_55], %664 {strides = array<i32>} : memref<3x128xf32, #tpu.memory_space<vmem>>, vector<3x128xf32>,
    return
  }
  func.func @transform_0(%arg0: i32) -> (i32, i32, i32) {
    %c0_i32 = arith.constant 0 : i32
    %c0_i32_0 = arith.constant 0 : i32
    %c0_i32_1 = arith.constant 0 : i32
    return %c0_i32, %c0_i32_0, %arg0 : i32, i32, i32
  }
  func.func @transform_1(%arg0: i32) -> i32 {
    %c0_i32 = arith.constant 0 : i32
    %c0_i32_0 = arith.constant 0 : i32
    return %c0_i32 : i32
  }
  func.func @transform_2(%arg0: i32) -> i32 {
    %c0_i32 = arith.constant 0 : i32
    %c0_i32_0 = arith.constant 0 : i32
    return %c0_i32 : i32
  }
  func.func @transform_3(%arg0: i32) -> i32 {
    %c0_i32 = arith.constant 0 : i32
    %c0_i32_0 = arith.constant 0 : i32
    return %c0_i32 : i32
  }
  func.func @transform_4(%arg0: i32) -> i32 {
    %c0_i32 = arith.constant 0 : i32
    %c0_i32_0 = arith.constant 0 : i32
    return %c0_i32 : i32
  }
  func.func @transform_5(%arg0: i32) -> i32 {
    %c0_i32 = arith.constant 0 : i32
    %c0_i32_0 = arith.constant 0 : i32
    return %c0_i32 : i32
  }
  func.func @transform_6(%arg0: i32) -> i32 {
    %c0_i32 = arith.constant 0 : i32
    %c0_i32_0 = arith.constant 0 : i32
    return %c0_i32 : i32
  }
  func.func @transform_7(%arg0: i32) -> (i32, i32) {
    %c0_i32 = arith.constant 0 : i32
    %c0_i32_0 = arith.constant 0 : i32
    return %c0_i32, %arg0 : i32, i32
  }
}

</mosaic_0001>

<bundles_post_ra>
// kernel: tpu_custom_call.1
= control target key start
LH: loop header
LB: loop body
LE: loop exit
PB: predicated region body
PF: predicated region fallthrough
CT: control target
= control target key end

     0   :  { %12 = vsyncpa [#allocation3], 0  ;;  %s4983_s0 = inlined_call_operand.hbm [shape: f32[16,16,128], index: 0, kind: input, shape index: {}]   ;;  %s4984_s1 = inlined_call_operand.vmem [shape: f32[18], index: 1, kind: input, shape index: {}]   ;;  %s4985_s2 = inlined_call_operand.vmem [shape: f32[2], index: 2, kind: input, shape index: {}]   ;;  %s4986_s3 = inlined_call_operand.vmem [shape: f32[72], index: 3, kind: input, shape index: {}]   ;;  %s4987_s4 = inlined_call_operand.vmem [shape: f32[4], index: 4, kind: input, shape index: {}]   ;;  %s4988_s5 = inlined_call_operand.vmem [shape: f32[12], index: 5, kind: input, shape index: {}]   ;;  %s4989_s6 = inlined_call_operand.vmem [shape: f32[3], index: 6, kind: input, shape index: {}]   ;;  %s4990_s7 = inlined_call_operand.hbm [shape: f32[3,128], index: 7, kind: output, shape index: {}]  }
   0x1   :  { %13 = vsyncpa [#allocation5], 0 }
   0x2   :  { %14 = vsyncpa [#allocation8], 0 }
   0x3   :  { %15 = vsyncpa [#allocation11], 0 }
   0x4   :  { %16 = vsyncpa [#allocation14], 0  ;;  %s46_s26 = sshll.u32 %s4985_s2, 4  ;;  %s47_s26 = int_to_ptr.vmem [resolvable:$true] %s46_s26 }
   0x5   :  { %17 = vsyncpa [#allocation4], 0  ;;  %s66_s29 = sshll.u32 %s4987_s4, 4  ;;  %s2824_s30 = scalar_lea.vmem %s47_s26, 16  ;;  %s67_s29 = int_to_ptr.vmem [resolvable:$true] %s66_s29 }
   0x6   :  { %p2825_p0 = scmp.ne.s32.totalorder %s47_s26, %s2824_s30  ;;  %p2829_p1 = scmp.lt.s32.totalorder %s47_s26, %s47_s26 }
   0x7   :  { %p2830_p2 = scmp.lt.s32.totalorder %s2824_s30, %s2824_s30 }
   0x9   :  { %p2831_p3 = por %p2830_p2, %p2829_p1 }
   0xb   :  { %p2832_p4 = pnand %p2831_p3, %p2825_p0 }
   0xd   :  { %2835 = shalt.err (!%p2832_p4)
}
   0xe   :  { %s2948_s8 = smov [#allocation7]   ;;  %s2836_s9 = scalar_lea.vmem %s67_s29, 16 }
   0xf   :  { %49 = dma.vmem_to_smem %s47_s26, 16, %s2948_s8, [#allocation8]  }
  0x10   :  { %p2837_p5 = scmp.ne.s32.totalorder %s67_s29, %s2836_s9  ;;  %p2841_p6 = scmp.lt.s32.totalorder %s67_s29, %s67_s29 }
  0x11   :  { %p2842_p7 = scmp.lt.s32.totalorder %s2836_s9, %s2836_s9 }
  0x13   :  { %p2843_p8 = por %p2842_p7, %p2841_p6 }
  0x15   :  { %p2844_p9 = pnand %p2843_p8, %p2837_p5 }
  0x17   :  { %2847 = shalt.err (!%p2844_p9)
}
  0x18   :  { %s2949_s2 = smov [#allocation10]   ;;  %s2950_s4 = smov [#allocation2]  }
  0x19   :  { %69 = dma.vmem_to_smem %s67_s29, 16, %s2949_s2, [#allocation11]  }
  0x1a   :  { %s23_s10 = sshll.u32 %s2950_s4, 4  ;;  %s36_s13 = sshll.u32 %s4984_s1, 4  ;;  %s24_s10 = int_to_ptr.vmem [resolvable:$true] %s23_s10  ;;  %s37_s13 = int_to_ptr.vmem [resolvable:$true] %s36_s13 }
  0x1b   :  { %s2856_s14 = scalar_lea.vmem %s24_s10, 4096  ;;  %p2861_p11 = scmp.lt.s32.totalorder %s24_s10, %s24_s10 }
  0x1c   :  { %p2857_p10 = scmp.ne.s32.totalorder %s24_s10, %s2856_s14  ;;  %p2862_p12 = scmp.lt.s32.totalorder %s2856_s14, %s2856_s14 }
  0x1e   :  { %p2863_p13 = por %p2862_p12, %p2861_p11 }
  0x20   :  { %p2864_p0 = pnand %p2863_p13, %p2857_p10 }
  0x22   :  { %2867 = shalt.err (!%p2864_p0)
}
  0x23   :  { %s2951_s15 = smov 128   ;;  %s2952_s16 = smov 8  }
  0x24   :  { %29 = dma.hbm_to_vmem [thread:$0]  %s4983_s0, 4096, %s24_s10, [#allocation3], %s2951_s15, %s2951_s15, %s2952_s16  }
  0x25   :  { %s2868_s19 = scalar_lea.vmem %s37_s13, 16  ;;  %p2873_p2 = scmp.lt.s32.totalorder %s37_s13, %s37_s13 }
  0x26   :  { %p2869_p1 = scmp.ne.s32.totalorder %s37_s13, %s2868_s19  ;;  %p2874_p3 = scmp.lt.s32.totalorder %s2868_s19, %s2868_s19 }
  0x28   :  { %p2875_p4 = por %p2874_p3, %p2873_p2 }
  0x2a   :  { %p2876_p5 = pnand %p2875_p4, %p2869_p1 }
  0x2c   :  { %2879 = shalt.err (!%p2876_p5)
}
  0x2d   :  { %s2953_s1 = smov [#allocation6]   ;;  %s56_s22 = sshll.u32 %s4986_s3, 4  ;;  %s57_s22 = int_to_ptr.vmem [resolvable:$true] %s56_s22 }
  0x2e   :  { %39 = dma.vmem_to_smem %s37_s13, 16, %s2953_s1, [#allocation5]  }
  0x2f   :  { %s76_s25 = sshll.u32 %s4988_s5, 4  ;;  %s2880_s0 = scalar_lea.vmem %s57_s22, 16  ;;  %s77_s25 = int_to_ptr.vmem [resolvable:$true] %s76_s25 }
  0x30   :  { %p2881_p6 = scmp.ne.s32.totalorder %s57_s22, %s2880_s0  ;;  %p2885_p7 = scmp.lt.s32.totalorder %s57_s22, %s57_s22 }
  0x31   :  { %p2886_p8 = scmp.lt.s32.totalorder %s2880_s0, %s2880_s0 }
  0x33   :  { %p2887_p9 = por %p2886_p8, %p2885_p7 }
  0x35   :  { %p2888_p10 = pnand %p2887_p9, %p2881_p6 }
  0x37   :  { %2891 = shalt.err (!%p2888_p10)
}
  0x38   :  { %s2954_s26 = smov [#allocation9]   ;;  %s2892_s27 = scalar_lea.vmem %s77_s25, 16 }
  0x39   :  { %59 = dma.vmem_to_smem %s57_s22, 16, %s2954_s26, [#allocation8]  }
  0x3a   :  { %p2893_p11 = scmp.ne.s32.totalorder %s77_s25, %s2892_s27  ;;  %p2897_p12 = scmp.lt.s32.totalorder %s77_s25, %s77_s25 }
  0x3b   :  { %p2898_p13 = scmp.lt.s32.totalorder %s2892_s27, %s2892_s27 }
  0x3d   :  { %p2899_p0 = por %p2898_p13, %p2897_p12 }
  0x3f   :  { %p2900_p1 = pnand %p2899_p0, %p2893_p11 }
  0x41   :  { %2903 = shalt.err (!%p2900_p1)
}
  0x42   :  { %s2955_s3 = smov [#allocation12]   ;;  %s86_s29 = sshll.u32 %s4989_s6, 4  ;;  %s87_s29 = int_to_ptr.vmem [resolvable:$true] %s86_s29 }
  0x43   :  { %79 = dma.vmem_to_smem %s77_s25, 16, %s2955_s3, [#allocation11]  }
  0x44   :  { %s2904_s30 = scalar_lea.vmem %s87_s29, 16  ;;  %p2909_p3 = scmp.lt.s32.totalorder %s87_s29, %s87_s29 }
  0x45   :  { %p2905_p2 = scmp.ne.s32.totalorder %s87_s29, %s2904_s30  ;;  %p2910_p4 = scmp.lt.s32.totalorder %s2904_s30, %s2904_s30 }
  0x47   :  { %p2911_p5 = por %p2910_p4, %p2909_p3 }
  0x49   :  { %p2912_p6 = pnand %p2911_p5, %p2905_p2 }
  0x4b   :  { %2915 = shalt.err (!%p2912_p6)
}
  0x4c   :  { %s2956_s8 = smov [#allocation13]  }
  0x4d   :  { %89 = dma.vmem_to_smem %s87_s29, 16, %s2956_s8, [#allocation14]  }
  0x4e   :  { %2936 = dma.done.wait [#allocation3], 4096  }
  0x4f   :  { %2937 = vsyncadd [#allocation3], 4294963200 }
  0x50   :  { %2938 = dma.done.wait [#allocation5], 16  }
  0x51   :  { %2939 = vsyncadd [#allocation5], 4294967280 }
  0x52   :  { %2940 = dma.done.wait [#allocation8], 32  }
  0x53   :  { %2941 = vsyncadd [#allocation8], 4294967264 }
  0x54   :  { %2942 = dma.done.wait [#allocation11], 32  }
  0x55   :  { %2943 = vsyncadd [#allocation11], 4294967264 }
  0x56   :  { %2944 = dma.done.wait [#allocation14], 16  }
  0x57   :  { %2945 = vsyncadd [#allocation14], 4294967280 }
  0x58   :  { %111 = sfence }
  0x59   :  { %v3019_v0 = vld [vmem:[#allocation2] sm:$0xff]  ;;  %v3021_v1 = vld [vmem:[#allocation2 + $0x8] sm:$0xff]  ;;  %v3023_v2 = vld [vmem:[#allocation2 + $0x10] sm:$0xff]  ;;  %vm164_vm0 = vcmask 1040384   ;;  %vm243_vm1 = vcmask 1046528   ;;  %s3201_s6 = sld [smem:[#allocation7]] }
  0x5a   :  { %5198 = vst [vmem:[#allocation22_spill] sm:$0xff] %v3019_v0  ;;  %5199 = vst [vmem:[#allocation23_spill] sm:$0xff] %v3021_v1  ;;  %v3025_v3 = vld [vmem:[#allocation2 + $0x18] sm:$0xff]  ;;  %v3027_v4 = vld [vmem:[#allocation2 + $0x20] sm:$0xff]  ;;  %v165_v6 = vrot.slane %v3019_v0, 7  ;;  %v166_v7 = vrot.slane %v3021_v1, 7 }
  0x5b   :  { %5200 = vst [vmem:[#allocation24_spill] sm:$0xff] %v3023_v2  ;;  %5201 = vst [vmem:[#allocation25_spill] sm:$0xff] %v3025_v3  ;;  %v3029_v5 = vld [vmem:[#allocation2 + $0x28] sm:$0xff]  ;;  %v168_v8 = vrot.slane %v3023_v2, 7  ;;  %v3034_v9 = vld [vmem:[#allocation2 + $0x30] sm:$0xff]  ;;  %v169_v12 = vrot.slane %v3025_v3, 7 }
  0x5c   :  { %5202 = vst [vmem:[#allocation26_spill] sm:$0xff] %v3027_v4  ;;  %5203 = vst [vmem:[#allocation27_spill] sm:$0xff] %v3029_v5  ;;  %v3036_v10 = vld [vmem:[#allocation2 + $0x38] sm:$0xff]  ;;  %v3038_v11 = vld [vmem:[#allocation2 + $0x40] sm:$0xff]  ;;  %v171_v13 = vrot.slane %v3027_v4, 7  ;;  %v172_v14 = vrot.slane %v3029_v5, 7  ;;  %v3050_v18 = vsel %vm164_vm0, %v165_v6, %v166_v7 }
  0x5d   :  { %5204 = vst [vmem:[#allocation28_spill] sm:$0xff] %v3034_v9  ;;  %5205 = vst [vmem:[#allocation29_spill] sm:$0xff] %v3036_v10  ;;  %v3043_v15 = vld [vmem:[#allocation2 + $0x48] sm:$0xff]  ;;  %v3045_v16 = vld [vmem:[#allocation2 + $0x50] sm:$0xff]  ;;  %v174_v19 = vrot.slane %v3034_v9, 7  ;;  %v175_v20 = vrot.slane %v3036_v10, 7  ;;  %v3062_v25 = vsel %vm164_vm0, %v168_v8, %v169_v12 }
  0x5e   :  { %5206 = vst [vmem:[#allocation30_spill] sm:$0xff] %v3038_v11  ;;  %5207 = vst [vmem:[#allocation31_spill] sm:$0xff] %v3043_v15  ;;  %v3047_v17 = vld [vmem:[#allocation2 + $0x58] sm:$0xff]  ;;  %v177_v21 = vrot.slane %v3038_v11, 7  ;;  %v3055_v22 = vld [vmem:[#allocation2 + $0x60] sm:$0xff]  ;;  %v3065_v26 = vsel %vm164_vm0, %v171_v13, %v172_v14  ;;  %v178_v27 = vrot.slane %v3043_v15, 7 }
  0x5f   :  { %5208 = vst [vmem:[#allocation32_spill] sm:$0xff] %v3045_v16  ;;  %5209 = vst [vmem:[#allocation33_spill] sm:$0xff] %v3047_v17  ;;  %v3057_v23 = vld [vmem:[#allocation2 + $0x68] sm:$0xff]  ;;  %v3059_v24 = vld [vmem:[#allocation2 + $0x70] sm:$0xff]  ;;  %v180_v28 = vrot.slane %v3045_v16, 7  ;;  %v3076_v32 = vsel %vm164_vm0, %v174_v19, %v175_v20  ;;  %v181_v33 = vrot.slane %v3047_v17, 7 }
  0x60   :  { %5210 = vst [vmem:[#allocation34_spill] sm:$0xff] %v3050_v18  ;;  %5211 = vst [vmem:[#allocation35_spill] sm:$0xff] %v3055_v22  ;;  %v3069_v29 = vld [vmem:[#allocation2 + $0x78] sm:$0xff]  ;;  %v3071_v30 = vld [vmem:[#allocation2 + $0x80] sm:$0xff]  ;;  %v183_v34 = vrot.slane %v3055_v22, 7  ;;  %v184_v35 = vrot.slane %v3057_v23, 7  ;;  %v3088_v39 = vsel %vm164_vm0, %v177_v21, %v178_v27 }
  0x61   :  { %5212 = vst [vmem:[#allocation36_spill] sm:$0xff] %v3057_v23  ;;  %5213 = vst [vmem:[#allocation37_spill] sm:$0xff] %v3059_v24  ;;  %v3073_v31 = vld [vmem:[#allocation2 + $0x88] sm:$0xff]  ;;  %v3081_v36 = vld [vmem:[#allocation2 + $0x90] sm:$0xff]  ;;  %v186_v40 = vrot.slane %v3059_v24, 7  ;;  %v187_v41 = vrot.slane %v3069_v29, 7  ;;  %v3100_v46 = vsel %vm164_vm0, %v180_v28, %v181_v33 }
  0x62   :  { %5214 = vst [vmem:[#allocation38_spill] sm:$0xff] %v3062_v25  ;;  %5215 = vst [vmem:[#allocation39_spill] sm:$0xff] %v3065_v26  ;;  %v3083_v37 = vld [vmem:[#allocation2 + $0x98] sm:$0xff]  ;;  %v3085_v38 = vld [vmem:[#allocation2 + $0xa0] sm:$0xff]  ;;  %v189_v42 = vrot.slane %v3071_v30, 7  ;;  %v3103_v47 = vsel %vm164_vm0, %v183_v34, %v184_v35  ;;  %v190_v48 = vrot.slane %v3073_v31, 7 }
  0x63   :  { %5216 = vst [vmem:[#allocation40_spill] sm:$0xff] %v3069_v29  ;;  %5217 = vst [vmem:[#allocation41_spill] sm:$0xff] %v3071_v30  ;;  %v3093_v43 = vld [vmem:[#allocation2 + $0xa8] sm:$0xff]  ;;  %v3095_v44 = vld [vmem:[#allocation2 + $0xb0] sm:$0xff]  ;;  %v192_v49 = vrot.slane %v3081_v36, 7  ;;  %v3112_v52 = vsel %vm164_vm0, %v186_v40, %v187_v41  ;;  %v193_v53 = vrot.slane %v3083_v37, 7 }
  0x64   :  { %5218 = vst [vmem:[#allocation42_spill] sm:$0xff] %v3073_v31  ;;  %5219 = vst [vmem:[#allocation43_spill] sm:$0xff] %v3076_v32  ;;  %v3097_v45 = vld [vmem:[#allocation2 + $0xb8] sm:$0xff]  ;;  %v3107_v50 = vld [vmem:[#allocation2 + $0xc0] sm:$0xff]  ;;  %v195_v54 = vrot.slane %v3085_v38, 7  ;;  %v196_v55 = vrot.slane %v3093_v43, 7  ;;  %v3118_v56 = vsel %vm164_vm0, %v189_v42, %v190_v48 }
  0x65   :  { %5220 = vst [vmem:[#allocation44_spill] sm:$0xff] %v3081_v36  ;;  %5221 = vst [vmem:[#allocation45_spill] sm:$0xff] %v3083_v37  ;;  %v3109_v51 = vld [vmem:[#allocation2 + $0xc8] sm:$0xff]  ;;  %v198_v57 = vrot.slane %v3095_v44, 7  ;;  %v199_v58 = vrot.slane %v3097_v45, 7  ;;  %v201_v59 = vrot.slane %v3107_v50, 7  ;;  %v3124_v60 = vsel %vm164_vm0, %v192_v49, %v193_v53 }
  0x66   :  { %5222 = vst [vmem:[#allocation46_spill] sm:$0xff] %v3085_v38  ;;  %5223 = vst [vmem:[#allocation47_spill] sm:$0xff] %v3088_v39  ;;  %v3127_v61 = vsel %vm164_vm0, %v195_v54, %v196_v55  ;;  %v202_v62 = vrot.slane %v3109_v51, 7  ;;  %v3131_v63 = vsel %vm164_vm0, 0.0, %v165_v6  ;;  %v3137_v12 = vsel %vm164_vm0, 0.0, %v168_v8  ;;  %s3209_s9 = sld [smem:[#allocation6]] }
  0x67   :  { %5224 = vst [vmem:[#allocation48_spill] sm:$0xff] %v3093_v43  ;;  %5225 = vst [vmem:[#allocation49_spill] sm:$0xff] %v3095_v44  ;;  %v3134_v7 = vsel %vm164_vm0, %v198_v57, %v199_v58  ;;  %v3140_v14 = vsel %vm164_vm0, 0.0, %v171_v13  ;;  %v3143_v20 = vsel %vm164_vm0, 0.0, %v174_v19  ;;  %v3149_v33 = vsel %vm164_vm0, 0.0, %v177_v21  ;;  %s3296_s2 = sld [smem:[#allocation6 + $0x1]] }
  0x68   :  { %5226 = vst [vmem:[#allocation50_spill] sm:$0xff] %v3097_v45  ;;  %5227 = vst [vmem:[#allocation51_spill] sm:$0xff] %v3100_v46  ;;  %v3146_v27 = vsel %vm164_vm0, %v201_v59, %v202_v62  ;;  %v3152_v6 = vsel %vm164_vm0, 0.0, %v180_v28  ;;  %v3155_v35 = vsel %vm164_vm0, 0.0, %v183_v34  ;;  %v3158_v8 = vsel %vm164_vm0, 0.0, %v186_v40  ;;  %s3302_s4 = sld [smem:[#allocation6 + $0x2]] }
  0x69   :  { %5228 = vst [vmem:[#allocation52_spill] sm:$0xff] %v3103_v47  ;;  %5229 = vst [vmem:[#allocation53_spill] sm:$0xff] %v3107_v50  ;;  %v3161_v13 = vsel %vm164_vm0, 0.0, %v189_v42  ;;  %v3164_v19 = vsel %vm164_vm0, 0.0, %v192_v49  ;;  %v3167_v41 = vsel %vm164_vm0, 0.0, %v195_v54  ;;  %v3170_v21 = vsel %vm164_vm0, 0.0, %v198_v57 }
  0x6a   :  { %5230 = vst [vmem:[#allocation54_spill] sm:$0xff] %v3109_v51  ;;  %5231 = vst [vmem:[#allocation55_spill] sm:$0xff] %v3112_v52  ;;  %v3173_v28 = vsel %vm164_vm0, 0.0, %v201_v59  ;;  %v244_v34 = vrot.slane %v3019_v0, 1  ;;  %v245_v40 = vrot.slane %v3021_v1, 1  ;;  %v247_v48 = vrot.slane %v3023_v2, 1 }
  0x6b   :  { %5232 = vst [vmem:[#allocation56_spill] sm:$0xff] %v3118_v56  ;;  %5233 = vst [vmem:[#allocation57_spill] sm:$0xff] %v3124_v60  ;;  %v248_v42 = vrot.slane %v3025_v3, 1  ;;  %v250_v49 = vrot.slane %v3027_v4, 1  ;;  %v251_v53 = vrot.slane %v3029_v5, 1  ;;  %v253_v55 = vrot.slane %v3034_v9, 1 }
  0x6c   :  { %5234 = vst [vmem:[#allocation58_spill] sm:$0xff] %v3127_v61  ;;  %5235 = vst [vmem:[#allocation59_spill] sm:$0xff] %v3131_v63  ;;  %v3182_v54 = vsel %vm243_vm1, %v244_v34, %v245_v40  ;;  %v254_v57 = vrot.slane %v3036_v10, 1  ;;  %v256_v58 = vrot.slane %v3038_v11, 1  ;;  %v260_v34 = vrot.slane %v3047_v17, 1  ;;  %s3348_s10 = sld [smem:[#allocation6 + $0x3]] }
  0x6d   :  { %5236 = vst [vmem:[#allocation60_spill] sm:$0xff] %v3134_v7  ;;  %5237 = vst [vmem:[#allocation61_spill] sm:$0xff] %v3137_v12  ;;  %v3188_v59 = vsel %vm243_vm1, %v247_v48, %v248_v42  ;;  %v3191_v62 = vsel %vm243_vm1, %v250_v49, %v251_v53  ;;  %v265_v49 = vrot.slane %v3059_v24, 1  ;;  %s3358_s11 = sld [smem:[#allocation6 + $0x4]]  ;;  %vm1386_vm2 = vcmask 1041408  }
  0x6e   :  { %5238 = vst [vmem:[#allocation62_spill] sm:$0xff] %v3140_v14  ;;  %5239 = vst [vmem:[#allocation63_spill] sm:$0xff] %v3143_v20  ;;  %v3196_v7 = vsel %vm243_vm1, %v253_v55, %v254_v57  ;;  %s3368_s12 = sld [smem:[#allocation6 + $0x5]]  ;;  %vm1391_vm3 = vcmask 1042432   ;;  %vm1396_vm4 = vcmask 1043456  }
  0x6f   :  { %5240 = vst [vmem:[#allocation64_spill] sm:$0xff] %v3146_v27  ;;  %5241 = vst [vmem:[#allocation65_spill] sm:$0xff] %v3149_v33  ;;  %v257_v27 = vrot.slane %v3043_v15, 1  ;;  %s3378_s13 = sld [smem:[#allocation6 + $0x6]] }
  0x70   :  { %5242 = vst [vmem:[#allocation66_spill] sm:$0xff] %v3152_v6  ;;  %5243 = vst [vmem:[#allocation67_spill] sm:$0xff] %v3155_v35  ;;  %s3536_s14 = sld [smem:[#allocation6 + $0x7]] }
  0x71   :  { %5244 = vst [vmem:[#allocation68_spill] sm:$0xff] %v3158_v8  ;;  %5245 = vst [vmem:[#allocation69_spill] sm:$0xff] %v3161_v13  ;;  %v3204_v48 = vsel %vm243_vm1, %v256_v58, %v257_v27  ;;  %s3546_s15 = sld [smem:[#allocation6 + $0x8]] }
  0x72   :  { %5246 = vst [vmem:[#allocation70_spill] sm:$0xff] %v3164_v19  ;;  %5247 = vst [vmem:[#allocation71_spill] sm:$0xff] %v3167_v41  ;;  %s3556_s16 = sld [smem:[#allocation7 + $0x1]] }
  0x73   :  { %5248 = vst [vmem:[#allocation72_spill] sm:$0xff] %v3170_v21  ;;  %5249 = vst [vmem:[#allocation73_spill] sm:$0xff] %v3173_v28  ;;  %v259_v28 = vrot.slane %v3045_v16, 1  ;;  %v262_v21 = vrot.slane %v3055_v22, 1  ;;  %v271_v22 = vrot.slane %v3081_v36, 1  ;;  %s3566_s17 = sld [smem:[#allocation6 + $0x9]] }
  0x74   :  { %5250 = vst [vmem:[#allocation74_spill] sm:$0xff] %v3182_v54  ;;  %5251 = vst [vmem:[#allocation75_spill] sm:$0xff] %v3188_v59  ;;  %v263_v54 = vrot.slane %v3057_v23, 1  ;;  %v268_v59 = vrot.slane %v3071_v30, 1  ;;  %v269_v23 = vrot.slane %v3073_v31, 1  ;;  %v275_v30 = vrot.slane %v3093_v43, 1 }
  0x75   :  { %5252 = vst [vmem:[#allocation76_spill] sm:$0xff] %v3191_v62  ;;  %5253 = vst [vmem:[#allocation77_spill] sm:$0xff] %v3196_v7  ;;  %v266_v62 = vrot.slane %v3069_v29, 1  ;;  %v3212_v55 = vsel %vm243_vm1, %v259_v28, %v260_v34  ;;  %v274_v29 = vrot.slane %v3085_v38, 1  ;;  %v277_v28 = vrot.slane %v3095_v44, 1  ;;  %s3753_s18 = sld [smem:[#allocation6 + $0xa]] }
  0x76   :  { %5254 = vst [vmem:[#allocation78_spill] sm:$0xff] %v3204_v48  ;;  %5255 = vst [vmem:[#allocation79_spill] sm:$0xff] %v3212_v55  ;;  %v3215_v7 = vsel %vm243_vm1, %v262_v21, %v263_v54  ;;  %v272_v48 = vrot.slane %v3083_v37, 1  ;;  %v3226_v24 = vsel %vm243_vm1, %v268_v59, %v269_v23  ;;  %v278_v21 = vrot.slane %v3097_v45, 1  ;;  %s3763_s19 = sld [smem:[#allocation6 + $0xb]] }
  0x77   :  { %5256 = vst [vmem:[#allocation80_spill] sm:$0xff] %v3215_v7  ;;  %v3220_v58 = vsel %vm243_vm1, %v265_v49, %v266_v62  ;;  %5258 = vst [vmem:[#allocation82_spill] sm:$0xff] %v3226_v24  ;;  %v280_v7 = vrot.slane %v3107_v50, 1  ;;  %v3235_v49 = vsel %vm243_vm1, %v274_v29, %v275_v30  ;;  %v3239_v43 = vsel %vm243_vm1, %v245_v40, 0.0  ;;  %s3952_s1 = sld [smem:[#allocation6 + $0xc]] }
  0x78   :  { %5257 = vst [vmem:[#allocation81_spill] sm:$0xff] %v3220_v58  ;;  %v3232_v55 = vsel %vm243_vm1, %v271_v22, %v272_v48  ;;  %5260 = vst [vmem:[#allocation84_spill] sm:$0xff] %v3235_v49  ;;  %v281_v58 = vrot.slane %v3109_v51, 1  ;;  %v3242_v59 = vsel %vm243_vm1, %v277_v28, %v278_v21  ;;  %v3245_v45 = vsel %vm243_vm1, %v248_v42, 0.0  ;;  %s3962_s20 = sld [smem:[#allocation6 + $0xd]] }
  0x79   :  { %5259 = vst [vmem:[#allocation83_spill] sm:$0xff] %v3232_v55  ;;  %5261 = vst [vmem:[#allocation85_spill] sm:$0xff] %v3239_v43  ;;  %v3248_v50 = vsel %vm243_vm1, %v251_v53, 0.0  ;;  %v3251_v22 = vsel %vm243_vm1, %v254_v57, 0.0  ;;  %v3257_v51 = vsel %vm243_vm1, %v257_v27, 0.0  ;;  %v3260_v40 = vsel %vm243_vm1, %v260_v34, 0.0 }
  0x7a   :  { %5262 = vst [vmem:[#allocation86_spill] sm:$0xff] %v3242_v59  ;;  %5263 = vst [vmem:[#allocation87_spill] sm:$0xff] %v3245_v45  ;;  %v3254_v29 = vsel %vm243_vm1, %v280_v7, %v281_v58  ;;  %v3263_v28 = vsel %vm243_vm1, %v263_v54, 0.0  ;;  %v3266_v42 = vsel %vm243_vm1, %v266_v62, 0.0  ;;  %v3269_v53 = vsel %vm243_vm1, %v269_v23, 0.0  ;;  %s3972_s21 = sld [smem:[#allocation6 + $0xe]] }
  0x7b   :  { %5264 = vst [vmem:[#allocation88_spill] sm:$0xff] %v3248_v50  ;;  %5265 = vst [vmem:[#allocation89_spill] sm:$0xff] %v3251_v22  ;;  %v3272_v57 = vsel %vm243_vm1, %v272_v48, 0.0  ;;  %v3275_v7 = vsel %vm243_vm1, %v275_v30, 0.0  ;;  %v3278_v27 = vsel %vm243_vm1, %v278_v21, 0.0  ;;  %v3281_v34 = vsel %vm243_vm1, %v281_v58, 0.0 }
  0x7c   :  { %5266 = vst [vmem:[#allocation90_spill] sm:$0xff] %v3254_v29  ;;  %5267 = vst [vmem:[#allocation91_spill] sm:$0xff] %v3257_v51  ;;  %v323_v54 = vstv %s3201_s6  ;;  %v325_v29 = vstv %s3209_s9  ;;  %s3982_s22 = sld [smem:[#allocation6 + $0xf]] }
  0x7d   :  { %5268 = vst [vmem:[#allocation92_spill] sm:$0xff] %v3260_v40  ;;  %5269 = vst [vmem:[#allocation93_spill] sm:$0xff] %v3263_v28  ;;  %v326_v59 = vmul.f32 0.0, %v325_v29  ;;  %v327_v62 = vmul.f32 %v325_v29, %v3131_v63  ;;  %v328_v23 = vmul.f32 %v325_v29, %v3050_v18  ;;  %v329_v44 = vmul.f32 %v325_v29, %v3137_v12  ;;  %s4160_s23 = sld [smem:[#allocation6 + $0x10]] }
  0x7e   :  { %5270 = vst [vmem:[#allocation94_spill] sm:$0xff] %v3266_v42  ;;  %5271 = vst [vmem:[#allocation95_spill] sm:$0xff] %v3269_v53  ;;  %v330_v48 = vmul.f32 %v325_v29, %v3062_v25  ;;  %v331_v30 = vmul.f32 %v325_v29, %v3140_v14  ;;  %v333_v21 = vmul.f32 %v325_v29, %v3143_v20  ;;  %s4170_s24 = sld [smem:[#allocation6 + $0x11]] }
  0x7f   :  { %5272 = vst [vmem:[#allocation96_spill] sm:$0xff] %v3272_v57  ;;  %5273 = vst [vmem:[#allocation97_spill] sm:$0xff] %v3275_v7  ;;  %v332_v7 = vmul.f32 %v325_v29, %v3065_v26  ;;  %v334_v58 = vmul.f32 %v325_v29, %v3076_v32  ;;  %v337_v63 = vmul.f32 %v325_v29, %v3152_v6  ;;  %s4452_s25 = sld [smem:[#allocation10]] }
  0x80   :  { %5274 = vst [vmem:[#allocation98_spill] sm:$0xff] %v3278_v27  ;;  %5275 = vst [vmem:[#allocation99_spill] sm:$0xff] %v3281_v34  ;;  %v335_v34 = vmul.f32 %v325_v29, %v3149_v33  ;;  %v336_v27 = vmul.f32 %v325_v29, %v3088_v39  ;;  %v338_v12 = vmul.f32 %v325_v29, %v3100_v46  ;;  %s4454_s0 = sld [smem:[#allocation9]] }
  0x81   :  { %v339_v25 = vmul.f32 %v325_v29, %v3155_v35  ;;  %v340_v14 = vmul.f32 %v325_v29, %v3103_v47  ;;  %v341_v26 = vmul.f32 %v325_v29, %v3158_v8  ;;  %v342_v32 = vmul.f32 %v325_v29, %v3112_v52  ;;  %s4456_s26 = sld [smem:[#allocation9 + $0x1]] }
  0x82   :  { %v343_v33 = vmul.f32 %v325_v29, %v3161_v13  ;;  %v344_v39 = vmul.f32 %v325_v29, %v3118_v56  ;;  %v345_v6 = vmul.f32 %v325_v29, %v3164_v19  ;;  %v346_v20 = vmul.f32 %v325_v29, %v3124_v60  ;;  %s4458_s27 = sld [smem:[#allocation9 + $0x2]] }
  0x83   :  { %v347_v46 = vmul.f32 %v325_v29, %v3167_v41  ;;  %v348_v35 = vmul.f32 %v325_v29, %v3127_v61  ;;  %v349_v18 = vadd.f32 %v326_v59, %v323_v54  ;;  %v350_v47 = vadd.f32 %v327_v62, %v323_v54  ;;  %s4460_s3 = sld [smem:[#allocation9 + $0x3]] }
  0x84   :  { %v351_v49 = vadd.f32 %v328_v23, %v323_v54  ;;  %v352_v8 = vadd.f32 %v329_v44, %v323_v54  ;;  %v353_v57 = vadd.f32 %v330_v48, %v323_v54  ;;  %v354_v55 = vadd.f32 %v331_v30, %v323_v54  ;;  %s4473_s5 = sld [smem:[#allocation9 + $0x4]] }
  0x85   :  { %v355_v53 = vadd.f32 %v332_v7, %v323_v54  ;;  %v356_v52 = vadd.f32 %v333_v21, %v323_v54  ;;  %v357_v13 = vadd.f32 %v334_v58, %v323_v54  ;;  %v358_v56 = vadd.f32 %v335_v34, %v323_v54  ;;  %v5278_v34 = vld [vmem:[#allocation36_spill] sm:$0xff]  ;;  %s4485_s28 = sld [smem:[#allocation9 + $0x5]] }
  0x86   :  { %v359_v24 = vadd.f32 %v336_v27, %v323_v54  ;;  %v360_v19 = vadd.f32 %v337_v63, %v323_v54  ;;  %v361_v42 = vadd.f32 %v338_v12, %v323_v54  ;;  %v362_v60 = vadd.f32 %v339_v25, %v323_v54  ;;  %s4500_s29 = sld [smem:[#allocation9 + $0x6]] }
  0x87   :  { %v363_v28 = vadd.f32 %v340_v14, %v323_v54  ;;  %v364_v41 = vadd.f32 %v341_v26, %v323_v54  ;;  %v365_v40 = vadd.f32 %v342_v32, %v323_v54  ;;  %v366_v29 = vadd.f32 %v343_v33, %v323_v54  ;;  %s4505_s30 = sld [smem:[#allocation9 + $0x7]] }
  0x88   :  { %v367_v59 = vadd.f32 %v344_v39, %v323_v54  ;;  %v368_v62 = vadd.f32 %v345_v6, %v323_v54  ;;  %v369_v23 = vadd.f32 %v346_v20, %v323_v54  ;;  %v370_v44 = vadd.f32 %v347_v46, %v323_v54  ;;  %v5277_v6 = vld [vmem:[#allocation35_spill] sm:$0xff]  ;;  %s4510_s8 = sld [smem:[#allocation9 + $0x8]] }
  0x89   :  { %v371_v48 = vadd.f32 %v348_v35, %v323_v54  ;;  %v373_v30 = vstv %s3296_s2  ;;  %v3313_v7 = vstv %s3302_s4  ;;  %s4514_s6 = sld [smem:[#allocation9 + $0x9]] }
  0x8a   :  { %5276 = vst [vmem:[#allocation100_spill] sm:$0xff] %v3313_v7  ;;  %v374_v21 = vmul.f32 0.0, %v373_v30  ;;  %v375_v58 = vmul.f32 %v373_v30, %v3019_v0  ;;  %v376_v27 = vmul.f32 %v373_v30, %v3021_v1  ;;  %v377_v63 = vmul.f32 %v373_v30, %v3023_v2  ;;  %v5280_v2 = vld [vmem:[#allocation40_spill] sm:$0xff]  ;;  %v5281_v1 = vld [vmem:[#allocation41_spill] sm:$0xff]  ;;  %s4519_s9 = sld [smem:[#allocation9 + $0xa]] }
  0x8b   :  { %v378_v25 = vmul.f32 %v373_v30, %v3025_v3  ;;  %v379_v26 = vmul.f32 %v373_v30, %v3027_v4  ;;  %v380_v32 = vmul.f32 %v373_v30, %v3029_v5  ;;  %v381_v39 = vmul.f32 %v373_v30, %v3034_v9  ;;  %v5279_v3 = vld [vmem:[#allocation37_spill] sm:$0xff]  ;;  %v5282_v0 = vld [vmem:[#allocation48_spill] sm:$0xff]  ;;  %s4522_s2 = sld [smem:[#allocation9 + $0xb]] }
  0x8c   :  { %v382_v46 = vmul.f32 %v373_v30, %v3036_v10  ;;  %v383_v12 = vmul.f32 %v373_v30, %v3038_v11  ;;  %v384_v14 = vmul.f32 %v373_v30, %v3043_v15  ;;  %v385_v20 = vmul.f32 %v373_v30, %v3045_v16  ;;  %s4525_s4 = sld [smem:[#allocation9 + $0xc]] }
  0x8d   :  { %v386_v33 = vmul.f32 %v373_v30, %v3047_v17  ;;  %v387_v35 = vmul.f32 %v373_v30, %v5277_v6  ;;  %v388_v54 = vmul.f32 %v373_v30, %v5278_v34  ;;  %v389_v4 = vmul.f32 %v373_v30, %v5279_v3 }
  0x8e   :  { %v390_v5 = vmul.f32 %v373_v30, %v5280_v2  ;;  %v391_v9 = vmul.f32 %v373_v30, %v5281_v1  ;;  %v392_v10 = vmul.f32 %v373_v30, %v3073_v31  ;;  %v393_v11 = vmul.f32 %v373_v30, %v3081_v36 }
  0x8f   :  { %v394_v15 = vmul.f32 %v373_v30, %v3083_v37  ;;  %v395_v16 = vmul.f32 %v373_v30, %v3085_v38  ;;  %v396_v17 = vmul.f32 %v373_v30, %v5282_v0  ;;  %v397_v61 = vadd.f32 %v374_v21, %v349_v18 }
  0x90   :  { %v398_v6 = vadd.f32 %v375_v58, %v350_v47  ;;  %v399_v51 = vadd.f32 %v376_v27, %v351_v49  ;;  %v400_v34 = vadd.f32 %v377_v63, %v352_v8  ;;  %v401_v22 = vadd.f32 %v378_v25, %v353_v57  ;;  %v5297_v27 = vld [vmem:[#allocation93_spill] sm:$0xff] }
  0x91   :  { %v402_v3 = vadd.f32 %v379_v26, %v354_v55  ;;  %v403_v50 = vadd.f32 %v380_v32, %v355_v53  ;;  %v404_v2 = vadd.f32 %v381_v39, %v356_v52  ;;  %v405_v45 = vadd.f32 %v382_v46, %v357_v13  ;;  %v5283_v8 = vld [vmem:[#allocation100_spill] sm:$0xff]  ;;  %v5284_v55 = vld [vmem:[#allocation74_spill] sm:$0xff]  ;;  %v5285_v13 = vld [vmem:[#allocation85_spill] sm:$0xff] }
  0x92   :  { %v406_v1 = vadd.f32 %v383_v12, %v358_v56  ;;  %v407_v43 = vadd.f32 %v384_v14, %v359_v24  ;;  %v408_v31 = vadd.f32 %v385_v20, %v360_v19  ;;  %v409_v7 = vadd.f32 %v386_v33, %v361_v42  ;;  %v5286_v56 = vld [vmem:[#allocation75_spill] sm:$0xff]  ;;  %v5298_v25 = vld [vmem:[#allocation81_spill] sm:$0xff]  ;;  %v5299_v32 = vld [vmem:[#allocation94_spill] sm:$0xff] }
  0x93   :  { %v410_v36 = vadd.f32 %v387_v35, %v362_v60  ;;  %v411_v37 = vadd.f32 %v388_v54, %v363_v28  ;;  %v412_v38 = vadd.f32 %v389_v4, %v364_v41  ;;  %v413_v0 = vadd.f32 %v390_v5, %v365_v40  ;;  %v5287_v19 = vld [vmem:[#allocation87_spill] sm:$0xff]  ;;  %v5288_v5 = vld [vmem:[#allocation76_spill] sm:$0xff]  ;;  %v5292_v40 = vld [vmem:[#allocation78_spill] sm:$0xff] }
  0x94   :  { %v414_v30 = vadd.f32 %v391_v9, %v366_v29  ;;  %v415_v18 = vadd.f32 %v392_v10, %v367_v59  ;;  %v416_v21 = vadd.f32 %v393_v11, %v368_v62  ;;  %v417_v47 = vadd.f32 %v394_v15, %v369_v23  ;;  %v5289_v10 = vld [vmem:[#allocation88_spill] sm:$0xff]  ;;  %v5290_v15 = vld [vmem:[#allocation77_spill] sm:$0xff]  ;;  %v5293_v42 = vld [vmem:[#allocation91_spill] sm:$0xff] }
  0x95   :  { %v418_v58 = vadd.f32 %v395_v16, %v370_v44  ;;  %v419_v49 = vadd.f32 %v396_v17, %v371_v48  ;;  %v422_v57 = vmul.f32 0.0, %v5283_v8  ;;  %v423_v52 = vmul.f32 %v5283_v8, %v5284_v55  ;;  %v5291_v17 = vld [vmem:[#allocation89_spill] sm:$0xff]  ;;  %v5294_v29 = vld [vmem:[#allocation79_spill] sm:$0xff]  ;;  %v5295_v62 = vld [vmem:[#allocation92_spill] sm:$0xff] }
  0x96   :  { %v424_v24 = vmul.f32 %v5283_v8, %v5285_v13  ;;  %v425_v60 = vmul.f32 %v5283_v8, %v5286_v56  ;;  %v426_v4 = vmul.f32 %v5283_v8, %v5287_v19  ;;  %v427_v9 = vmul.f32 %v5283_v8, %v5288_v5  ;;  %v5296_v44 = vld [vmem:[#allocation80_spill] sm:$0xff]  ;;  %v5300_v46 = vld [vmem:[#allocation82_spill] sm:$0xff]  ;;  %v5301_v14 = vld [vmem:[#allocation95_spill] sm:$0xff] }
  0x97   :  { %v428_v11 = vmul.f32 %v5283_v8, %v5289_v10  ;;  %v429_v16 = vmul.f32 %v5283_v8, %v5290_v15  ;;  %v430_v41 = vmul.f32 %v5283_v8, %v5291_v17  ;;  %v431_v28 = vmul.f32 %v5283_v8, %v5292_v40  ;;  %v5302_v33 = vld [vmem:[#allocation83_spill] sm:$0xff]  ;;  %v5303_v54 = vld [vmem:[#allocation96_spill] sm:$0xff] }
  0x98   :  { %v432_v53 = vmul.f32 %v5283_v8, %v5293_v42  ;;  %v433_v59 = vmul.f32 %v5283_v8, %v5294_v29  ;;  %v434_v23 = vmul.f32 %v5283_v8, %v5295_v62  ;;  %v435_v48 = vmul.f32 %v5283_v8, %v5296_v44  ;;  %v5304_v44 = vld [vmem:[#allocation84_spill] sm:$0xff]  ;;  %v5305_v62 = vld [vmem:[#allocation97_spill] sm:$0xff] }
  0x99   :  { %v436_v63 = vmul.f32 %v5283_v8, %v5297_v27  ;;  %v437_v26 = vmul.f32 %v5283_v8, %v5298_v25  ;;  %v438_v39 = vmul.f32 %v5283_v8, %v5299_v32  ;;  %v439_v12 = vmul.f32 %v5283_v8, %v5300_v46 }
  0x9a   :  { %v440_v20 = vmul.f32 %v5283_v8, %v5301_v14  ;;  %v441_v35 = vmul.f32 %v5283_v8, %v5302_v33  ;;  %v442_v27 = vmul.f32 %v5283_v8, %v5303_v54  ;;  %v443_v25 = vmul.f32 %v5283_v8, %v5304_v44 }
  0x9b   :  { %v444_v32 = vmul.f32 %v5283_v8, %v5305_v62  ;;  %v445_v29 = vadd.f32 %v422_v57, %v397_v61  ;;  %v446_v42 = vadd.f32 %v423_v52, %v398_v6  ;;  %v447_v46 = vadd.f32 %v424_v24, %v399_v51  ;;  %v5316_v24 = vld [vmem:[#allocation43_spill] sm:$0xff] }
  0x9c   :  { %v448_v40 = vadd.f32 %v425_v60, %v400_v34  ;;  %v449_v17 = vadd.f32 %v426_v4, %v401_v22  ;;  %v450_v15 = vadd.f32 %v427_v9, %v402_v3  ;;  %v451_v10 = vadd.f32 %v428_v11, %v403_v50  ;;  %v5317_v4 = vld [vmem:[#allocation65_spill] sm:$0xff]  ;;  %v5318_v11 = vld [vmem:[#allocation47_spill] sm:$0xff] }
  0x9d   :  { %v452_v14 = vadd.f32 %v429_v16, %v404_v2  ;;  %v453_v5 = vadd.f32 %v430_v41, %v405_v45  ;;  %v454_v33 = vadd.f32 %v431_v28, %v406_v1  ;;  %v455_v54 = vadd.f32 %v432_v53, %v407_v43  ;;  %v5309_v43 = vld [vmem:[#allocation59_spill] sm:$0xff]  ;;  %v5319_v41 = vld [vmem:[#allocation66_spill] sm:$0xff] }
  0x9e   :  { %v456_v19 = vadd.f32 %v433_v59, %v408_v31  ;;  %v457_v44 = vadd.f32 %v434_v23, %v409_v7  ;;  %v458_v56 = vadd.f32 %v435_v48, %v410_v36  ;;  %v459_v13 = vadd.f32 %v436_v63, %v411_v37  ;;  %v5310_v7 = vld [vmem:[#allocation34_spill] sm:$0xff]  ;;  %v5311_v37 = vld [vmem:[#allocation61_spill] sm:$0xff]  ;;  %v5320_v53 = vld [vmem:[#allocation51_spill] sm:$0xff] }
  0x9f   :  { %v460_v8 = vadd.f32 %v437_v26, %v412_v38  ;;  %v461_v61 = vadd.f32 %v438_v39, %v413_v0  ;;  %v462_v6 = vadd.f32 %v439_v12, %v414_v30  ;;  %v463_v51 = vadd.f32 %v440_v20, %v415_v18  ;;  %v5312_v0 = vld [vmem:[#allocation38_spill] sm:$0xff]  ;;  %v5321_v23 = vld [vmem:[#allocation67_spill] sm:$0xff]  ;;  %v5325_v12 = vld [vmem:[#allocation69_spill] sm:$0xff] }
  0xa0   :  { %v464_v34 = vadd.f32 %v441_v35, %v416_v21  ;;  %v465_v22 = vadd.f32 %v442_v27, %v417_v47  ;;  %v466_v3 = vadd.f32 %v443_v25, %v418_v58  ;;  %v467_v50 = vadd.f32 %v444_v32, %v419_v49  ;;  %v5313_v18 = vld [vmem:[#allocation62_spill] sm:$0xff]  ;;  %v5314_v47 = vld [vmem:[#allocation39_spill] sm:$0xff]  ;;  %v5322_v27 = vld [vmem:[#allocation52_spill] sm:$0xff] }
  0xa1   :  { %v469_v2 = vstv %s3348_s10  ;;  %v3392_v57 = vstv %s3358_s11  ;;  %v3395_v45 = vstv %s3368_s12  ;;  %v3398_v1 = vstv %s3378_s13  ;;  %v5315_v49 = vld [vmem:[#allocation63_spill] sm:$0xff]  ;;  %v5323_v25 = vld [vmem:[#allocation68_spill] sm:$0xff]  ;;  %s4529_s10 = sld [smem:[#allocation9 + $0xd]] }
  0xa2   :  { %5306 = vst [vmem:[#allocation100_spill] sm:$0xff] %v3392_v57  ;;  %5307 = vst [vmem:[#allocation101_spill] sm:$0xff] %v3395_v45  ;;  %v470_v31 = vmul.f32 %v469_v2, %v5309_v43  ;;  %v471_v36 = vmul.f32 %v469_v2, %v5310_v7  ;;  %v472_v38 = vmul.f32 %v469_v2, %v5311_v37  ;;  %v5324_v32 = vld [vmem:[#allocation55_spill] sm:$0xff]  ;;  %v5326_v35 = vld [vmem:[#allocation56_spill] sm:$0xff]  ;;  %s4543_s11 = sld [smem:[#allocation9 + $0xe]] }
  0xa3   :  { %5308 = vst [vmem:[#allocation102_spill] sm:$0xff] %v3398_v1  ;;  %v473_v30 = vmul.f32 %v469_v2, %v5312_v0  ;;  %v474_v21 = vmul.f32 %v469_v2, %v5313_v18  ;;  %v475_v58 = vmul.f32 %v469_v2, %v5314_v47  ;;  %v476_v52 = vmul.f32 %v469_v2, %v5315_v49  ;;  %v5327_v43 = vld [vmem:[#allocation70_spill] sm:$0xff]  ;;  %v5329_v49 = vld [vmem:[#allocation71_spill] sm:$0xff]  ;;  %v5331_v18 = vld [vmem:[#allocation72_spill] sm:$0xff]  ;;  %s4549_s12 = sld [smem:[#allocation9 + $0xf]] }
  0xa4   :  { %v477_v60 = vmul.f32 %v469_v2, %v5316_v24  ;;  %v478_v9 = vmul.f32 %v469_v2, %v5317_v4  ;;  %v479_v16 = vmul.f32 %v469_v2, %v5318_v11  ;;  %v480_v28 = vmul.f32 %v469_v2, %v5319_v41  ;;  %v5328_v24 = vld [vmem:[#allocation57_spill] sm:$0xff]  ;;  %v5330_v47 = vld [vmem:[#allocation58_spill] sm:$0xff]  ;;  %v5332_v0 = vld [vmem:[#allocation60_spill] sm:$0xff]  ;;  %s4555_s13 = sld [smem:[#allocation9 + $0x10]] }
  0xa5   :  { %v481_v59 = vmul.f32 %v469_v2, %v5320_v53  ;;  %v482_v48 = vmul.f32 %v469_v2, %v5321_v23  ;;  %v483_v63 = vmul.f32 %v469_v2, %v5322_v27  ;;  %v484_v26 = vmul.f32 %v469_v2, %v5323_v25 }
  0xa6   :  { %v485_v39 = vmul.f32 %v469_v2, %v5324_v32  ;;  %v486_v20 = vmul.f32 %v469_v2, %v5325_v12  ;;  %v487_v7 = vmul.f32 %v469_v2, %v5326_v35  ;;  %v488_v4 = vmul.f32 %v469_v2, %v5327_v43 }
  0xa7   :  { %v489_v11 = vmul.f32 %v469_v2, %v5328_v24  ;;  %v490_v41 = vmul.f32 %v469_v2, %v5329_v49  ;;  %v491_v53 = vmul.f32 %v469_v2, %v5330_v47  ;;  %v492_v23 = vmul.f32 %v469_v2, %v5331_v18 }
  0xa8   :  { %v493_v27 = vmul.f32 %v469_v2, %v5332_v0  ;;  %v494_v1 = vadd.f32 %v470_v31, %v445_v29  ;;  %v495_v25 = vadd.f32 %v471_v36, %v445_v29  ;;  %v496_v37 = vadd.f32 %v472_v38, %v446_v42 }
  0xa9   :  { %v497_v32 = vadd.f32 %v473_v30, %v447_v46  ;;  %v498_v62 = vadd.f32 %v474_v21, %v448_v40  ;;  %v499_v12 = vadd.f32 %v475_v58, %v449_v17  ;;  %v500_v45 = vadd.f32 %v476_v52, %v450_v15  ;;  %v5333_v40 = vld [vmem:[#allocation22_spill] sm:$0xff]  ;;  %v5334_v17 = vld [vmem:[#allocation100_spill] sm:$0xff]  ;;  %v5345_v52 = vld [vmem:[#allocation33_spill] sm:$0xff] }
  0xaa   :  { %v501_v35 = vadd.f32 %v477_v60, %v451_v10  ;;  %v502_v55 = vadd.f32 %v478_v9, %v452_v14  ;;  %v503_v43 = vadd.f32 %v479_v16, %v453_v5  ;;  %v504_v57 = vadd.f32 %v480_v28, %v454_v33  ;;  %v5335_v10 = vld [vmem:[#allocation23_spill] sm:$0xff]  ;;  %v5336_v14 = vld [vmem:[#allocation24_spill] sm:$0xff] }
  0xab   :  { %v505_v24 = vadd.f32 %v481_v59, %v455_v54  ;;  %v506_v49 = vadd.f32 %v482_v48, %v456_v19  ;;  %v507_v47 = vadd.f32 %v483_v63, %v457_v44  ;;  %v508_v18 = vadd.f32 %v484_v26, %v458_v56  ;;  %v5337_v44 = vld [vmem:[#allocation25_spill] sm:$0xff]  ;;  %v5338_v56 = vld [vmem:[#allocation26_spill] sm:$0xff]  ;;  %v5339_v54 = vld [vmem:[#allocation27_spill] sm:$0xff] }
  0xac   :  { %v509_v0 = vadd.f32 %v485_v39, %v459_v13  ;;  %v510_v2 = vadd.f32 %v486_v20, %v460_v8  ;;  %v511_v31 = vadd.f32 %v487_v7, %v461_v61  ;;  %v512_v29 = vadd.f32 %v488_v4, %v462_v6  ;;  %v5340_v61 = vld [vmem:[#allocation28_spill] sm:$0xff]  ;;  %v5346_v4 = vld [vmem:[#allocation35_spill] sm:$0xff]  ;;  %v5353_v20 = vld [vmem:[#allocation45_spill] sm:$0xff] }
  0xad   :  { %v513_v36 = vadd.f32 %v489_v11, %v463_v51  ;;  %v514_v38 = vadd.f32 %v490_v41, %v464_v34  ;;  %v515_v42 = vadd.f32 %v491_v53, %v465_v22  ;;  %v516_v30 = vadd.f32 %v492_v23, %v466_v3  ;;  %v5341_v51 = vld [vmem:[#allocation29_spill] sm:$0xff]  ;;  %v5342_v22 = vld [vmem:[#allocation30_spill] sm:$0xff]  ;;  %v5344_v21 = vld [vmem:[#allocation32_spill] sm:$0xff] }
  0xae   :  { %v517_v46 = vadd.f32 %v493_v27, %v467_v50  ;;  %v520_v15 = vmul.f32 %v5334_v17, %v5333_v40  ;;  %v521_v5 = vmul.f32 %v5334_v17, %v5335_v10  ;;  %v522_v19 = vmul.f32 %v5334_v17, %v5336_v14  ;;  %v5343_v50 = vld [vmem:[#allocation31_spill] sm:$0xff]  ;;  %v5347_v11 = vld [vmem:[#allocation36_spill] sm:$0xff]  ;;  %v5348_v41 = vld [vmem:[#allocation37_spill] sm:$0xff] }
  0xaf   :  { %v523_v13 = vmul.f32 %v5334_v17, %v5337_v44  ;;  %v524_v33 = vmul.f32 %v5334_v17, %v5338_v56  ;;  %v525_v8 = vmul.f32 %v5334_v17, %v5339_v54  ;;  %v526_v6 = vmul.f32 %v5334_v17, %v5340_v61  ;;  %v5349_v53 = vld [vmem:[#allocation40_spill] sm:$0xff]  ;;  %v5350_v23 = vld [vmem:[#allocation41_spill] sm:$0xff]  ;;  %v5351_v27 = vld [vmem:[#allocation42_spill] sm:$0xff] }
  0xb0   :  { %v527_v34 = vmul.f32 %v5334_v17, %v5341_v51  ;;  %v528_v3 = vmul.f32 %v5334_v17, %v5342_v22  ;;  %v529_v7 = vmul.f32 %v5334_v17, %v5343_v50  ;;  %v530_v58 = vmul.f32 %v5334_v17, %v5344_v21  ;;  %v5352_v26 = vld [vmem:[#allocation44_spill] sm:$0xff]  ;;  %v5354_v10 = vld [vmem:[#allocation46_spill] sm:$0xff] }
  0xb1   :  { %v531_v60 = vmul.f32 %v5334_v17, %v5345_v52  ;;  %v532_v9 = vmul.f32 %v5334_v17, %v5346_v4  ;;  %v533_v16 = vmul.f32 %v5334_v17, %v5347_v11  ;;  %v534_v28 = vmul.f32 %v5334_v17, %v5348_v41  ;;  %v5355_v4 = vld [vmem:[#allocation48_spill] sm:$0xff]  ;;  %v5356_v52 = vld [vmem:[#allocation49_spill] sm:$0xff]  ;;  %v5357_v21 = vld [vmem:[#allocation50_spill] sm:$0xff] }
  0xb2   :  { %v535_v59 = vmul.f32 %v5334_v17, %v5349_v53  ;;  %v536_v48 = vmul.f32 %v5334_v17, %v5350_v23  ;;  %v537_v63 = vmul.f32 %v5334_v17, %v5351_v27  ;;  %v538_v39 = vmul.f32 %v5334_v17, %v5352_v26 }
  0xb3   :  { %v539_v40 = vmul.f32 %v5334_v17, %v5353_v20  ;;  %v540_v11 = vmul.f32 %v5334_v17, %v5354_v10  ;;  %v541_v41 = vmul.f32 %v5334_v17, %v5355_v4  ;;  %v542_v53 = vmul.f32 %v5334_v17, %v5356_v52 }
  0xb4   :  { %v543_v23 = vmul.f32 %v5334_v17, %v5357_v21  ;;  %v544_v50 = vadd.f32 %v520_v15, %v494_v1  ;;  %v545_v27 = vadd.f32 %v521_v5, %v495_v25  ;;  %v546_v22 = vadd.f32 %v522_v19, %v496_v37 }
  0xb5   :  { %v547_v51 = vadd.f32 %v523_v13, %v497_v32  ;;  %v548_v26 = vadd.f32 %v524_v33, %v498_v62  ;;  %v549_v61 = vadd.f32 %v525_v8, %v499_v12  ;;  %v550_v54 = vadd.f32 %v526_v6, %v500_v45  ;;  %v5358_v62 = vld [vmem:[#allocation74_spill] sm:$0xff]  ;;  %v5359_v12 = vld [vmem:[#allocation101_spill] sm:$0xff]  ;;  %v5369_v8 = vld [vmem:[#allocation79_spill] sm:$0xff] }
  0xb6   :  { %v551_v20 = vadd.f32 %v527_v34, %v501_v35  ;;  %v552_v56 = vadd.f32 %v528_v3, %v502_v55  ;;  %v553_v44 = vadd.f32 %v529_v7, %v503_v43  ;;  %v554_v10 = vadd.f32 %v530_v58, %v504_v57  ;;  %v5360_v35 = vld [vmem:[#allocation85_spill] sm:$0xff]  ;;  %v5361_v57 = vld [vmem:[#allocation75_spill] sm:$0xff]  ;;  %v5370_v34 = vld [vmem:[#allocation92_spill] sm:$0xff] }
  0xb7   :  { %v555_v14 = vadd.f32 %v531_v60, %v505_v24  ;;  %v556_v4 = vadd.f32 %v532_v9, %v506_v49  ;;  %v557_v52 = vadd.f32 %v533_v16, %v507_v47  ;;  %v558_v17 = vadd.f32 %v534_v28, %v508_v18  ;;  %v5362_v47 = vld [vmem:[#allocation87_spill] sm:$0xff]  ;;  %v5363_v18 = vld [vmem:[#allocation76_spill] sm:$0xff]  ;;  %v5372_v60 = vld [vmem:[#allocation93_spill] sm:$0xff] }
  0xb8   :  { %v559_v21 = vadd.f32 %v535_v59, %v509_v0  ;;  %v560_v1 = vadd.f32 %v536_v48, %v510_v2  ;;  %v561_v15 = vadd.f32 %v537_v63, %v511_v31  ;;  %v562_v5 = vadd.f32 %v538_v39, %v512_v29  ;;  %v5364_v24 = vld [vmem:[#allocation88_spill] sm:$0xff]  ;;  %v5365_v31 = vld [vmem:[#allocation77_spill] sm:$0xff]  ;;  %v5377_v63 = vld [vmem:[#allocation83_spill] sm:$0xff] }
  0xb9   :  { %v563_v25 = vadd.f32 %v539_v40, %v513_v36  ;;  %v564_v19 = vadd.f32 %v540_v11, %v514_v38  ;;  %v565_v37 = vadd.f32 %v541_v41, %v515_v42  ;;  %v566_v13 = vadd.f32 %v542_v53, %v516_v30  ;;  %v5366_v36 = vld [vmem:[#allocation89_spill] sm:$0xff]  ;;  %v5367_v42 = vld [vmem:[#allocation78_spill] sm:$0xff]  ;;  %v5371_v7 = vld [vmem:[#allocation80_spill] sm:$0xff] }
  0xba   :  { %v567_v32 = vadd.f32 %v543_v23, %v517_v46  ;;  %v570_v45 = vmul.f32 %v5359_v12, %v5358_v62  ;;  %v571_v55 = vmul.f32 %v5359_v12, %v5360_v35  ;;  %v572_v43 = vmul.f32 %v5359_v12, %v5361_v57  ;;  %v5368_v46 = vld [vmem:[#allocation91_spill] sm:$0xff]  ;;  %v5373_v11 = vld [vmem:[#allocation81_spill] sm:$0xff]  ;;  %v5374_v41 = vld [vmem:[#allocation94_spill] sm:$0xff] }
  0xbb   :  { %v573_v0 = vmul.f32 %v5359_v12, %v5362_v47  ;;  %v574_v49 = vmul.f32 %v5359_v12, %v5363_v18  ;;  %v575_v2 = vmul.f32 %v5359_v12, %v5364_v24  ;;  %v576_v29 = vmul.f32 %v5359_v12, %v5365_v31  ;;  %v5375_v53 = vld [vmem:[#allocation82_spill] sm:$0xff]  ;;  %v5376_v23 = vld [vmem:[#allocation95_spill] sm:$0xff]  ;;  %v5378_v40 = vld [vmem:[#allocation96_spill] sm:$0xff] }
  0xbc   :  { %v577_v38 = vmul.f32 %v5359_v12, %v5366_v36  ;;  %v578_v30 = vmul.f32 %v5359_v12, %v5367_v42  ;;  %v579_v33 = vmul.f32 %v5359_v12, %v5368_v46  ;;  %v580_v6 = vmul.f32 %v5359_v12, %v5369_v8  ;;  %v5379_v62 = vld [vmem:[#allocation84_spill] sm:$0xff]  ;;  %v5382_v8 = vld [vmem:[#allocation98_spill] sm:$0xff] }
  0xbd   :  { %v581_v3 = vmul.f32 %v5359_v12, %v5370_v34  ;;  %v582_v58 = vmul.f32 %v5359_v12, %v5371_v7  ;;  %v583_v9 = vmul.f32 %v5359_v12, %v5372_v60  ;;  %v584_v16 = vmul.f32 %v5359_v12, %v5373_v11  ;;  %v5380_v7 = vld [vmem:[#allocation97_spill] sm:$0xff]  ;;  %v5381_v34 = vld [vmem:[#allocation86_spill] sm:$0xff] }
  0xbe   :  { %v585_v28 = vmul.f32 %v5359_v12, %v5374_v41  ;;  %v586_v59 = vmul.f32 %v5359_v12, %v5375_v53  ;;  %v587_v48 = vmul.f32 %v5359_v12, %v5376_v23  ;;  %v588_v39 = vmul.f32 %v5359_v12, %v5377_v63 }
  0xbf   :  { %v589_v35 = vmul.f32 %v5359_v12, %v5378_v40  ;;  %v590_v60 = vmul.f32 %v5359_v12, %v5379_v62  ;;  %v591_v11 = vmul.f32 %v5359_v12, %v5380_v7  ;;  %v592_v41 = vmul.f32 %v5359_v12, %v5381_v34 }
  0xc0   :  { %v593_v53 = vmul.f32 %v5359_v12, %v5382_v8  ;;  %v594_v46 = vadd.f32 %v570_v45, %v544_v50  ;;  %v595_v23 = vadd.f32 %v571_v55, %v545_v27  ;;  %v596_v42 = vadd.f32 %v572_v43, %v546_v22 }
  0xc1   :  { %v597_v36 = vadd.f32 %v573_v0, %v547_v51  ;;  %v598_v63 = vadd.f32 %v574_v49, %v548_v26  ;;  %v599_v31 = vadd.f32 %v575_v2, %v549_v61  ;;  %v600_v24 = vadd.f32 %v576_v29, %v550_v54  ;;  %v5383_v26 = vld [vmem:[#allocation61_spill] sm:$0xff]  ;;  %v5384_v61 = vld [vmem:[#allocation102_spill] sm:$0xff]  ;;  %v5394_v49 = vld [vmem:[#allocation67_spill] sm:$0xff] }
  0xc2   :  { %v601_v40 = vadd.f32 %v577_v38, %v551_v20  ;;  %v602_v18 = vadd.f32 %v578_v30, %v552_v56  ;;  %v603_v47 = vadd.f32 %v579_v33, %v553_v44  ;;  %v604_v62 = vadd.f32 %v580_v6, %v554_v10  ;;  %v5385_v20 = vld [vmem:[#allocation38_spill] sm:$0xff]  ;;  %v5395_v29 = vld [vmem:[#allocation52_spill] sm:$0xff]  ;;  %v5397_v6 = vld [vmem:[#allocation55_spill] sm:$0xff] }
  0xc3   :  { %v605_v57 = vadd.f32 %v581_v3, %v555_v14  ;;  %v606_v7 = vadd.f32 %v582_v58, %v556_v4  ;;  %v607_v34 = vadd.f32 %v583_v9, %v557_v52  ;;  %v608_v8 = vadd.f32 %v584_v16, %v558_v17  ;;  %v5386_v56 = vld [vmem:[#allocation62_spill] sm:$0xff]  ;;  %v5387_v52 = vld [vmem:[#allocation39_spill] sm:$0xff]  ;;  %v5396_v30 = vld [vmem:[#allocation68_spill] sm:$0xff] }
  0xc4   :  { %v609_v12 = vadd.f32 %v585_v28, %v559_v21  ;;  %v610_v45 = vadd.f32 %v586_v59, %v560_v1  ;;  %v611_v50 = vadd.f32 %v587_v48, %v561_v15  ;;  %v612_v27 = vadd.f32 %v588_v39, %v562_v5  ;;  %v5388_v4 = vld [vmem:[#allocation63_spill] sm:$0xff]  ;;  %v5390_v15 = vld [vmem:[#allocation65_spill] sm:$0xff]  ;;  %v5399_v9 = vld [vmem:[#allocation56_spill] sm:$0xff] }
  0xc5   :  { %v613_v55 = vadd.f32 %v589_v35, %v563_v25  ;;  %v614_v22 = vadd.f32 %v590_v60, %v564_v19  ;;  %v615_v43 = vadd.f32 %v591_v11, %v565_v37  ;;  %v616_v0 = vadd.f32 %v592_v41, %v566_v13  ;;  %v5389_v17 = vld [vmem:[#allocation43_spill] sm:$0xff]  ;;  %v5392_v37 = vld [vmem:[#allocation66_spill] sm:$0xff]  ;;  %v5398_v58 = vld [vmem:[#allocation69_spill] sm:$0xff] }
  0xc6   :  { %v617_v51 = vadd.f32 %v593_v53, %v567_v32  ;;  %v620_v54 = vmul.f32 %v5384_v61, %v5383_v26  ;;  %v621_v44 = vmul.f32 %v5384_v61, %v5385_v20  ;;  %v622_v14 = vmul.f32 %v5384_v61, %v5386_v56  ;;  %v5391_v25 = vld [vmem:[#allocation47_spill] sm:$0xff]  ;;  %v5400_v16 = vld [vmem:[#allocation70_spill] sm:$0xff]  ;;  %v5401_v28 = vld [vmem:[#allocation57_spill] sm:$0xff] }
  0xc7   :  { %v623_v21 = vmul.f32 %v5384_v61, %v5387_v52  ;;  %v624_v10 = vmul.f32 %v5384_v61, %v5388_v4  ;;  %v625_v1 = vmul.f32 %v5384_v61, %v5389_v17  ;;  %v626_v5 = vmul.f32 %v5384_v61, %v5390_v15  ;;  %v5393_v32 = vld [vmem:[#allocation51_spill] sm:$0xff]  ;;  %v5403_v39 = vld [vmem:[#allocation58_spill] sm:$0xff] }
  0xc8   :  { %v627_v19 = vmul.f32 %v5384_v61, %v5391_v25  ;;  %v628_v13 = vmul.f32 %v5384_v61, %v5392_v37  ;;  %v629_v35 = vmul.f32 %v5384_v61, %v5393_v32  ;;  %v630_v2 = vmul.f32 %v5384_v61, %v5394_v49  ;;  %v5402_v59 = vld [vmem:[#allocation71_spill] sm:$0xff]  ;;  %v5406_v49 = vld [vmem:[#allocation73_spill] sm:$0xff]  ;;  %v5407_v32 = vld [vmem:[#allocation64_spill] sm:$0xff] }
  0xc9   :  { %v631_v38 = vmul.f32 %v5384_v61, %v5395_v29  ;;  %v632_v33 = vmul.f32 %v5384_v61, %v5396_v30  ;;  %v633_v3 = vmul.f32 %v5384_v61, %v5397_v6  ;;  %v634_v60 = vmul.f32 %v5384_v61, %v5398_v58  ;;  %v5404_v58 = vld [vmem:[#allocation72_spill] sm:$0xff] }
  0xca   :  { %v635_v11 = vmul.f32 %v5384_v61, %v5399_v9  ;;  %v636_v41 = vmul.f32 %v5384_v61, %v5400_v16  ;;  %v637_v53 = vmul.f32 %v5384_v61, %v5401_v28  ;;  %v638_v48 = vmul.f32 %v5384_v61, %v5402_v59  ;;  %v5405_v9 = vld [vmem:[#allocation60_spill] sm:$0xff] }
  0xcb   :  { %v639_v6 = vmul.f32 %v5384_v61, %v5403_v39  ;;  %v640_v30 = vmul.f32 %v5384_v61, %v5404_v58  ;;  %v641_v29 = vmul.f32 %v5384_v61, %v5405_v9  ;;  %v642_v16 = vmul.f32 %v5384_v61, %v5406_v49 }
  0xcc   :  { %v643_v28 = vmul.f32 %v5384_v61, %v5407_v32  ;;  %v644_v37 = vadd.f32 %v620_v54, %v594_v46  ;;  %v645_v25 = vadd.f32 %v621_v44, %v595_v23  ;;  %v646_v59 = vadd.f32 %v622_v14, %v596_v42  ;;  %v5418_v14 = vld [vmem:[#allocation31_spill] sm:$0xff] }
  0xcd   :  { %v647_v15 = vadd.f32 %v623_v21, %v597_v36  ;;  %v648_v17 = vadd.f32 %v624_v10, %v598_v63  ;;  %v649_v39 = vadd.f32 %v625_v1, %v599_v31  ;;  %v650_v4 = vadd.f32 %v626_v5, %v600_v24  ;;  %v5419_v10 = vld [vmem:[#allocation32_spill] sm:$0xff]  ;;  %v5420_v5 = vld [vmem:[#allocation33_spill] sm:$0xff] }
  0xce   :  { %v651_v52 = vadd.f32 %v627_v19, %v601_v40  ;;  %v652_v56 = vadd.f32 %v628_v13, %v602_v18  ;;  %v653_v58 = vadd.f32 %v629_v35, %v603_v47  ;;  %v654_v20 = vadd.f32 %v630_v2, %v604_v62  ;;  %v5421_v13 = vld [vmem:[#allocation35_spill] sm:$0xff]  ;;  %v5422_v2 = vld [vmem:[#allocation36_spill] sm:$0xff] }
  0xcf   :  { %v655_v9 = vadd.f32 %v631_v38, %v605_v57  ;;  %v656_v49 = vadd.f32 %v632_v33, %v606_v7  ;;  %v657_v26 = vadd.f32 %v633_v3, %v607_v34  ;;  %v658_v32 = vadd.f32 %v634_v60, %v608_v8  ;;  %v5411_v57 = vld [vmem:[#allocation24_spill] sm:$0xff]  ;;  %v5412_v34 = vld [vmem:[#allocation25_spill] sm:$0xff] }
  0xd0   :  { %v659_v61 = vadd.f32 %v635_v11, %v609_v12  ;;  %v660_v46 = vadd.f32 %v636_v41, %v610_v45  ;;  %v661_v23 = vadd.f32 %v637_v53, %v611_v50  ;;  %v662_v42 = vadd.f32 %v638_v48, %v612_v27  ;;  %v5413_v12 = vld [vmem:[#allocation26_spill] sm:$0xff]  ;;  %v5414_v50 = vld [vmem:[#allocation27_spill] sm:$0xff]  ;;  %v5423_v38 = vld [vmem:[#allocation37_spill] sm:$0xff] }
  0xd1   :  { %v663_v36 = vadd.f32 %v639_v6, %v613_v55  ;;  %v664_v63 = vadd.f32 %v640_v30, %v614_v22  ;;  %v665_v31 = vadd.f32 %v641_v29, %v615_v43  ;;  %v666_v24 = vadd.f32 %v642_v16, %v616_v0  ;;  %v5415_v55 = vld [vmem:[#allocation28_spill] sm:$0xff]  ;;  %v5416_v43 = vld [vmem:[#allocation29_spill] sm:$0xff]  ;;  %v5426_v11 = vld [vmem:[#allocation42_spill] sm:$0xff] }
  0xd2   :  { %v667_v40 = vadd.f32 %v643_v28, %v617_v51  ;;  %v669_v18 = vstv %s3536_s14  ;;  %v3578_v54 = vstv %s3546_s15  ;;  %v3581_v47 = vstv %s3556_s16  ;;  %v5417_v51 = vld [vmem:[#allocation30_spill] sm:$0xff]  ;;  %v5424_v33 = vld [vmem:[#allocation40_spill] sm:$0xff]  ;;  %v5425_v3 = vld [vmem:[#allocation41_spill] sm:$0xff]  ;;  %s4559_s14 = sld [smem:[#allocation9 + $0x11]] }
  0xd3   :  { %5408 = vst [vmem:[#allocation22_spill] sm:$0xff] %v3578_v54  ;;  %5409 = vst [vmem:[#allocation100_spill] sm:$0xff] %v3581_v47  ;;  %v3584_v62 = vstv %s3566_s17  ;;  %v670_v7 = vmul.f32 %v669_v18, %v5411_v57  ;;  %v671_v8 = vmul.f32 %v669_v18, %v5412_v34  ;;  %v672_v45 = vmul.f32 %v669_v18, %v5413_v12  ;;  %v5427_v41 = vld [vmem:[#allocation44_spill] sm:$0xff]  ;;  %v5428_v53 = vld [vmem:[#allocation45_spill] sm:$0xff]  ;;  %s4567_s15 = sld [smem:[#allocation10 + $0x1]] }
  0xd4   :  { %5410 = vst [vmem:[#allocation23_spill] sm:$0xff] %v3584_v62  ;;  %v673_v27 = vmul.f32 %v669_v18, %v5414_v50  ;;  %v674_v22 = vmul.f32 %v669_v18, %v5415_v55  ;;  %v675_v0 = vmul.f32 %v669_v18, %v5416_v43  ;;  %v676_v44 = vmul.f32 %v669_v18, %v5417_v51  ;;  %v5429_v57 = vld [vmem:[#allocation46_spill] sm:$0xff]  ;;  %v5430_v12 = vld [vmem:[#allocation48_spill] sm:$0xff]  ;;  %v5431_v55 = vld [vmem:[#allocation49_spill] sm:$0xff]  ;;  %s4571_s16 = sld [smem:[#allocation9 + $0x12]] }
  0xd5   :  { %v677_v21 = vmul.f32 %v669_v18, %v5418_v14  ;;  %v678_v1 = vmul.f32 %v669_v18, %v5419_v10  ;;  %v679_v19 = vmul.f32 %v669_v18, %v5420_v5  ;;  %v680_v35 = vmul.f32 %v669_v18, %v5421_v13  ;;  %v5432_v51 = vld [vmem:[#allocation50_spill] sm:$0xff]  ;;  %v5433_v10 = vld [vmem:[#allocation53_spill] sm:$0xff]  ;;  %s4576_s17 = sld [smem:[#allocation9 + $0x13]] }
  0xd6   :  { %v681_v29 = vmul.f32 %v669_v18, %v5422_v2  ;;  %v682_v30 = vmul.f32 %v669_v18, %v5423_v38  ;;  %v683_v6 = vmul.f32 %v669_v18, %v5424_v33  ;;  %v684_v60 = vmul.f32 %v669_v18, %v5425_v3  ;;  %v5434_v13 = vld [vmem:[#allocation54_spill] sm:$0xff] }
  0xd7   :  { %v685_v16 = vmul.f32 %v669_v18, %v5426_v11  ;;  %v686_v28 = vmul.f32 %v669_v18, %v5427_v41  ;;  %v687_v48 = vmul.f32 %v669_v18, %v5428_v53  ;;  %v688_v34 = vmul.f32 %v669_v18, %v5429_v57 }
  0xd8   :  { %v689_v50 = vmul.f32 %v669_v18, %v5430_v12  ;;  %v690_v43 = vmul.f32 %v669_v18, %v5431_v55  ;;  %v691_v14 = vmul.f32 %v669_v18, %v5432_v51  ;;  %v692_v5 = vmul.f32 %v669_v18, %v5433_v10 }
  0xd9   :  { %v693_v2 = vmul.f32 %v669_v18, %v5434_v13  ;;  %v694_v38 = vadd.f32 %v670_v7, %v644_v37  ;;  %v695_v33 = vadd.f32 %v671_v8, %v645_v25  ;;  %v696_v3 = vadd.f32 %v672_v45, %v646_v59 }
  0xda   :  { %v697_v11 = vadd.f32 %v673_v27, %v647_v15  ;;  %v698_v47 = vadd.f32 %v674_v22, %v648_v17  ;;  %v699_v41 = vadd.f32 %v675_v0, %v649_v39  ;;  %v700_v62 = vadd.f32 %v676_v44, %v650_v4  ;;  %v5435_v17 = vld [vmem:[#allocation75_spill] sm:$0xff]  ;;  %v5436_v39 = vld [vmem:[#allocation22_spill] sm:$0xff]  ;;  %v5446_v0 = vld [vmem:[#allocation80_spill] sm:$0xff] }
  0xdb   :  { %v701_v53 = vadd.f32 %v677_v21, %v651_v52  ;;  %v702_v54 = vadd.f32 %v678_v1, %v652_v56  ;;  %v703_v57 = vadd.f32 %v679_v19, %v653_v58  ;;  %v704_v12 = vadd.f32 %v680_v35, %v654_v20  ;;  %v5437_v52 = vld [vmem:[#allocation87_spill] sm:$0xff]  ;;  %v5438_v20 = vld [vmem:[#allocation76_spill] sm:$0xff]  ;;  %v5440_v58 = vld [vmem:[#allocation77_spill] sm:$0xff] }
  0xdc   :  { %v705_v55 = vadd.f32 %v681_v29, %v655_v9  ;;  %v706_v51 = vadd.f32 %v682_v30, %v656_v49  ;;  %v707_v10 = vadd.f32 %v683_v6, %v657_v26  ;;  %v708_v13 = vadd.f32 %v684_v60, %v658_v32  ;;  %v5439_v26 = vld [vmem:[#allocation88_spill] sm:$0xff]  ;;  %v5447_v21 = vld [vmem:[#allocation93_spill] sm:$0xff]  ;;  %v5449_v29 = vld [vmem:[#allocation94_spill] sm:$0xff] }
  0xdd   :  { %v709_v18 = vadd.f32 %v685_v16, %v659_v61  ;;  %v710_v7 = vadd.f32 %v686_v28, %v660_v46  ;;  %v711_v37 = vadd.f32 %v687_v48, %v661_v23  ;;  %v712_v8 = vadd.f32 %v688_v34, %v662_v42  ;;  %v5441_v61 = vld [vmem:[#allocation89_spill] sm:$0xff]  ;;  %v5442_v23 = vld [vmem:[#allocation78_spill] sm:$0xff]  ;;  %v5451_v16 = vld [vmem:[#allocation95_spill] sm:$0xff] }
  0xde   :  { %v713_v25 = vadd.f32 %v689_v50, %v663_v36  ;;  %v714_v45 = vadd.f32 %v690_v43, %v664_v63  ;;  %v715_v59 = vadd.f32 %v691_v14, %v665_v31  ;;  %v716_v15 = vadd.f32 %v692_v5, %v666_v24  ;;  %v5443_v36 = vld [vmem:[#allocation91_spill] sm:$0xff]  ;;  %v5448_v19 = vld [vmem:[#allocation81_spill] sm:$0xff]  ;;  %v5450_v6 = vld [vmem:[#allocation82_spill] sm:$0xff] }
  0xdf   :  { %v717_v27 = vadd.f32 %v693_v2, %v667_v40  ;;  %v720_v4 = vmul.f32 %v5436_v39, %v5435_v17  ;;  %v721_v56 = vmul.f32 %v5436_v39, %v5437_v52  ;;  %v722_v49 = vmul.f32 %v5436_v39, %v5438_v20  ;;  %v5444_v31 = vld [vmem:[#allocation79_spill] sm:$0xff]  ;;  %v5445_v40 = vld [vmem:[#allocation92_spill] sm:$0xff]  ;;  %v5455_v2 = vld [vmem:[#allocation97_spill] sm:$0xff] }
  0xe0   :  { %v723_v32 = vmul.f32 %v5436_v39, %v5439_v26  ;;  %v724_v9 = vmul.f32 %v5436_v39, %v5440_v58  ;;  %v725_v46 = vmul.f32 %v5436_v39, %v5441_v61  ;;  %v726_v42 = vmul.f32 %v5436_v39, %v5442_v23  ;;  %v5452_v48 = vld [vmem:[#allocation83_spill] sm:$0xff]  ;;  %v5453_v50 = vld [vmem:[#allocation96_spill] sm:$0xff] }
  0xe1   :  { %v727_v63 = vmul.f32 %v5436_v39, %v5443_v36  ;;  %v728_v24 = vmul.f32 %v5436_v39, %v5444_v31  ;;  %v729_v22 = vmul.f32 %v5436_v39, %v5445_v40  ;;  %v730_v44 = vmul.f32 %v5436_v39, %v5446_v0  ;;  %v5454_v14 = vld [vmem:[#allocation84_spill] sm:$0xff]  ;;  %v5457_v0 = vld [vmem:[#allocation98_spill] sm:$0xff]  ;;  %v5459_v31 = vld [vmem:[#allocation99_spill] sm:$0xff] }
  0xe2   :  { %v731_v1 = vmul.f32 %v5436_v39, %v5447_v21  ;;  %v732_v35 = vmul.f32 %v5436_v39, %v5448_v19  ;;  %v733_v30 = vmul.f32 %v5436_v39, %v5449_v29  ;;  %v734_v60 = vmul.f32 %v5436_v39, %v5450_v6  ;;  %v5456_v21 = vld [vmem:[#allocation86_spill] sm:$0xff] }
  0xe3   :  { %v735_v28 = vmul.f32 %v5436_v39, %v5451_v16  ;;  %v736_v34 = vmul.f32 %v5436_v39, %v5452_v48  ;;  %v737_v43 = vmul.f32 %v5436_v39, %v5453_v50  ;;  %v738_v5 = vmul.f32 %v5436_v39, %v5454_v14  ;;  %v5458_v40 = vld [vmem:[#allocation90_spill] sm:$0xff] }
  0xe4   :  { %v739_v19 = vmul.f32 %v5436_v39, %v5455_v2  ;;  %v740_v29 = vmul.f32 %v5436_v39, %v5456_v21  ;;  %v741_v6 = vmul.f32 %v5436_v39, %v5457_v0  ;;  %v742_v16 = vmul.f32 %v5436_v39, %v5458_v40 }
  0xe5   :  { %v743_v48 = vmul.f32 %v5436_v39, %v5459_v31  ;;  %v3658_v36 = vadd.f32 %v720_v4, %v694_v38  ;;  %v3660_v50 = vadd.f32 %v721_v56, %v695_v33  ;;  %v3662_v14 = vadd.f32 %v722_v49, %v696_v3  ;;  %v5492_v39 = vld [vmem:[#allocation43_spill] sm:$0xff] }
  0xe6   :  { %v3664_v23 = vadd.f32 %v723_v32, %v697_v11  ;;  %v3666_v2 = vadd.f32 %v724_v9, %v698_v47  ;;  %v3668_v21 = vadd.f32 %v725_v46, %v699_v41  ;;  %v3670_v61 = vadd.f32 %v726_v42, %v700_v62  ;;  %v5491_v46 = vld [vmem:[#allocation63_spill] sm:$0xff] }
  0xe7   :  { %5460 = vst [vmem:[#allocation101_spill] sm:$0xff] %v3658_v36  ;;  %5461 = vst [vmem:[#allocation102_spill] sm:$0xff] %v3660_v50  ;;  %v3672_v0 = vadd.f32 %v727_v63, %v701_v53  ;;  %v3674_v40 = vadd.f32 %v728_v24, %v702_v54  ;;  %v3676_v58 = vadd.f32 %v729_v22, %v703_v57  ;;  %v5495_v22 = vld [vmem:[#allocation66_spill] sm:$0xff]  ;;  %v5496_v9 = vld [vmem:[#allocation51_spill] sm:$0xff] }
  0xe8   :  { %5462 = vst [vmem:[#allocation24_spill] sm:$0xff] %v3662_v14  ;;  %5463 = vst [vmem:[#allocation25_spill] sm:$0xff] %v3664_v23  ;;  %v3678_v38 = vadd.f32 %v730_v44, %v704_v12  ;;  %v3680_v33 = vadd.f32 %v731_v1, %v705_v55  ;;  %v3682_v3 = vadd.f32 %v732_v35, %v706_v51  ;;  %v5484_v35 = vld [vmem:[#allocation23_spill] sm:$0xff]  ;;  %v3861_v50 = vld [vmem:[#allocation2 + $0x18] sm:$0xff] }
  0xe9   :  { %5464 = vst [vmem:[#allocation26_spill] sm:$0xff] %v3666_v2  ;;  %5465 = vst [vmem:[#allocation27_spill] sm:$0xff] %v3668_v21  ;;  %v3684_v11 = vadd.f32 %v733_v30, %v707_v10  ;;  %v3686_v47 = vadd.f32 %v734_v60, %v708_v13  ;;  %v3688_v41 = vadd.f32 %v735_v28, %v709_v18  ;;  %v5485_v30 = vld [vmem:[#allocation59_spill] sm:$0xff]  ;;  %v5486_v60 = vld [vmem:[#allocation34_spill] sm:$0xff] }
  0xea   :  { %5466 = vst [vmem:[#allocation28_spill] sm:$0xff] %v3670_v61  ;;  %5467 = vst [vmem:[#allocation29_spill] sm:$0xff] %v3672_v0  ;;  %v3690_v62 = vadd.f32 %v736_v34, %v710_v7  ;;  %v3692_v53 = vadd.f32 %v737_v43, %v711_v37  ;;  %v3694_v54 = vadd.f32 %v738_v5, %v712_v8  ;;  %v5487_v28 = vld [vmem:[#allocation61_spill] sm:$0xff]  ;;  %v5488_v34 = vld [vmem:[#allocation38_spill] sm:$0xff]  ;;  %v3850_v61 = vstv %s3763_s19  ;;  %s4588_s19 = sld [smem:[#allocation9 + $0x15]] }
  0xeb   :  { %5468 = vst [vmem:[#allocation30_spill] sm:$0xff] %v3674_v40  ;;  %5469 = vst [vmem:[#allocation31_spill] sm:$0xff] %v3676_v58  ;;  %v3696_v57 = vadd.f32 %v739_v19, %v713_v25  ;;  %v3698_v12 = vadd.f32 %v740_v29, %v714_v45  ;;  %v3700_v55 = vadd.f32 %v741_v6, %v715_v59  ;;  %v796_v29 = vmul.f32 0.0, %v5484_v35  ;;  %v5489_v5 = vld [vmem:[#allocation62_spill] sm:$0xff]  ;;  %v5490_v1 = vld [vmem:[#allocation39_spill] sm:$0xff] }
  0xec   :  { %5470 = vst [vmem:[#allocation32_spill] sm:$0xff] %v3678_v38  ;;  %5471 = vst [vmem:[#allocation33_spill] sm:$0xff] %v3680_v33  ;;  %v3702_v51 = vadd.f32 %v742_v16, %v716_v15  ;;  %v3704_v10 = vadd.f32 %v743_v48, %v717_v27  ;;  %v797_v6 = vmul.f32 %v5484_v35, %v5485_v30  ;;  %v5493_v8 = vld [vmem:[#allocation65_spill] sm:$0xff]  ;;  %v5494_v44 = vld [vmem:[#allocation47_spill] sm:$0xff] }
  0xed   :  { %5472 = vst [vmem:[#allocation35_spill] sm:$0xff] %v3682_v3  ;;  %5473 = vst [vmem:[#allocation36_spill] sm:$0xff] %v3684_v11  ;;  %v798_v16 = vmul.f32 %v5484_v35, %v5486_v60  ;;  %v799_v48 = vmul.f32 %v5484_v35, %v5487_v28  ;;  %v800_v43 = vmul.f32 %v5484_v35, %v5488_v34  ;;  %v5497_v32 = vld [vmem:[#allocation67_spill] sm:$0xff]  ;;  %v5498_v27 = vld [vmem:[#allocation52_spill] sm:$0xff] }
  0xee   :  { %5474 = vst [vmem:[#allocation37_spill] sm:$0xff] %v3686_v47  ;;  %5475 = vst [vmem:[#allocation40_spill] sm:$0xff] %v3688_v41  ;;  %v801_v42 = vmul.f32 %v5484_v35, %v5489_v5  ;;  %v802_v19 = vmul.f32 %v5484_v35, %v5490_v1  ;;  %v803_v4 = vmul.f32 %v5484_v35, %v5491_v46  ;;  %v5499_v15 = vld [vmem:[#allocation68_spill] sm:$0xff]  ;;  %v5500_v37 = vld [vmem:[#allocation55_spill] sm:$0xff] }
  0xef   :  { %5476 = vst [vmem:[#allocation41_spill] sm:$0xff] %v3690_v62  ;;  %5477 = vst [vmem:[#allocation42_spill] sm:$0xff] %v3692_v53  ;;  %v804_v25 = vmul.f32 %v5484_v35, %v5492_v39  ;;  %v805_v24 = vmul.f32 %v5484_v35, %v5493_v8  ;;  %v806_v63 = vmul.f32 %v5484_v35, %v5494_v44  ;;  %v5501_v7 = vld [vmem:[#allocation69_spill] sm:$0xff]  ;;  %v5503_v62 = vld [vmem:[#allocation70_spill] sm:$0xff] }
  0xf0   :  { %5478 = vst [vmem:[#allocation44_spill] sm:$0xff] %v3694_v54  ;;  %5479 = vst [vmem:[#allocation45_spill] sm:$0xff] %v3696_v57  ;;  %v807_v49 = vmul.f32 %v5484_v35, %v5495_v22  ;;  %v808_v56 = vmul.f32 %v5484_v35, %v5496_v9  ;;  %v809_v59 = vmul.f32 %v5484_v35, %v5497_v32  ;;  %v5504_v38 = vld [vmem:[#allocation57_spill] sm:$0xff]  ;;  %v5505_v2 = vld [vmem:[#allocation71_spill] sm:$0xff] }
  0xf1   :  { %5480 = vst [vmem:[#allocation46_spill] sm:$0xff] %v3698_v12  ;;  %5481 = vst [vmem:[#allocation48_spill] sm:$0xff] %v3700_v55  ;;  %v810_v45 = vmul.f32 %v5484_v35, %v5498_v27  ;;  %v811_v18 = vmul.f32 %v5484_v35, %v5499_v15  ;;  %v812_v13 = vmul.f32 %v5484_v35, %v5500_v37  ;;  %v5506_v55 = vld [vmem:[#allocation58_spill] sm:$0xff]  ;;  %v5507_v12 = vld [vmem:[#allocation100_spill] sm:$0xff] }
  0xf2   :  { %5482 = vst [vmem:[#allocation49_spill] sm:$0xff] %v3702_v51  ;;  %5483 = vst [vmem:[#allocation50_spill] sm:$0xff] %v3704_v10  ;;  %v813_v10 = vmul.f32 %v5484_v35, %v5501_v7  ;;  %v5502_v51 = vld [vmem:[#allocation56_spill] sm:$0xff]  ;;  %v815_v33 = vmul.f32 %v5484_v35, %v5503_v62  ;;  %v816_v21 = vmul.f32 %v5484_v35, %v5504_v38  ;;  %v3852_v40 = vld [vmem:[#allocation2] sm:$0xff] }
  0xf3   :  { %v814_v53 = vmul.f32 %v5484_v35, %v5502_v51  ;;  %v817_v57 = vmul.f32 %v5484_v35, %v5505_v2  ;;  %v818_v54 = vmul.f32 %v5484_v35, %v5506_v55  ;;  %v3780_v11 = vadd.f32 %v796_v29, %v5507_v12  ;;  %5508 = vst [vmem:[#allocation53_spill] sm:$0xff] %v3852_v40  ;;  %v3855_v31 = vld [vmem:[#allocation2 + $0x8] sm:$0xff]  ;;  %v3873_v55 = vld [vmem:[#allocation2 + $0x38] sm:$0xff]  ;;  %v3876_v2 = vld [vmem:[#allocation2 + $0x40] sm:$0xff] }
  0xf4   :  { %v3783_v41 = vadd.f32 %v797_v6, %v5507_v12  ;;  %v3786_v3 = vadd.f32 %v798_v16, %v5507_v12  ;;  %v3789_v47 = vadd.f32 %v799_v48, %v5507_v12  ;;  %v3792_v0 = vadd.f32 %v800_v43, %v5507_v12  ;;  %5509 = vst [vmem:[#allocation54_spill] sm:$0xff] %v3855_v31  ;;  %v3867_v36 = vld [vmem:[#allocation2 + $0x28] sm:$0xff]  ;;  %v3882_v62 = vld [vmem:[#allocation2 + $0x50] sm:$0xff]  ;;  %v3885_v51 = vld [vmem:[#allocation2 + $0x58] sm:$0xff] }
  0xf5   :  { %v3795_v58 = vadd.f32 %v801_v42, %v5507_v12  ;;  %v3798_v35 = vadd.f32 %v802_v19, %v5507_v12  ;;  %v3801_v29 = vadd.f32 %v803_v4, %v5507_v12  ;;  %v3804_v6 = vadd.f32 %v804_v25, %v5507_v12  ;;  %5511 = vst [vmem:[#allocation23_spill] sm:$0xff] %v3861_v50  ;;  %v3879_v38 = vld [vmem:[#allocation2 + $0x48] sm:$0xff]  ;;  %v3888_v7 = vld [vmem:[#allocation2 + $0x60] sm:$0xff]  ;;  %v3894_v15 = vld [vmem:[#allocation2 + $0x70] sm:$0xff] }
  0xf6   :  { %v3807_v16 = vadd.f32 %v805_v24, %v5507_v12  ;;  %v3810_v48 = vadd.f32 %v806_v63, %v5507_v12  ;;  %v3813_v42 = vadd.f32 %v807_v49, %v5507_v12  ;;  %v3816_v19 = vadd.f32 %v808_v56, %v5507_v12  ;;  %5513 = vst [vmem:[#allocation100_spill] sm:$0xff] %v3867_v36  ;;  %v3891_v37 = vld [vmem:[#allocation2 + $0x68] sm:$0xff]  ;;  %v3897_v27 = vld [vmem:[#allocation2 + $0x78] sm:$0xff]  ;;  %v3900_v32 = vld [vmem:[#allocation2 + $0x80] sm:$0xff] }
  0xf7   :  { %v3819_v4 = vadd.f32 %v809_v59, %v5507_v12  ;;  %v3822_v43 = vadd.f32 %v810_v45, %v5507_v12  ;;  %v3825_v25 = vadd.f32 %v811_v18, %v5507_v12  ;;  %v3828_v24 = vadd.f32 %v812_v13, %v5507_v12  ;;  %5515 = vst [vmem:[#allocation104_spill] sm:$0xff] %v3873_v55  ;;  %v3903_v9 = vld [vmem:[#allocation2 + $0x88] sm:$0xff]  ;;  %v3906_v22 = vld [vmem:[#allocation2 + $0x90] sm:$0xff]  ;;  %v3909_v44 = vld [vmem:[#allocation2 + $0x98] sm:$0xff] }
  0xf8   :  { %v3831_v63 = vadd.f32 %v813_v10, %v5507_v12  ;;  %v3834_v49 = vadd.f32 %v814_v53, %v5507_v12  ;;  %v3837_v56 = vadd.f32 %v815_v33, %v5507_v12  ;;  %v3840_v59 = vadd.f32 %v816_v21, %v5507_v12  ;;  %v3858_v21 = vld [vmem:[#allocation2 + $0x10] sm:$0xff]  ;;  %5516 = vst [vmem:[#allocation105_spill] sm:$0xff] %v3876_v2  ;;  %v3912_v8 = vld [vmem:[#allocation2 + $0xa0] sm:$0xff]  ;;  %v3915_v39 = vld [vmem:[#allocation2 + $0xa8] sm:$0xff] }
  0xf9   :  { %v3843_v45 = vadd.f32 %v817_v57, %v5507_v12  ;;  %v3846_v18 = vadd.f32 %v818_v54, %v5507_v12  ;;  %v843_v13 = vstv %s3753_s18  ;;  %5510 = vst [vmem:[#allocation22_spill] sm:$0xff] %v3858_v21  ;;  %v3864_v12 = vld [vmem:[#allocation2 + $0x20] sm:$0xff]  ;;  %5517 = vst [vmem:[#allocation106_spill] sm:$0xff] %v3879_v38  ;;  %s4586_s18 = sld [smem:[#allocation9 + $0x14]] }
  0xfa   :  { %v844_v10 = vmul.f32 0.0, %v843_v13  ;;  %v845_v53 = vmul.f32 %v3852_v40, %v843_v13  ;;  %v846_v33 = vmul.f32 %v3855_v31, %v843_v13  ;;  %v847_v57 = vmul.f32 %v3858_v21, %v843_v13  ;;  %5512 = vst [vmem:[#allocation59_spill] sm:$0xff] %v3864_v12  ;;  %v3870_v40 = vld [vmem:[#allocation2 + $0x30] sm:$0xff]  ;;  %5518 = vst [vmem:[#allocation107_spill] sm:$0xff] %v3882_v62 }
  0xfb   :  { %v848_v54 = vmul.f32 %v3861_v50, %v843_v13  ;;  %v849_v23 = vmul.f32 %v3864_v12, %v843_v13  ;;  %v850_v14 = vmul.f32 %v3867_v36, %v843_v13  ;;  %5514 = vst [vmem:[#allocation103_spill] sm:$0xff] %v3870_v40  ;;  %v851_v31 = vmul.f32 %v3870_v40, %v843_v13 }
  0xfc   :  { %v852_v21 = vmul.f32 %v3873_v55, %v843_v13  ;;  %v853_v50 = vmul.f32 %v3876_v2, %v843_v13  ;;  %v854_v12 = vmul.f32 %v3879_v38, %v843_v13  ;;  %v855_v36 = vmul.f32 %v3882_v62, %v843_v13  ;;  %5519 = vst [vmem:[#allocation108_spill] sm:$0xff] %v3885_v51 }
  0xfd   :  { %v856_v40 = vmul.f32 %v3885_v51, %v843_v13  ;;  %5520 = vst [vmem:[#allocation109_spill] sm:$0xff] %v3888_v7  ;;  %v857_v55 = vmul.f32 %v3888_v7, %v843_v13  ;;  %5521 = vst [vmem:[#allocation110_spill] sm:$0xff] %v3891_v37  ;;  %v858_v2 = vmul.f32 %v3891_v37, %v843_v13 }
  0xfe   :  { %5522 = vst [vmem:[#allocation111_spill] sm:$0xff] %v3894_v15  ;;  %v859_v38 = vmul.f32 %v3894_v15, %v843_v13  ;;  %5523 = vst [vmem:[#allocation112_spill] sm:$0xff] %v3897_v27  ;;  %v860_v62 = vmul.f32 %v3897_v27, %v843_v13  ;;  %v861_v51 = vmul.f32 %v3900_v32, %v843_v13 }
  0xff   :  { %5524 = vst [vmem:[#allocation113_spill] sm:$0xff] %v3900_v32  ;;  %5525 = vst [vmem:[#allocation114_spill] sm:$0xff] %v3903_v9  ;;  %v862_v7 = vmul.f32 %v3903_v9, %v843_v13  ;;  %v863_v37 = vmul.f32 %v3906_v22, %v843_v13  ;;  %v864_v15 = vmul.f32 %v3909_v44, %v843_v13 }
 0x100   :  { %5526 = vst [vmem:[#allocation115_spill] sm:$0xff] %v3906_v22  ;;  %5527 = vst [vmem:[#allocation116_spill] sm:$0xff] %v3909_v44  ;;  %v865_v27 = vmul.f32 %v3912_v8, %v843_v13  ;;  %v866_v32 = vmul.f32 %v3915_v39, %v843_v13  ;;  %v867_v46 = vadd.f32 %v844_v10, %v3780_v11 }
 0x101   :  { %5528 = vst [vmem:[#allocation117_spill] sm:$0xff] %v3912_v8  ;;  %5529 = vst [vmem:[#allocation118_spill] sm:$0xff] %v3915_v39  ;;  %v868_v9 = vadd.f32 %v845_v53, %v3783_v41  ;;  %v869_v1 = vadd.f32 %v846_v33, %v3786_v3  ;;  %v870_v22 = vadd.f32 %v847_v57, %v3789_v47  ;;  %v5541_v53 = vld [vmem:[#allocation94_spill] sm:$0xff] }
 0x102   :  { %v871_v5 = vadd.f32 %v848_v54, %v3792_v0  ;;  %v872_v44 = vadd.f32 %v849_v23, %v3795_v58  ;;  %v873_v34 = vadd.f32 %v850_v14, %v3798_v35  ;;  %v874_v8 = vadd.f32 %v851_v31, %v3801_v29  ;;  %v5530_v29 = vld [vmem:[#allocation74_spill] sm:$0xff]  ;;  %v5543_v54 = vld [vmem:[#allocation95_spill] sm:$0xff] }
 0x103   :  { %v875_v28 = vadd.f32 %v852_v21, %v3804_v6  ;;  %v876_v13 = vadd.f32 %v853_v50, %v3807_v16  ;;  %v877_v11 = vadd.f32 %v854_v12, %v3810_v48  ;;  %v878_v41 = vadd.f32 %v855_v36, %v3813_v42  ;;  %v5533_v6 = vld [vmem:[#allocation89_spill] sm:$0xff]  ;;  %v5534_v48 = vld [vmem:[#allocation78_spill] sm:$0xff] }
 0x104   :  { %v879_v3 = vadd.f32 %v856_v40, %v3816_v19  ;;  %v880_v47 = vadd.f32 %v857_v55, %v3819_v4  ;;  %v881_v0 = vadd.f32 %v858_v2, %v3822_v43  ;;  %v882_v58 = vadd.f32 %v859_v38, %v3825_v25  ;;  %v5531_v38 = vld [vmem:[#allocation85_spill] sm:$0xff]  ;;  %v5535_v19 = vld [vmem:[#allocation91_spill] sm:$0xff]  ;;  %v5542_v21 = vld [vmem:[#allocation82_spill] sm:$0xff] }
 0x105   :  { %v883_v23 = vadd.f32 %v860_v62, %v3828_v24  ;;  %v884_v31 = vadd.f32 %v861_v51, %v3831_v63  ;;  %v885_v14 = vadd.f32 %v862_v7, %v3834_v49  ;;  %v886_v50 = vadd.f32 %v863_v37, %v3837_v56  ;;  %v5536_v43 = vld [vmem:[#allocation79_spill] sm:$0xff]  ;;  %v5537_v24 = vld [vmem:[#allocation92_spill] sm:$0xff] }
 0x106   :  { %v887_v35 = vadd.f32 %v864_v15, %v3840_v59  ;;  %v888_v36 = vadd.f32 %v865_v27, %v3843_v45  ;;  %v889_v40 = vadd.f32 %v866_v32, %v3846_v18  ;;  %v892_v55 = vmul.f32 0.0, %v3850_v61  ;;  %v5532_v27 = vld [vmem:[#allocation77_spill] sm:$0xff]  ;;  %v5538_v49 = vld [vmem:[#allocation80_spill] sm:$0xff] }
 0x107   :  { %v893_v2 = vmul.f32 %v3850_v61, %v5530_v29  ;;  %v894_v62 = vmul.f32 %v3850_v61, %v5531_v38  ;;  %v895_v51 = vmul.f32 %v3850_v61, %v5435_v17  ;;  %v896_v7 = vmul.f32 %v3850_v61, %v5437_v52  ;;  %v5539_v59 = vld [vmem:[#allocation93_spill] sm:$0xff] }
 0x108   :  { %v897_v37 = vmul.f32 %v3850_v61, %v5438_v20  ;;  %v898_v15 = vmul.f32 %v3850_v61, %v5439_v26  ;;  %v899_v32 = vmul.f32 %v3850_v61, %v5532_v27  ;;  %v900_v16 = vmul.f32 %v3850_v61, %v5533_v6  ;;  %v5540_v18 = vld [vmem:[#allocation81_spill] sm:$0xff] }
 0x109   :  { %v901_v42 = vmul.f32 %v3850_v61, %v5534_v48  ;;  %v902_v4 = vmul.f32 %v3850_v61, %v5535_v19  ;;  %v903_v25 = vmul.f32 %v3850_v61, %v5536_v43  ;;  %v904_v63 = vmul.f32 %v3850_v61, %v5537_v24  ;;  %v5545_v43 = vld [vmem:[#allocation96_spill] sm:$0xff]  ;;  %v5547_v48 = vld [vmem:[#allocation97_spill] sm:$0xff] }
 0x10a   :  { %v905_v56 = vmul.f32 %v3850_v61, %v5538_v49  ;;  %v906_v45 = vmul.f32 %v3850_v61, %v5539_v59  ;;  %v907_v10 = vmul.f32 %v3850_v61, %v5540_v18  ;;  %v908_v33 = vmul.f32 %v3850_v61, %v5541_v53  ;;  %v5544_v49 = vld [vmem:[#allocation83_spill] sm:$0xff]  ;;  %v5546_v19 = vld [vmem:[#allocation84_spill] sm:$0xff] }
 0x10b   :  { %v909_v57 = vmul.f32 %v3850_v61, %v5542_v21  ;;  %v910_v12 = vmul.f32 %v3850_v61, %v5543_v54  ;;  %v911_v24 = vmul.f32 %v3850_v61, %v5544_v49  ;;  %v912_v59 = vmul.f32 %v3850_v61, %v5545_v43 }
 0x10c   :  { %v913_v18 = vmul.f32 %v3850_v61, %v5546_v19  ;;  %v914_v53 = vmul.f32 %v3850_v61, %v5547_v48  ;;  %v915_v6 = vadd.f32 %v892_v55, %v867_v46  ;;  %v916_v27 = vadd.f32 %v893_v2, %v868_v9  ;;  %v5557_v2 = vld [vmem:[#allocation43_spill] sm:$0xff] }
 0x10d   :  { %v917_v21 = vadd.f32 %v894_v62, %v869_v1  ;;  %v918_v26 = vadd.f32 %v895_v51, %v870_v22  ;;  %v919_v20 = vadd.f32 %v896_v7, %v871_v5  ;;  %v920_v52 = vadd.f32 %v897_v37, %v872_v44  ;;  %v5558_v51 = vld [vmem:[#allocation65_spill] sm:$0xff]  ;;  %v5559_v37 = vld [vmem:[#allocation47_spill] sm:$0xff] }
 0x10e   :  { %v921_v17 = vadd.f32 %v898_v15, %v873_v34  ;;  %v922_v54 = vadd.f32 %v899_v32, %v874_v8  ;;  %v923_v38 = vadd.f32 %v900_v16, %v875_v28  ;;  %v924_v49 = vadd.f32 %v901_v42, %v876_v13  ;;  %v5560_v32 = vld [vmem:[#allocation66_spill] sm:$0xff]  ;;  %v5561_v16 = vld [vmem:[#allocation51_spill] sm:$0xff] }
 0x10f   :  { %v925_v43 = vadd.f32 %v902_v4, %v877_v11  ;;  %v926_v29 = vadd.f32 %v903_v25, %v878_v41  ;;  %v927_v19 = vadd.f32 %v904_v63, %v879_v3  ;;  %v928_v39 = vadd.f32 %v905_v56, %v880_v47  ;;  %v5551_v41 = vld [vmem:[#allocation34_spill] sm:$0xff]  ;;  %v5552_v47 = vld [vmem:[#allocation61_spill] sm:$0xff]  ;;  %v5562_v4 = vld [vmem:[#allocation67_spill] sm:$0xff] }
 0x110   :  { %v929_v60 = vadd.f32 %v906_v45, %v881_v0  ;;  %v930_v61 = vadd.f32 %v907_v10, %v882_v58  ;;  %v931_v46 = vadd.f32 %v908_v33, %v883_v23  ;;  %v932_v9 = vadd.f32 %v909_v57, %v884_v31  ;;  %v5553_v58 = vld [vmem:[#allocation38_spill] sm:$0xff]  ;;  %v5564_v56 = vld [vmem:[#allocation68_spill] sm:$0xff]  ;;  %v5565_v45 = vld [vmem:[#allocation55_spill] sm:$0xff] }
 0x111   :  { %v933_v1 = vadd.f32 %v910_v12, %v885_v14  ;;  %v934_v22 = vadd.f32 %v911_v24, %v886_v50  ;;  %v935_v5 = vadd.f32 %v912_v59, %v887_v35  ;;  %v936_v44 = vadd.f32 %v913_v18, %v888_v36  ;;  %v5554_v31 = vld [vmem:[#allocation62_spill] sm:$0xff]  ;;  %v5555_v50 = vld [vmem:[#allocation39_spill] sm:$0xff]  ;;  %v5563_v24 = vld [vmem:[#allocation52_spill] sm:$0xff] }
 0x112   :  { %v937_v34 = vadd.f32 %v914_v53, %v889_v40  ;;  %v939_v8 = vstv %s3952_s1  ;;  %v3996_v55 = vstv %s3962_s20  ;;  %v3999_v28 = vstv %s3972_s21  ;;  %v5556_v36 = vld [vmem:[#allocation63_spill] sm:$0xff]  ;;  %v5566_v10 = vld [vmem:[#allocation69_spill] sm:$0xff]  ;;  %v5567_v33 = vld [vmem:[#allocation56_spill] sm:$0xff]  ;;  %s4595_s1 = sld [smem:[#allocation9 + $0x16]] }
 0x113   :  { %5548 = vst [vmem:[#allocation119_spill] sm:$0xff] %v3996_v55  ;;  %5549 = vst [vmem:[#allocation120_spill] sm:$0xff] %v3999_v28  ;;  %v4002_v13 = vstv %s3982_s22  ;;  %v940_v11 = vmul.f32 %v939_v8, %v5485_v30  ;;  %v941_v3 = vmul.f32 %v939_v8, %v5551_v41  ;;  %v942_v0 = vmul.f32 %v939_v8, %v5552_v47  ;;  %v5568_v12 = vld [vmem:[#allocation70_spill] sm:$0xff]  ;;  %s4599_s20 = sld [smem:[#allocation9 + $0x17]] }
 0x114   :  { %5550 = vst [vmem:[#allocation121_spill] sm:$0xff] %v4002_v13  ;;  %v943_v23 = vmul.f32 %v939_v8, %v5553_v58  ;;  %v944_v14 = vmul.f32 %v939_v8, %v5554_v31  ;;  %v945_v35 = vmul.f32 %v939_v8, %v5555_v50  ;;  %v946_v40 = vmul.f32 %v939_v8, %v5556_v36  ;;  %v5571_v36 = vld [vmem:[#allocation58_spill] sm:$0xff]  ;;  %v5572_v50 = vld [vmem:[#allocation72_spill] sm:$0xff]  ;;  %s4605_s21 = sld [smem:[#allocation9 + $0x18]] }
 0x115   :  { %v947_v62 = vmul.f32 %v939_v8, %v5557_v2  ;;  %v948_v7 = vmul.f32 %v939_v8, %v5558_v51  ;;  %v949_v15 = vmul.f32 %v939_v8, %v5559_v37  ;;  %v950_v30 = vmul.f32 %v939_v8, %v5560_v32  ;;  %v5569_v51 = vld [vmem:[#allocation57_spill] sm:$0xff]  ;;  %v5570_v2 = vld [vmem:[#allocation71_spill] sm:$0xff]  ;;  %v5573_v31 = vld [vmem:[#allocation60_spill] sm:$0xff]  ;;  %s4611_s22 = sld [smem:[#allocation9 + $0x19]] }
 0x116   :  { %v951_v42 = vmul.f32 %v939_v8, %v5561_v16  ;;  %v952_v25 = vmul.f32 %v939_v8, %v5562_v4  ;;  %v953_v63 = vmul.f32 %v939_v8, %v5563_v24  ;;  %v954_v59 = vmul.f32 %v939_v8, %v5564_v56 }
 0x117   :  { %v955_v18 = vmul.f32 %v939_v8, %v5565_v45  ;;  %v956_v53 = vmul.f32 %v939_v8, %v5566_v10  ;;  %v957_v57 = vmul.f32 %v939_v8, %v5567_v33  ;;  %v958_v41 = vmul.f32 %v939_v8, %v5568_v12 }
 0x118   :  { %v959_v37 = vmul.f32 %v939_v8, %v5569_v51  ;;  %v960_v32 = vmul.f32 %v939_v8, %v5570_v2  ;;  %v961_v16 = vmul.f32 %v939_v8, %v5571_v36  ;;  %v962_v4 = vmul.f32 %v939_v8, %v5572_v50 }
 0x119   :  { %v963_v24 = vmul.f32 %v939_v8, %v5573_v31  ;;  %v964_v58 = vadd.f32 %v940_v11, %v915_v6  ;;  %v965_v56 = vadd.f32 %v941_v3, %v915_v6  ;;  %v966_v13 = vadd.f32 %v942_v0, %v916_v27 }
 0x11a   :  { %v967_v45 = vadd.f32 %v943_v23, %v917_v21  ;;  %v968_v47 = vadd.f32 %v944_v14, %v918_v26  ;;  %v969_v10 = vadd.f32 %v945_v35, %v919_v20  ;;  %v970_v48 = vadd.f32 %v946_v40, %v920_v52  ;;  %v5574_v26 = vld [vmem:[#allocation119_spill] sm:$0xff]  ;;  %v5575_v20 = vld [vmem:[#allocation53_spill] sm:$0xff] }
 0x11b   :  { %v971_v33 = vadd.f32 %v947_v62, %v921_v17  ;;  %v972_v28 = vadd.f32 %v948_v7, %v922_v54  ;;  %v973_v12 = vadd.f32 %v949_v15, %v923_v38  ;;  %v974_v55 = vadd.f32 %v950_v30, %v924_v49  ;;  %v5576_v17 = vld [vmem:[#allocation54_spill] sm:$0xff]  ;;  %v5580_v54 = vld [vmem:[#allocation100_spill] sm:$0xff]  ;;  %v5585_v35 = vld [vmem:[#allocation107_spill] sm:$0xff] }
 0x11c   :  { %v975_v51 = vadd.f32 %v951_v42, %v925_v43  ;;  %v976_v2 = vadd.f32 %v952_v25, %v926_v29  ;;  %v977_v36 = vadd.f32 %v953_v63, %v927_v19  ;;  %v978_v50 = vadd.f32 %v954_v59, %v928_v39  ;;  %v5577_v43 = vld [vmem:[#allocation22_spill] sm:$0xff]  ;;  %v5578_v39 = vld [vmem:[#allocation23_spill] sm:$0xff]  ;;  %v5586_v62 = vld [vmem:[#allocation108_spill] sm:$0xff] }
 0x11d   :  { %v979_v8 = vadd.f32 %v955_v18, %v929_v60  ;;  %v980_v31 = vadd.f32 %v956_v53, %v930_v61  ;;  %v981_v11 = vadd.f32 %v957_v57, %v931_v46  ;;  %v982_v3 = vadd.f32 %v958_v41, %v932_v9  ;;  %v5579_v19 = vld [vmem:[#allocation59_spill] sm:$0xff]  ;;  %v5592_v59 = vld [vmem:[#allocation114_spill] sm:$0xff]  ;;  %v5594_v41 = vld [vmem:[#allocation116_spill] sm:$0xff] }
 0x11e   :  { %v983_v6 = vadd.f32 %v959_v37, %v933_v1  ;;  %v984_v0 = vadd.f32 %v960_v32, %v934_v22  ;;  %v985_v27 = vadd.f32 %v961_v16, %v935_v5  ;;  %v986_v21 = vadd.f32 %v962_v4, %v936_v44  ;;  %v5581_v46 = vld [vmem:[#allocation103_spill] sm:$0xff]  ;;  %v5582_v1 = vld [vmem:[#allocation104_spill] sm:$0xff]  ;;  %v5583_v5 = vld [vmem:[#allocation105_spill] sm:$0xff] }
 0x11f   :  { %v987_v23 = vadd.f32 %v963_v24, %v937_v34  ;;  %v990_v52 = vmul.f32 %v5575_v20, %v5574_v26  ;;  %v991_v38 = vmul.f32 %v5576_v17, %v5574_v26  ;;  %v992_v29 = vmul.f32 %v5577_v43, %v5574_v26  ;;  %v5584_v34 = vld [vmem:[#allocation106_spill] sm:$0xff]  ;;  %v5587_v37 = vld [vmem:[#allocation109_spill] sm:$0xff]  ;;  %v5589_v16 = vld [vmem:[#allocation111_spill] sm:$0xff] }
 0x120   :  { %v993_v60 = vmul.f32 %v5578_v39, %v5574_v26  ;;  %v994_v49 = vmul.f32 %v5579_v19, %v5574_v26  ;;  %v995_v61 = vmul.f32 %v5580_v54, %v5574_v26  ;;  %v996_v9 = vmul.f32 %v5581_v46, %v5574_v26  ;;  %v5588_v32 = vld [vmem:[#allocation110_spill] sm:$0xff]  ;;  %v5590_v4 = vld [vmem:[#allocation112_spill] sm:$0xff]  ;;  %v5591_v24 = vld [vmem:[#allocation113_spill] sm:$0xff] }
 0x121   :  { %v997_v22 = vmul.f32 %v5582_v1, %v5574_v26  ;;  %v998_v44 = vmul.f32 %v5583_v5, %v5574_v26  ;;  %v999_v14 = vmul.f32 %v5584_v34, %v5574_v26  ;;  %v1000_v40 = vmul.f32 %v5585_v35, %v5574_v26  ;;  %v5593_v53 = vld [vmem:[#allocation115_spill] sm:$0xff]  ;;  %v5595_v17 = vld [vmem:[#allocation117_spill] sm:$0xff] }
 0x122   :  { %v1001_v7 = vmul.f32 %v5586_v62, %v5574_v26  ;;  %v1002_v15 = vmul.f32 %v5587_v37, %v5574_v26  ;;  %v1003_v30 = vmul.f32 %v5588_v32, %v5574_v26  ;;  %v1004_v42 = vmul.f32 %v5589_v16, %v5574_v26  ;;  %v5596_v16 = vld [vmem:[#allocation118_spill] sm:$0xff]  ;;  %v4072_v62 = vld [vmem:[#allocation2 + $0xb0] sm:$0xff] }
 0x123   :  { %v1005_v25 = vmul.f32 %v5590_v4, %v5574_v26  ;;  %v1006_v63 = vmul.f32 %v5591_v24, %v5574_v26  ;;  %v1007_v18 = vmul.f32 %v5592_v59, %v5574_v26  ;;  %v1008_v57 = vmul.f32 %v5593_v53, %v5574_v26  ;;  %5597 = vst [vmem:[#allocation34_spill] sm:$0xff] %v4072_v62  ;;  %v4076_v4 = vld [vmem:[#allocation2 + $0xb8] sm:$0xff] }
 0x124   :  { %v1009_v20 = vmul.f32 %v5594_v41, %v5574_v26  ;;  %v1010_v32 = vmul.f32 %v5595_v17, %v5574_v26  ;;  %v1011_v37 = vmul.f32 %v5596_v16, %v5574_v26  ;;  %v1012_v24 = vmul.f32 %v4072_v62, %v5574_v26  ;;  %5598 = vst [vmem:[#allocation119_spill] sm:$0xff] %v4076_v4 }
 0x125   :  { %v1013_v59 = vmul.f32 %v4076_v4, %v5574_v26  ;;  %v1014_v53 = vadd.f32 %v990_v52, %v964_v58  ;;  %v1015_v35 = vadd.f32 %v991_v38, %v965_v56  ;;  %v1016_v34 = vadd.f32 %v992_v29, %v966_v13 }
 0x126   :  { %v1017_v41 = vadd.f32 %v993_v60, %v967_v45  ;;  %v1018_v5 = vadd.f32 %v994_v49, %v968_v47  ;;  %v1019_v1 = vadd.f32 %v995_v61, %v969_v10  ;;  %v1020_v17 = vadd.f32 %v996_v9, %v970_v48  ;;  %v5599_v47 = vld [vmem:[#allocation74_spill] sm:$0xff]  ;;  %v5600_v10 = vld [vmem:[#allocation120_spill] sm:$0xff]  ;;  %v5610_v61 = vld [vmem:[#allocation79_spill] sm:$0xff] }
 0x127   :  { %v1021_v46 = vadd.f32 %v997_v22, %v971_v33  ;;  %v1022_v54 = vadd.f32 %v998_v44, %v972_v28  ;;  %v1023_v16 = vadd.f32 %v999_v14, %v973_v12  ;;  %v1024_v19 = vadd.f32 %v1000_v40, %v974_v55  ;;  %v5601_v33 = vld [vmem:[#allocation85_spill] sm:$0xff]  ;;  %v5602_v55 = vld [vmem:[#allocation75_spill] sm:$0xff]  ;;  %v5605_v12 = vld [vmem:[#allocation88_spill] sm:$0xff] }
 0x128   :  { %v1025_v39 = vadd.f32 %v1001_v7, %v975_v51  ;;  %v1026_v43 = vadd.f32 %v1002_v15, %v976_v2  ;;  %v1027_v62 = vadd.f32 %v1003_v30, %v977_v36  ;;  %v1028_v4 = vadd.f32 %v1004_v42, %v978_v50  ;;  %v5603_v36 = vld [vmem:[#allocation87_spill] sm:$0xff]  ;;  %v5611_v22 = vld [vmem:[#allocation92_spill] sm:$0xff]  ;;  %v5613_v7 = vld [vmem:[#allocation93_spill] sm:$0xff] }
 0x129   :  { %v1029_v26 = vadd.f32 %v1005_v25, %v979_v8  ;;  %v1030_v52 = vadd.f32 %v1006_v63, %v980_v31  ;;  %v1031_v58 = vadd.f32 %v1007_v18, %v981_v11  ;;  %v1032_v38 = vadd.f32 %v1008_v57, %v982_v3  ;;  %v5604_v31 = vld [vmem:[#allocation76_spill] sm:$0xff]  ;;  %v5606_v11 = vld [vmem:[#allocation77_spill] sm:$0xff]  ;;  %v5615_v30 = vld [vmem:[#allocation94_spill] sm:$0xff] }
 0x12a   :  { %v1033_v56 = vadd.f32 %v1009_v20, %v983_v6  ;;  %v1034_v13 = vadd.f32 %v1010_v32, %v984_v0  ;;  %v1035_v29 = vadd.f32 %v1011_v37, %v985_v27  ;;  %v1036_v45 = vadd.f32 %v1012_v24, %v986_v21  ;;  %v5607_v6 = vld [vmem:[#allocation89_spill] sm:$0xff]  ;;  %v5608_v27 = vld [vmem:[#allocation78_spill] sm:$0xff]  ;;  %v5612_v14 = vld [vmem:[#allocation80_spill] sm:$0xff] }
 0x12b   :  { %v1037_v60 = vadd.f32 %v1013_v59, %v987_v23  ;;  %v1040_v48 = vmul.f32 %v5600_v10, %v5599_v47  ;;  %v1041_v28 = vmul.f32 %v5600_v10, %v5601_v33  ;;  %v1042_v2 = vmul.f32 %v5600_v10, %v5602_v55  ;;  %v5609_v23 = vld [vmem:[#allocation91_spill] sm:$0xff]  ;;  %v5614_v15 = vld [vmem:[#allocation81_spill] sm:$0xff]  ;;  %v5616_v25 = vld [vmem:[#allocation82_spill] sm:$0xff] }
 0x12c   :  { %v1043_v50 = vmul.f32 %v5600_v10, %v5603_v36  ;;  %v1044_v51 = vmul.f32 %v5600_v10, %v5604_v31  ;;  %v1045_v8 = vmul.f32 %v5600_v10, %v5605_v12  ;;  %v1046_v3 = vmul.f32 %v5600_v10, %v5606_v11  ;;  %v5617_v63 = vld [vmem:[#allocation95_spill] sm:$0xff]  ;;  %v5619_v20 = vld [vmem:[#allocation96_spill] sm:$0xff] }
 0x12d   :  { %v1047_v0 = vmul.f32 %v5600_v10, %v5607_v6  ;;  %v1048_v21 = vmul.f32 %v5600_v10, %v5608_v27  ;;  %v1049_v49 = vmul.f32 %v5600_v10, %v5609_v23  ;;  %v1050_v9 = vmul.f32 %v5600_v10, %v5610_v61  ;;  %v5618_v18 = vld [vmem:[#allocation83_spill] sm:$0xff]  ;;  %v5620_v33 = vld [vmem:[#allocation84_spill] sm:$0xff]  ;;  %v5623_v61 = vld [vmem:[#allocation98_spill] sm:$0xff] }
 0x12e   :  { %v1051_v44 = vmul.f32 %v5600_v10, %v5611_v22  ;;  %v1052_v40 = vmul.f32 %v5600_v10, %v5612_v14  ;;  %v1053_v37 = vmul.f32 %v5600_v10, %v5613_v7  ;;  %v1054_v32 = vmul.f32 %v5600_v10, %v5614_v15  ;;  %v5621_v14 = vld [vmem:[#allocation97_spill] sm:$0xff]  ;;  %v5622_v22 = vld [vmem:[#allocation86_spill] sm:$0xff] }
 0x12f   :  { %v1055_v42 = vmul.f32 %v5600_v10, %v5615_v30  ;;  %v1056_v24 = vmul.f32 %v5600_v10, %v5616_v25  ;;  %v1057_v59 = vmul.f32 %v5600_v10, %v5617_v63  ;;  %v1058_v57 = vmul.f32 %v5600_v10, %v5618_v18 }
 0x130   :  { %v1059_v47 = vmul.f32 %v5600_v10, %v5619_v20  ;;  %v1060_v7 = vmul.f32 %v5600_v10, %v5620_v33  ;;  %v1061_v15 = vmul.f32 %v5600_v10, %v5621_v14  ;;  %v1062_v30 = vmul.f32 %v5600_v10, %v5622_v22 }
 0x131   :  { %v1063_v25 = vmul.f32 %v5600_v10, %v5623_v61  ;;  %v1064_v23 = vadd.f32 %v1040_v48, %v1014_v53  ;;  %v1065_v63 = vadd.f32 %v1041_v28, %v1015_v35  ;;  %v1066_v27 = vadd.f32 %v1042_v2, %v1016_v34 }
 0x132   :  { %v1067_v6 = vadd.f32 %v1043_v50, %v1017_v41  ;;  %v1068_v18 = vadd.f32 %v1044_v51, %v1018_v5  ;;  %v1069_v11 = vadd.f32 %v1045_v8, %v1019_v1  ;;  %v1070_v12 = vadd.f32 %v1046_v3, %v1020_v17  ;;  %v5624_v5 = vld [vmem:[#allocation61_spill] sm:$0xff]  ;;  %v5635_v8 = vld [vmem:[#allocation67_spill] sm:$0xff] }
 0x133   :  { %v1071_v20 = vadd.f32 %v1047_v0, %v1021_v46  ;;  %v1072_v31 = vadd.f32 %v1048_v21, %v1022_v54  ;;  %v1073_v36 = vadd.f32 %v1049_v49, %v1023_v16  ;;  %v1074_v33 = vadd.f32 %v1050_v9, %v1024_v19  ;;  %v5625_v1 = vld [vmem:[#allocation121_spill] sm:$0xff]  ;;  %v5626_v46 = vld [vmem:[#allocation38_spill] sm:$0xff]  ;;  %v5629_v16 = vld [vmem:[#allocation63_spill] sm:$0xff] }
 0x134   :  { %v1075_v55 = vadd.f32 %v1051_v44, %v1025_v39  ;;  %v1076_v14 = vadd.f32 %v1052_v40, %v1026_v43  ;;  %v1077_v22 = vadd.f32 %v1053_v37, %v1027_v62  ;;  %v1078_v10 = vadd.f32 %v1054_v32, %v1028_v4  ;;  %v5627_v19 = vld [vmem:[#allocation62_spill] sm:$0xff]  ;;  %v5628_v39 = vld [vmem:[#allocation39_spill] sm:$0xff]  ;;  %v5636_v0 = vld [vmem:[#allocation52_spill] sm:$0xff] }
 0x135   :  { %v1079_v61 = vadd.f32 %v1055_v42, %v1029_v26  ;;  %v1080_v48 = vadd.f32 %v1056_v24, %v1030_v52  ;;  %v1081_v53 = vadd.f32 %v1057_v59, %v1031_v58  ;;  %v1082_v28 = vadd.f32 %v1058_v57, %v1032_v38  ;;  %v5630_v26 = vld [vmem:[#allocation43_spill] sm:$0xff]  ;;  %v5631_v58 = vld [vmem:[#allocation65_spill] sm:$0xff]  ;;  %v5637_v49 = vld [vmem:[#allocation68_spill] sm:$0xff] }
 0x136   :  { %v1083_v35 = vadd.f32 %v1059_v47, %v1033_v56  ;;  %v1084_v2 = vadd.f32 %v1060_v7, %v1034_v13  ;;  %v1085_v34 = vadd.f32 %v1061_v15, %v1035_v29  ;;  %v1086_v41 = vadd.f32 %v1062_v30, %v1036_v45  ;;  %v5632_v56 = vld [vmem:[#allocation47_spill] sm:$0xff]  ;;  %v5633_v29 = vld [vmem:[#allocation66_spill] sm:$0xff]  ;;  %v5639_v7 = vld [vmem:[#allocation69_spill] sm:$0xff] }
 0x137   :  { %v1087_v50 = vadd.f32 %v1063_v25, %v1037_v60  ;;  %v1090_v17 = vmul.f32 %v5625_v1, %v5624_v5  ;;  %v1091_v54 = vmul.f32 %v5625_v1, %v5626_v46  ;;  %v1092_v43 = vmul.f32 %v5625_v1, %v5627_v19  ;;  %v5634_v60 = vld [vmem:[#allocation51_spill] sm:$0xff]  ;;  %v5640_v15 = vld [vmem:[#allocation56_spill] sm:$0xff]  ;;  %v5641_v30 = vld [vmem:[#allocation70_spill] sm:$0xff] }
 0x138   :  { %v1093_v62 = vmul.f32 %v5625_v1, %v5628_v39  ;;  %v1094_v4 = vmul.f32 %v5625_v1, %v5629_v16  ;;  %v1095_v52 = vmul.f32 %v5625_v1, %v5630_v26  ;;  %v1096_v38 = vmul.f32 %v5625_v1, %v5631_v58  ;;  %v5638_v44 = vld [vmem:[#allocation55_spill] sm:$0xff]  ;;  %v5642_v25 = vld [vmem:[#allocation57_spill] sm:$0xff]  ;;  %v5644_v47 = vld [vmem:[#allocation58_spill] sm:$0xff] }
 0x139   :  { %v1097_v13 = vmul.f32 %v5625_v1, %v5632_v56  ;;  %v1098_v45 = vmul.f32 %v5625_v1, %v5633_v29  ;;  %v1099_v51 = vmul.f32 %v5625_v1, %v5634_v60  ;;  %v1100_v3 = vmul.f32 %v5625_v1, %v5635_v8  ;;  %v5643_v59 = vld [vmem:[#allocation71_spill] sm:$0xff]  ;;  %v5645_v46 = vld [vmem:[#allocation72_spill] sm:$0xff]  ;;  %v5647_v26 = vld [vmem:[#allocation73_spill] sm:$0xff] }
 0x13a   :  { %v1101_v21 = vmul.f32 %v5625_v1, %v5636_v0  ;;  %v1102_v9 = vmul.f32 %v5625_v1, %v5637_v49  ;;  %v1103_v40 = vmul.f32 %v5625_v1, %v5638_v44  ;;  %v1104_v37 = vmul.f32 %v5625_v1, %v5639_v7  ;;  %v5646_v39 = vld [vmem:[#allocation60_spill] sm:$0xff] }
 0x13b   :  { %v1105_v32 = vmul.f32 %v5625_v1, %v5640_v15  ;;  %v1106_v42 = vmul.f32 %v5625_v1, %v5641_v30  ;;  %v1107_v24 = vmul.f32 %v5625_v1, %v5642_v25  ;;  %v1108_v57 = vmul.f32 %v5625_v1, %v5643_v59  ;;  %v5648_v56 = vld [vmem:[#allocation64_spill] sm:$0xff] }
 0x13c   :  { %v1109_v5 = vmul.f32 %v5625_v1, %v5644_v47  ;;  %v1110_v19 = vmul.f32 %v5625_v1, %v5645_v46  ;;  %v1111_v16 = vmul.f32 %v5625_v1, %v5646_v39  ;;  %v1112_v58 = vmul.f32 %v5625_v1, %v5647_v26 }
 0x13d   :  { %v1113_v29 = vmul.f32 %v5625_v1, %v5648_v56  ;;  %v1114_v60 = vadd.f32 %v1090_v17, %v1064_v23  ;;  %v1115_v8 = vadd.f32 %v1091_v54, %v1065_v63  ;;  %v1116_v0 = vadd.f32 %v1092_v43, %v1066_v27  ;;  %v5652_v43 = vld [vmem:[#allocation101_spill] sm:$0xff] }
 0x13e   :  { %v1117_v49 = vadd.f32 %v1093_v62, %v1067_v6  ;;  %v1118_v44 = vadd.f32 %v1094_v4, %v1068_v18  ;;  %v1119_v7 = vadd.f32 %v1095_v52, %v1069_v11  ;;  %v1120_v15 = vadd.f32 %v1096_v38, %v1070_v12  ;;  %v5664_v4 = vld [vmem:[#allocation103_spill] sm:$0xff]  ;;  %v5665_v38 = vld [vmem:[#allocation104_spill] sm:$0xff] }
 0x13f   :  { %v1121_v30 = vadd.f32 %v1097_v13, %v1071_v20  ;;  %v1122_v25 = vadd.f32 %v1098_v45, %v1072_v31  ;;  %v1123_v59 = vadd.f32 %v1099_v51, %v1073_v36  ;;  %v1124_v47 = vadd.f32 %v1100_v3, %v1074_v33  ;;  %v5650_v31 = vld [vmem:[#allocation24_spill] sm:$0xff]  ;;  %v5666_v45 = vld [vmem:[#allocation105_spill] sm:$0xff]  ;;  %v5667_v3 = vld [vmem:[#allocation106_spill] sm:$0xff] }
 0x140   :  { %v1125_v46 = vadd.f32 %v1101_v21, %v1075_v55  ;;  %v1126_v39 = vadd.f32 %v1102_v9, %v1076_v14  ;;  %v1127_v26 = vadd.f32 %v1103_v40, %v1077_v22  ;;  %v1128_v1 = vadd.f32 %v1104_v37, %v1078_v10  ;;  %v5655_v22 = vld [vmem:[#allocation25_spill] sm:$0xff]  ;;  %v5668_v9 = vld [vmem:[#allocation107_spill] sm:$0xff]  ;;  %v5669_v37 = vld [vmem:[#allocation108_spill] sm:$0xff] }
 0x141   :  { %v1129_v56 = vadd.f32 %v1105_v32, %v1079_v61  ;;  %v1130_v17 = vadd.f32 %v1106_v42, %v1080_v48  ;;  %v1131_v23 = vadd.f32 %v1107_v24, %v1081_v53  ;;  %v1132_v54 = vadd.f32 %v1108_v57, %v1082_v28  ;;  %v5657_v61 = vld [vmem:[#allocation102_spill] sm:$0xff]  ;;  %v5670_v42 = vld [vmem:[#allocation109_spill] sm:$0xff] }
 0x142   :  { %v1133_v63 = vadd.f32 %v1109_v5, %v1083_v35  ;;  %v1134_v27 = vadd.f32 %v1110_v19, %v1084_v2  ;;  %v1135_v6 = vadd.f32 %v1111_v16, %v1085_v34  ;;  %v1136_v18 = vadd.f32 %v1112_v58, %v1086_v41  ;;  %v5660_v53 = vld [vmem:[#allocation22_spill] sm:$0xff]  ;;  %v5661_v35 = vld [vmem:[#allocation23_spill] sm:$0xff]  ;;  %v5673_v58 = vld [vmem:[#allocation112_spill] sm:$0xff] }
 0x143   :  { %v1137_v11 = vadd.f32 %v1113_v29, %v1087_v50  ;;  %v1139_v12 = vstv %s4160_s23  ;;  %v4182_v20 = vstv %s4170_s24  ;;  %v5651_v36 = vmax.f32 %v5650_v31, 0.0  ;;  %v5662_v34 = vld [vmem:[#allocation59_spill] sm:$0xff]  ;;  %v5663_v50 = vld [vmem:[#allocation100_spill] sm:$0xff]  ;;  %v5671_v57 = vld [vmem:[#allocation110_spill] sm:$0xff]  ;;  %s4618_s23 = sld [smem:[#allocation9 + $0x1a]] }
 0x144   :  { %5649 = vst [vmem:[#allocation53_spill] sm:$0xff] %v4182_v20  ;;  %v5653_v33 = vmax.f32 %v5652_v43, 0.0  ;;  %v5656_v14 = vmax.f32 %v5655_v22, 0.0  ;;  %v5658_v10 = vmax.f32 %v5657_v61, 0.0  ;;  %v1140_v28 = vmul.f32 %v5660_v53, %v1139_v12  ;;  %v5672_v19 = vld [vmem:[#allocation111_spill] sm:$0xff]  ;;  %v5674_v31 = vld [vmem:[#allocation113_spill] sm:$0xff] }
 0x145   :  { %v1141_v2 = vmul.f32 %v5661_v35, %v1139_v12  ;;  %v1142_v41 = vmul.f32 %v5662_v34, %v1139_v12  ;;  %v1143_v62 = vmul.f32 %v5663_v50, %v1139_v12  ;;  %v1144_v52 = vmul.f32 %v5664_v4, %v1139_v12  ;;  %v5675_v43 = vld [vmem:[#allocation114_spill] sm:$0xff]  ;;  %v5676_v22 = vld [vmem:[#allocation115_spill] sm:$0xff]  ;;  %v5677_v61 = vld [vmem:[#allocation116_spill] sm:$0xff]  ;;  %s4623_s24 = sld [smem:[#allocation9 + $0x1b]] }
 0x146   :  { %v4188_v55 = vmax.f32 %v5653_v33, %v5651_v36  ;;  %v4194_v48 = vmax.f32 %v5658_v10, %v5656_v14  ;;  %v1145_v13 = vmul.f32 %v5665_v38, %v1139_v12  ;;  %v1146_v51 = vmul.f32 %v5666_v45, %v1139_v12  ;;  %v5678_v53 = vld [vmem:[#allocation117_spill] sm:$0xff]  ;;  %v5679_v34 = vld [vmem:[#allocation118_spill] sm:$0xff]  ;;  %v5681_v45 = vld [vmem:[#allocation119_spill] sm:$0xff] }
 0x147   :  { %v1147_v21 = vmul.f32 %v5667_v3, %v1139_v12  ;;  %v1148_v40 = vmul.f32 %v5668_v9, %v1139_v12  ;;  %v1149_v32 = vmul.f32 %v5669_v37, %v1139_v12  ;;  %v1150_v24 = vmul.f32 %v5670_v42, %v1139_v12  ;;  %v5680_v4 = vld [vmem:[#allocation34_spill] sm:$0xff] }
 0x148   :  { %5654 = vst [vmem:[#allocation54_spill] sm:$0xff] %v4188_v55  ;;  %5659 = vst [vmem:[#allocation74_spill] sm:$0xff] %v4194_v48  ;;  %v1151_v5 = vmul.f32 %v5671_v57, %v1139_v12  ;;  %v1152_v16 = vmul.f32 %v5672_v19, %v1139_v12  ;;  %v1153_v29 = vmul.f32 %v5673_v58, %v1139_v12  ;;  %v2822_v9 = vld [vmem:[#allocation2 + $0xc0] sm:$0xff]  ;;  %v2823_v42 = vld [vmem:[#allocation2 + $0xc8] sm:$0xff] }
 0x149   :  { %v1154_v36 = vmul.f32 %v5674_v31, %v1139_v12  ;;  %v1155_v33 = vmul.f32 %v5675_v43, %v1139_v12  ;;  %v1156_v14 = vmul.f32 %v5676_v22, %v1139_v12  ;;  %v1157_v10 = vmul.f32 %v5677_v61, %v1139_v12 }
 0x14a   :  { %v1158_v35 = vmul.f32 %v5678_v53, %v1139_v12  ;;  %v1159_v50 = vmul.f32 %v5679_v34, %v1139_v12  ;;  %v1160_v38 = vmul.f32 %v5680_v4, %v1139_v12  ;;  %v1161_v3 = vmul.f32 %v5681_v45, %v1139_v12 }
 0x14b   :  { %v1162_v37 = vmul.f32 %v2822_v9, %v1139_v12  ;;  %v1163_v57 = vmul.f32 %v2823_v42, %v1139_v12  ;;  %v1164_v19 = vadd.f32 %v1140_v28, %v1114_v60  ;;  %v1165_v58 = vadd.f32 %v1141_v2, %v1115_v8 }
 0x14c   :  { %v1166_v31 = vadd.f32 %v1142_v41, %v1116_v0  ;;  %v1167_v43 = vadd.f32 %v1143_v62, %v1117_v49  ;;  %v1168_v48 = vadd.f32 %v1144_v52, %v1118_v44  ;;  %v1169_v22 = vadd.f32 %v1145_v13, %v1119_v7  ;;  %v5682_v44 = vld [vmem:[#allocation75_spill] sm:$0xff]  ;;  %v5683_v7 = vld [vmem:[#allocation53_spill] sm:$0xff]  ;;  %v5693_v13 = vld [vmem:[#allocation80_spill] sm:$0xff] }
 0x14d   :  { %v1170_v55 = vadd.f32 %v1146_v51, %v1120_v15  ;;  %v1171_v61 = vadd.f32 %v1147_v21, %v1121_v30  ;;  %v1172_v20 = vadd.f32 %v1148_v40, %v1122_v25  ;;  %v1173_v53 = vadd.f32 %v1149_v32, %v1123_v59  ;;  %v5684_v30 = vld [vmem:[#allocation87_spill] sm:$0xff]  ;;  %v5685_v59 = vld [vmem:[#allocation76_spill] sm:$0xff]  ;;  %v5694_v21 = vld [vmem:[#allocation93_spill] sm:$0xff] }
 0x14e   :  { %v1174_v34 = vadd.f32 %v1150_v24, %v1124_v47  ;;  %v1175_v4 = vadd.f32 %v1151_v5, %v1125_v46  ;;  %v1176_v45 = vadd.f32 %v1152_v16, %v1126_v39  ;;  %v1177_v9 = vadd.f32 %v1153_v29, %v1127_v26  ;;  %v5686_v46 = vld [vmem:[#allocation88_spill] sm:$0xff]  ;;  %v5687_v26 = vld [vmem:[#allocation77_spill] sm:$0xff]  ;;  %v5696_v5 = vld [vmem:[#allocation94_spill] sm:$0xff] }
 0x14f   :  { %v1178_v12 = vadd.f32 %v1154_v36, %v1128_v1  ;;  %v1179_v42 = vadd.f32 %v1155_v33, %v1129_v56  ;;  %v1180_v28 = vadd.f32 %v1156_v14, %v1130_v17  ;;  %v1181_v60 = vadd.f32 %v1157_v10, %v1131_v23  ;;  %v5688_v56 = vld [vmem:[#allocation89_spill] sm:$0xff]  ;;  %v5689_v23 = vld [vmem:[#allocation78_spill] sm:$0xff]  ;;  %v5698_v33 = vld [vmem:[#allocation95_spill] sm:$0xff] }
 0x150   :  { %v1182_v2 = vadd.f32 %v1158_v35, %v1132_v54  ;;  %v1183_v8 = vadd.f32 %v1159_v50, %v1133_v63  ;;  %v1184_v0 = vadd.f32 %v1160_v38, %v1134_v27  ;;  %v1185_v41 = vadd.f32 %v1161_v3, %v1135_v6  ;;  %v5690_v63 = vld [vmem:[#allocation91_spill] sm:$0xff]  ;;  %v5695_v32 = vld [vmem:[#allocation81_spill] sm:$0xff]  ;;  %v5697_v29 = vld [vmem:[#allocation82_spill] sm:$0xff] }
 0x151   :  { %v1186_v49 = vadd.f32 %v1162_v37, %v1136_v18  ;;  %v1187_v62 = vadd.f32 %v1163_v57, %v1137_v11  ;;  %v1190_v15 = vmul.f32 %v5683_v7, %v5682_v44  ;;  %v1191_v25 = vmul.f32 %v5683_v7, %v5684_v30  ;;  %v5691_v6 = vld [vmem:[#allocation79_spill] sm:$0xff]  ;;  %v5692_v11 = vld [vmem:[#allocation92_spill] sm:$0xff]  ;;  %v5702_v57 = vld [vmem:[#allocation97_spill] sm:$0xff] }
 0x152   :  { %v1192_v47 = vmul.f32 %v5683_v7, %v5685_v59  ;;  %v1193_v39 = vmul.f32 %v5683_v7, %v5686_v46  ;;  %v1194_v1 = vmul.f32 %v5683_v7, %v5687_v26  ;;  %v1195_v17 = vmul.f32 %v5683_v7, %v5688_v56  ;;  %v5699_v10 = vld [vmem:[#allocation83_spill] sm:$0xff]  ;;  %v5700_v50 = vld [vmem:[#allocation96_spill] sm:$0xff]  ;;  %v5703_v30 = vld [vmem:[#allocation86_spill] sm:$0xff] }
 0x153   :  { %v1196_v54 = vmul.f32 %v5683_v7, %v5689_v23  ;;  %v1197_v27 = vmul.f32 %v5683_v7, %v5690_v63  ;;  %v1198_v18 = vmul.f32 %v5683_v7, %v5691_v6  ;;  %v1199_v52 = vmul.f32 %v5683_v7, %v5692_v11  ;;  %v5701_v3 = vld [vmem:[#allocation84_spill] sm:$0xff]  ;;  %v5704_v46 = vld [vmem:[#allocation98_spill] sm:$0xff]  ;;  %v5706_v63 = vld [vmem:[#allocation99_spill] sm:$0xff] }
 0x154   :  { %v1200_v51 = vmul.f32 %v5683_v7, %v5693_v13  ;;  %v1201_v40 = vmul.f32 %v5683_v7, %v5694_v21  ;;  %v1202_v24 = vmul.f32 %v5683_v7, %v5695_v32  ;;  %v1203_v16 = vmul.f32 %v5683_v7, %v5696_v5  ;;  %v5705_v56 = vld [vmem:[#allocation90_spill] sm:$0xff] }
 0x155   :  { %v1204_v36 = vmul.f32 %v5683_v7, %v5697_v29  ;;  %v1205_v14 = vmul.f32 %v5683_v7, %v5698_v33  ;;  %v1206_v35 = vmul.f32 %v5683_v7, %v5699_v10  ;;  %v1207_v38 = vmul.f32 %v5683_v7, %v5700_v50 }
 0x156   :  { %v1208_v37 = vmul.f32 %v5683_v7, %v5701_v3  ;;  %v1209_v44 = vmul.f32 %v5683_v7, %v5702_v57  ;;  %v1210_v59 = vmul.f32 %v5683_v7, %v5703_v30  ;;  %v1211_v26 = vmul.f32 %v5683_v7, %v5704_v46  ;;  %v5717_v46 = vld [vmem:[#allocation37_spill] sm:$0xff] }
 0x157   :  { %v1212_v23 = vmul.f32 %v5683_v7, %v5705_v56  ;;  %v1213_v6 = vmul.f32 %v5683_v7, %v5706_v63  ;;  %v4266_v11 = vadd.f32 %v1190_v15, %v1164_v19  ;;  %v4268_v13 = vadd.f32 %v1191_v25, %v1165_v58  ;;  %v5719_v56 = vld [vmem:[#allocation35_spill] sm:$0xff]  ;;  %v5725_v15 = vld [vmem:[#allocation46_spill] sm:$0xff]  ;;  %v5727_v7 = vld [vmem:[#allocation44_spill] sm:$0xff] }
 0x158   :  { %v4270_v21 = vadd.f32 %v1192_v47, %v1166_v31  ;;  %v4272_v32 = vadd.f32 %v1193_v39, %v1167_v43  ;;  %v4274_v5 = vadd.f32 %v1194_v1, %v1168_v48  ;;  %v4276_v29 = vadd.f32 %v1195_v17, %v1169_v22 }
 0x159   :  { %v4278_v33 = vadd.f32 %v1196_v54, %v1170_v55  ;;  %v4280_v10 = vadd.f32 %v1197_v27, %v1171_v61  ;;  %v4282_v50 = vadd.f32 %v1198_v18, %v1172_v20  ;;  %v4284_v3 = vadd.f32 %v1199_v52, %v1173_v53  ;;  %v5745_v27 = vld [vmem:[#allocation42_spill] sm:$0xff] }
 0x15a   :  { %v4286_v19 = vadd.f32 %v1200_v51, %v1174_v34  ;;  %v4288_v58 = vadd.f32 %v1201_v40, %v1175_v4  ;;  %v4290_v31 = vadd.f32 %v1202_v24, %v1176_v45  ;;  %v4292_v43 = vadd.f32 %v1203_v16, %v1177_v9  ;;  %v5709_v16 = vld [vmem:[#allocation30_spill] sm:$0xff]  ;;  %v5723_v40 = vld [vmem:[#allocation36_spill] sm:$0xff] }
 0x15b   :  { %v4294_v48 = vadd.f32 %v1204_v36, %v1178_v12  ;;  %v4296_v22 = vadd.f32 %v1205_v14, %v1179_v42  ;;  %v4298_v55 = vadd.f32 %v1206_v35, %v1180_v28  ;;  %v4300_v61 = vadd.f32 %v1207_v38, %v1181_v60  ;;  %v5711_v14 = vld [vmem:[#allocation28_spill] sm:$0xff] }
 0x15c   :  { %v4302_v20 = vadd.f32 %v1208_v37, %v1182_v2  ;;  %v4304_v53 = vadd.f32 %v1209_v44, %v1183_v8  ;;  %v4306_v34 = vadd.f32 %v1210_v59, %v1184_v0  ;;  %v4308_v4 = vadd.f32 %v1211_v26, %v1185_v41  ;;  %v5713_v37 = vld [vmem:[#allocation31_spill] sm:$0xff]  ;;  %v5715_v44 = vld [vmem:[#allocation29_spill] sm:$0xff]  ;;  %v5735_v2 = vld [vmem:[#allocation54_spill] sm:$0xff] }
 0x15d   :  { %v4310_v45 = vadd.f32 %v1212_v23, %v1186_v49  ;;  %v4312_v9 = vadd.f32 %v1213_v6, %v1187_v62  ;;  %v5710_v36 = vmax.f32 %v5709_v16, 0.0  ;;  %v5712_v35 = vmax.f32 %v5711_v14, 0.0  ;;  %v5721_v6 = vld [vmem:[#allocation40_spill] sm:$0xff]  ;;  %v5731_v8 = vld [vmem:[#allocation45_spill] sm:$0xff] }
 0x15e   :  { %v5714_v57 = vmax.f32 %v5713_v37, 0.0  ;;  %v5716_v30 = vmax.f32 %v5715_v44, 0.0  ;;  %v5718_v26 = vmax.f32 %v5717_v46, 0.0  ;;  %v5720_v23 = vmax.f32 %v5719_v56, 0.0 }
 0x15f   :  { %5707 = vst [vmem:[#allocation120_spill] sm:$0xff] %v4310_v45  ;;  %5708 = vst [vmem:[#allocation85_spill] sm:$0xff] %v4312_v9  ;;  %v1264_v38 = vmax.f32 %v5712_v35, %v5710_v36  ;;  %v5722_v54 = vmax.f32 %v5721_v6, 0.0  ;;  %v5724_v17 = vmax.f32 %v5723_v40, 0.0  ;;  %v5726_v16 = vmax.f32 %v5725_v15, 0.0  ;;  %v5729_v35 = vld [vmem:[#allocation48_spill] sm:$0xff] }
 0x160   :  { %v1265_v59 = vmax.f32 %v5716_v30, %v5714_v57  ;;  %v1266_v63 = vmax.f32 %v5720_v23, %v5718_v26  ;;  %v5728_v14 = vmax.f32 %v5727_v7, 0.0  ;;  %v5730_v37 = vmax.f32 %v5729_v35, 0.0  ;;  %v5733_v30 = vld [vmem:[#allocation26_spill] sm:$0xff]  ;;  %v5736_v26 = vld [vmem:[#allocation27_spill] sm:$0xff]  ;;  %v5739_v40 = vld [vmem:[#allocation32_spill] sm:$0xff] }
 0x161   :  { %v1267_v24 = vmax.f32 %v5724_v17, %v5722_v54  ;;  %v5732_v44 = vmax.f32 %v5731_v8, 0.0  ;;  %v5734_v46 = vmax.f32 %v5733_v30, 0.0  ;;  %v5737_v23 = vmax.f32 %v5736_v26, 0.0  ;;  %v5738_v6 = vld [vmem:[#allocation74_spill] sm:$0xff]  ;;  %v5741_v15 = vld [vmem:[#allocation33_spill] sm:$0xff] }
 0x162   :  { %v1268_v36 = vmax.f32 %v5728_v14, %v5726_v16  ;;  %v5740_v17 = vmax.f32 %v5739_v40, 0.0  ;;  %v5742_v51 = vmax.f32 %v5741_v15, 0.0  ;;  %v5743_v16 = vld [vmem:[#allocation41_spill] sm:$0xff]  ;;  %v5746_v8 = vmax.f32 %v5745_v27, 0.0 }
 0x163   :  { %v1269_v57 = vmax.f32 %v5732_v44, %v5730_v37  ;;  %v1270_v56 = vmax.f32 %v5735_v2, %v5734_v46  ;;  %v1271_v18 = vmax.f32 %v5738_v6, %v5737_v23  ;;  %v5744_v14 = vmax.f32 %v5743_v16, 0.0  ;;  %v5747_v44 = vld [vmem:[#allocation49_spill] sm:$0xff]  ;;  %v5749_v2 = vld [vmem:[#allocation50_spill] sm:$0xff] }
 0x164   :  { %v1272_v54 = vmax.f32 %v1264_v38, %v5740_v17  ;;  %v1273_v7 = vmax.f32 %v1265_v59, %v5742_v51  ;;  %v1275_v37 = vmax.f32 %v1267_v24, %v5746_v8  ;;  %v5748_v30 = vmax.f32 %v5747_v44, 0.0 }
 0x165   :  { %v1274_v35 = vmax.f32 %v1266_v63, %v5744_v14  ;;  %v5750_v46 = vmax.f32 %v5749_v2, 0.0  ;;  %v1282_v47 = vrot.slane %v1270_v56, 1  ;;  %v1294_v23 = vrot.slane %v1270_v56, 2 }
 0x166   :  { %v1276_v52 = vmax.f32 %v1268_v36, %v5748_v30  ;;  %v1283_v6 = vrot.slane %v1272_v54, 1  ;;  %v1295_v38 = vrot.slane %v1272_v54, 2  ;;  %v1310_v16 = vrot.slane %v1271_v18, 2 }
 0x167   :  { %v1277_v26 = vmax.f32 %v1269_v57, %v5750_v46  ;;  %v1284_v40 = vrot.slane %v1274_v35, 1  ;;  %v1296_v17 = vrot.slane %v1274_v35, 2  ;;  %v1290_v51 = vmax.f32 %v1270_v56, %v1282_v47 }
 0x168   :  { %v1285_v15 = vrot.slane %v1276_v52, 1  ;;  %v1297_v59 = vrot.slane %v1276_v52, 2  ;;  %v1291_v63 = vmax.f32 %v1272_v54, %v1283_v6  ;;  %v1311_v27 = vrot.slane %v1273_v7, 2 }
 0x169   :  { %v1292_v14 = vmax.f32 %v1274_v35, %v1284_v40  ;;  %v1312_v24 = vrot.slane %v1275_v37, 2  ;;  %v1302_v44 = vmax.f32 %v1290_v51, %v1294_v23  ;;  %v1313_v36 = vrot.slane %v1277_v26, 2 }
 0x16a   :  { %v1293_v8 = vmax.f32 %v1276_v52, %v1285_v15  ;;  %v1318_v30 = vmax.f32 %v1290_v51, %v1310_v16  ;;  %v1303_v2 = vmax.f32 %v1291_v63, %v1295_v38  ;;  %v1319_v46 = vmax.f32 %v1291_v63, %v1311_v27 }
 0x16b   :  { %v1304_v57 = vmax.f32 %v1292_v14, %v1296_v17  ;;  %v1320_v1 = vmax.f32 %v1292_v14, %v1312_v24  ;;  %v1322_v41 = vrot.slane %v1271_v18, 1  ;;  %v1323_v62 = vrot.slane %v1273_v7, 1 }
 0x16c   :  { %v1305_v25 = vmax.f32 %v1293_v8, %v1297_v59  ;;  %v1321_v39 = vmax.f32 %v1293_v8, %v1313_v36  ;;  %v1324_v0 = vrot.slane %v1275_v37, 1  ;;  %v1325_v47 = vrot.slane %v1277_v26, 1 }
 0x16d   :  { %v1342_v56 = vrot.slane %v1302_v44, 7  ;;  %v1343_v49 = vrot.slane %v1303_v2, 7  ;;  %v1330_v54 = vmax.f32 %v1271_v18, %v1322_v41  ;;  %v1331_v35 = vmax.f32 %v1273_v7, %v1323_v62 }
 0x16e   :  { %v1344_v6 = vrot.slane %v1304_v57, 7  ;;  %v1345_v40 = vrot.slane %v1305_v25, 7  ;;  %v1332_v52 = vmax.f32 %v1275_v37, %v1324_v0  ;;  %v1333_v23 = vmax.f32 %v1277_v26, %v1325_v47 }
 0x16f   :  { %v1350_v15 = vrot.slane %v1302_v44, 1  ;;  %v1351_v51 = vrot.slane %v1303_v2, 1  ;;  %v1334_v38 = vmax.f32 %v1330_v54, %v1310_v16  ;;  %v1335_v17 = vmax.f32 %v1331_v35, %v1311_v27 }
 0x170   :  { %v1352_v63 = vrot.slane %v1304_v57, 1  ;;  %v1353_v14 = vrot.slane %v1305_v25, 1  ;;  %v1336_v59 = vmax.f32 %v1332_v52, %v1312_v24  ;;  %v1337_v8 = vmax.f32 %v1333_v23, %v1313_v36 }
 0x171   :  { %v1362_v42 = vrot.slane %v1318_v30, 3  ;;  %v1363_v60 = vrot.slane %v1319_v46, 3  ;;  %v1364_v12 = vrot.slane %v1320_v1, 3  ;;  %v1365_v28 = vrot.slane %v1321_v39, 3 }
 0x172   :  { %v1374_v9 = vrot.slane %v1334_v38, 5  ;;  %v1375_v45 = vrot.slane %v1335_v17, 5  ;;  %v1376_v41 = vrot.slane %v1336_v59, 5  ;;  %v1377_v62 = vrot.slane %v1337_v8, 5 }
 0x173   :  { %v1382_v18 = vsel %vm164_vm0, 0.0, %v1342_v56  ;;  %v1383_v0 = vsel %vm164_vm0, 0.0, %v1343_v49  ;;  %v1384_v7 = vsel %vm164_vm0, 0.0, %v1344_v6  ;;  %v1385_v37 = vsel %vm164_vm0, 0.0, %v1345_v40 }
 0x174   :  { %v1387_v25 = vsel %vm1386_vm2, %v1382_v18, %v1350_v15  ;;  %v1388_v26 = vsel %vm1386_vm2, %v1383_v0, %v1351_v51  ;;  %v1389_v39 = vsel %vm1386_vm2, %v1384_v7, %v1352_v63  ;;  %v1390_v1 = vsel %vm1386_vm2, %v1385_v37, %v1353_v14 }
 0x175   :  { %v1392_v16 = vsel %vm1391_vm3, %v1387_v25, %v1362_v42  ;;  %v1393_v27 = vsel %vm1391_vm3, %v1388_v26, %v1363_v60  ;;  %v1394_v49 = vsel %vm1391_vm3, %v1389_v39, %v1364_v12  ;;  %v1395_v24 = vsel %vm1391_vm3, %v1390_v1, %v1365_v28 }
 0x176   :  { %v5751_v44 = vmax.f32 %v4270_v21, 0.0  ;;  %v5752_v36 = vmax.f32 %v4266_v11, 0.0  ;;  %v5753_v2 = vmax.f32 %v4272_v32, 0.0  ;;  %v5754_v57 = vmax.f32 %v4268_v13, 0.0 }
 0x177   :  { %v5755_v47 = vmax.f32 %v4282_v50, 0.0  ;;  %v5756_v42 = vmax.f32 %v4278_v33, 0.0  ;;  %v4405_v12 = vsel %vm1396_vm4, %v1392_v16, %v1374_v9  ;;  %v4408_v28 = vsel %vm1396_vm4, %v1393_v27, %v1375_v45 }
 0x178   :  { %v1401_v30 = vmax.f32 %v5752_v36, %v5751_v44  ;;  %v1402_v46 = vmax.f32 %v5754_v57, %v5753_v2  ;;  %v4411_v21 = vsel %vm1396_vm4, %v1394_v49, %v1376_v41  ;;  %v4414_v11 = vsel %vm1396_vm4, %v1395_v24, %v1377_v62 }
 0x179   :  { %v1403_v60 = vmax.f32 %v5756_v42, %v5755_v47  ;;  %v5757_v13 = vmax.f32 %v4284_v3, 0.0  ;;  %v5758_v32 = vmax.f32 %v4280_v10, 0.0  ;;  %v5759_v33 = vmax.f32 %v4294_v48, 0.0 }
 0x17a   :  { %v5760_v56 = vmax.f32 %v4290_v31, 0.0  ;;  %v5761_v54 = vmax.f32 %v4296_v22, 0.0  ;;  %v5762_v45 = vmax.f32 %v4292_v43, 0.0  ;;  %v5763_v6 = vmax.f32 %v4306_v34, 0.0 }
 0x17b   :  { %v1404_v50 = vmax.f32 %v5758_v32, %v5757_v13  ;;  %v5764_v40 = vmax.f32 %v4302_v20, 0.0  ;;  %v5765_v3 = vmax.f32 %v4308_v4, 0.0  ;;  %v5766_v10 = vmax.f32 %v4304_v53, 0.0  ;;  %v5773_v53 = vld [vmem:[#allocation120_spill] sm:$0xff] }
 0x17c   :  { %v1405_v9 = vmax.f32 %v5760_v56, %v5759_v33  ;;  %v1406_v35 = vmax.f32 %v5762_v45, %v5761_v54  ;;  %v5767_v48 = vmax.f32 %v4274_v5, 0.0  ;;  %v5768_v31 = vmax.f32 %v4276_v29, 0.0  ;;  %v5775_v5 = vld [vmem:[#allocation85_spill] sm:$0xff] }
 0x17d   :  { %v1407_v52 = vmax.f32 %v5764_v40, %v5763_v6  ;;  %v1408_v23 = vmax.f32 %v5766_v10, %v5765_v3  ;;  %v5769_v22 = vmax.f32 %v4286_v19, 0.0  ;;  %v5770_v38 = vmax.f32 %v4288_v58, 0.0 }
 0x17e   :  { %v1409_v15 = vmax.f32 %v1401_v30, %v5767_v48  ;;  %v1410_v51 = vmax.f32 %v1402_v46, %v5768_v31  ;;  %v5771_v20 = vmax.f32 %v4298_v55, 0.0  ;;  %v5772_v4 = vmax.f32 %v4300_v61, 0.0 }
 0x17f   :  { %v1411_v43 = vmax.f32 %v1403_v60, %v5769_v22  ;;  %v1412_v34 = vmax.f32 %v1404_v50, %v5770_v38  ;;  %v5774_v14 = vmax.f32 %v5773_v53, 0.0  ;;  %v5776_v8 = vmax.f32 %v5775_v5, 0.0 }
 0x180   :  { %v1413_v17 = vmax.f32 %v1405_v9, %v5771_v20  ;;  %v1414_v63 = vmax.f32 %v1406_v35, %v5772_v4  ;;  %v1421_v29 = vrot.slane %v1409_v15, 1  ;;  %v1433_v18 = vrot.slane %v1409_v15, 2 }
 0x181   :  { %v1415_v59 = vmax.f32 %v1407_v52, %v5774_v14  ;;  %v1416_v41 = vmax.f32 %v1408_v23, %v5776_v8  ;;  %v1422_v62 = vrot.slane %v1411_v43, 1  ;;  %v1434_v7 = vrot.slane %v1411_v43, 2 }
 0x182   :  { %v1423_v19 = vrot.slane %v1413_v17, 1  ;;  %v1435_v58 = vrot.slane %v1413_v17, 2  ;;  %v1429_v37 = vmax.f32 %v1409_v15, %v1421_v29  ;;  %v1449_v26 = vrot.slane %v1410_v51, 2 }
 0x183   :  { %v1424_v0 = vrot.slane %v1415_v59, 1  ;;  %v1430_v25 = vmax.f32 %v1411_v43, %v1422_v62  ;;  %v1436_v55 = vrot.slane %v1415_v59, 2  ;;  %v1450_v1 = vrot.slane %v1412_v34, 2 }
 0x184   :  { %v1431_v39 = vmax.f32 %v1413_v17, %v1423_v19  ;;  %v1451_v16 = vrot.slane %v1414_v63, 2  ;;  %v1441_v27 = vmax.f32 %v1429_v37, %v1433_v18  ;;  %v1452_v24 = vrot.slane %v1416_v41, 2 }
 0x185   :  { %v1432_v61 = vmax.f32 %v1415_v59, %v1424_v0  ;;  %v1442_v49 = vmax.f32 %v1430_v25, %v1434_v7  ;;  %v1457_v44 = vmax.f32 %v1429_v37, %v1449_v26  ;;  %v1458_v2 = vmax.f32 %v1430_v25, %v1450_v1 }
 0x186   :  { %v1443_v36 = vmax.f32 %v1431_v39, %v1435_v58  ;;  %v1459_v57 = vmax.f32 %v1431_v39, %v1451_v16  ;;  %v1461_v47 = vrot.slane %v1410_v51, 1  ;;  %v1462_v42 = vrot.slane %v1412_v34, 1 }
 0x187   :  { %v1444_v30 = vmax.f32 %v1432_v61, %v1436_v55  ;;  %v1460_v46 = vmax.f32 %v1432_v61, %v1452_v24  ;;  %v1463_v60 = vrot.slane %v1414_v63, 1  ;;  %v1464_v13 = vrot.slane %v1416_v41, 1 }
 0x188   :  { %v1481_v32 = vrot.slane %v1441_v27, 7  ;;  %v1482_v50 = vrot.slane %v1442_v49, 7  ;;  %v1483_v33 = vrot.slane %v1443_v36, 7  ;;  %v1469_v56 = vmax.f32 %v1410_v51, %v1461_v47 }
 0x189   :  { %v1470_v9 = vmax.f32 %v1412_v34, %v1462_v42  ;;  %v1471_v54 = vmax.f32 %v1414_v63, %v1463_v60  ;;  %v1484_v45 = vrot.slane %v1444_v30, 7  ;;  %v1472_v35 = vmax.f32 %v1416_v41, %v1464_v13 }
 0x18a   :  { %v1489_v6 = vrot.slane %v1441_v27, 1  ;;  %v1490_v40 = vrot.slane %v1442_v49, 1  ;;  %v1491_v52 = vrot.slane %v1443_v36, 1  ;;  %v1473_v3 = vmax.f32 %v1469_v56, %v1449_v26 }
 0x18b   :  { %v1474_v10 = vmax.f32 %v1470_v9, %v1450_v1  ;;  %v1475_v23 = vmax.f32 %v1471_v54, %v1451_v16  ;;  %v1492_v48 = vrot.slane %v1444_v30, 1  ;;  %v1476_v15 = vmax.f32 %v1472_v35, %v1452_v24 }
 0x18c   :  { %v1501_v31 = vrot.slane %v1457_v44, 3  ;;  %v1502_v51 = vrot.slane %v1458_v2, 3  ;;  %v1503_v22 = vrot.slane %v1459_v57, 3  ;;  %v1504_v43 = vrot.slane %v1460_v46, 3 }
 0x18d   :  { %v1513_v38 = vrot.slane %v1473_v3, 5  ;;  %v1514_v34 = vrot.slane %v1474_v10, 5  ;;  %v1515_v20 = vrot.slane %v1475_v23, 5  ;;  %v1516_v17 = vrot.slane %v1476_v15, 5 }
 0x18e   :  { %v1521_v4 = vsel %vm164_vm0, 0.0, %v1481_v32  ;;  %v1522_v63 = vsel %vm164_vm0, 0.0, %v1482_v50  ;;  %v1523_v53 = vsel %vm164_vm0, 0.0, %v1483_v33  ;;  %v1524_v14 = vsel %vm164_vm0, 0.0, %v1484_v45 }
 0x18f   :  { %v1525_v59 = vsel %vm1386_vm2, %v1521_v4, %v1489_v6  ;;  %v1526_v5 = vsel %vm1386_vm2, %v1522_v63, %v1490_v40  ;;  %v1527_v8 = vsel %vm1386_vm2, %v1523_v53, %v1491_v52  ;;  %v1528_v41 = vsel %vm1386_vm2, %v1524_v14, %v1492_v48 }
 0x190   :  { %v1529_v29 = vsel %vm1391_vm3, %v1525_v59, %v1501_v31  ;;  %v1530_v62 = vsel %vm1391_vm3, %v1526_v5, %v1502_v51  ;;  %v1531_v18 = vsel %vm1391_vm3, %v1527_v8, %v1503_v22  ;;  %v1532_v19 = vsel %vm1391_vm3, %v1528_v41, %v1504_v43 }
 0x191   :  { %v4477_v0 = vsel %vm1396_vm4, %v1529_v29, %v1513_v38  ;;  %v4480_v7 = vsel %vm1396_vm4, %v1530_v62, %v1514_v34  ;;  %v4483_v58 = vsel %vm1396_vm4, %v1531_v18, %v1515_v20  ;;  %v4488_v37 = vsel %vm1396_vm4, %v1532_v19, %v1516_v17 }
 0x192   :  { %v1538_v25 = vstv %s4452_s25  ;;  %v1540_v55 = vstv %s4454_s0  ;;  %v1548_v26 = vstv %s4456_s26  ;;  %v1565_v24 = vstv %s4458_s27  ;;  %s4630_s25 = sld [smem:[#allocation9 + $0x1c]] }
 0x193   :  { %v1541_v39 = vmul.f32 0.0, %v1540_v55  ;;  %v1542_v61 = vmul.f32 %v1540_v55, %v4405_v12  ;;  %v1543_v1 = vmul.f32 %v1540_v55, %v4408_v28  ;;  %v1549_v16 = vmul.f32 0.0, %v1548_v26  ;;  %s4634_s0 = sld [smem:[#allocation9 + $0x1d]] }
 0x194   :  { %v1550_v27 = vmul.f32 %v1548_v26, %v4405_v12  ;;  %v1551_v49 = vmul.f32 %v1548_v26, %v4408_v28  ;;  %v1582_v44 = vstv %s4460_s3  ;;  %v1566_v42 = vmul.f32 0.0, %v1565_v24  ;;  %s4638_s26 = sld [smem:[#allocation9 + $0x1e]] }
 0x195   :  { %v1544_v36 = vadd.f32 %v1541_v39, %v1538_v25  ;;  %v1545_v30 = vadd.f32 %v1542_v61, %v1538_v25  ;;  %v1546_v2 = vadd.f32 %v1543_v1, %v1538_v25  ;;  %v1555_v57 = vrot.slane %v1549_v16, 1  ;;  %s4641_s27 = sld [smem:[#allocation9 + $0x1f]] }
 0x196   :  { %v1556_v46 = vrot.slane %v1550_v27, 1  ;;  %v1557_v47 = vrot.slane %v1551_v49, 1  ;;  %v1567_v60 = vmul.f32 %v1565_v24, %v4405_v12  ;;  %v1568_v32 = vmul.f32 %v1565_v24, %v4408_v28  ;;  %s4655_s3 = sld [smem:[#allocation9 + $0x20]] }
 0x197   :  { %v1561_v13 = vadd.f32 %v1555_v57, %v1544_v36  ;;  %v1583_v50 = vmul.f32 %v1582_v44, %v4405_v12  ;;  %v1584_v33 = vmul.f32 %v1582_v44, %v4408_v28  ;;  %v1572_v54 = vrot.slane %v1566_v42, 2 }
 0x198   :  { %v1562_v56 = vadd.f32 %v1556_v46, %v1545_v30  ;;  %v1563_v9 = vadd.f32 %v1557_v47, %v1546_v2  ;;  %v1573_v45 = vrot.slane %v1567_v60, 2  ;;  %v1574_v35 = vrot.slane %v1568_v32, 2 }
 0x199   :  { %v1585_v6 = vmul.f32 %v1582_v44, %v4411_v21  ;;  %v1590_v40 = vstv %s4473_s5  ;;  %v1607_v52 = vstv %s4485_s28  ;;  %v1578_v3 = vadd.f32 %v1572_v54, %v1561_v13  ;;  %s4661_s5 = sld [smem:[#allocation9 + $0x21]] }
 0x19a   :  { %v1579_v10 = vadd.f32 %v1573_v45, %v1562_v56  ;;  %v1591_v23 = vmul.f32 %v1590_v40, %v4405_v12  ;;  %v1592_v48 = vmul.f32 %v1590_v40, %v4408_v28  ;;  %v1580_v15 = vadd.f32 %v1574_v35, %v1563_v9  ;;  %s4667_s28 = sld [smem:[#allocation9 + $0x22]] }
 0x19b   :  { %v1593_v31 = vmul.f32 %v1590_v40, %v4411_v21  ;;  %v1608_v51 = vmul.f32 %v1607_v52, %v4405_v12  ;;  %v1609_v22 = vmul.f32 %v1607_v52, %v4408_v28  ;;  %v1586_v43 = vadd.f32 %v1583_v50, %v1578_v3 }
 0x19c   :  { %v1587_v38 = vadd.f32 %v1584_v33, %v1579_v10  ;;  %v1597_v34 = vrot.slane %v1591_v23, 1  ;;  %v1598_v20 = vrot.slane %v1592_v48, 1  ;;  %v1588_v17 = vadd.f32 %v1585_v6, %v1580_v15 }
 0x19d   :  { %v1599_v4 = vrot.slane %v1593_v31, 1  ;;  %v1610_v63 = vmul.f32 %v1607_v52, %v4411_v21  ;;  %v1614_v53 = vrot.slane %v1608_v51, 2  ;;  %v1615_v5 = vrot.slane %v1609_v22, 2 }
 0x19e   :  { %v1603_v14 = vadd.f32 %v1597_v34, %v1586_v43  ;;  %v1604_v59 = vadd.f32 %v1598_v20, %v1587_v38  ;;  %v1624_v8 = vstv %s4500_s29  ;;  %v1632_v26 = vstv %s4505_s30  ;;  %s4671_s29 = sld [smem:[#allocation9 + $0x23]] }
 0x19f   :  { %v1605_v41 = vadd.f32 %v1599_v4, %v1588_v17  ;;  %v1616_v29 = vrot.slane %v1610_v63, 2  ;;  %v1625_v62 = vmul.f32 %v1624_v8, %v4408_v28  ;;  %v1626_v18 = vmul.f32 %v1624_v8, %v4411_v21  ;;  %s4679_s30 = sld [smem:[#allocation10 + $0x2]] }
 0x1a0   :  { %v1620_v19 = vadd.f32 %v1614_v53, %v1603_v14  ;;  %v1621_v25 = vadd.f32 %v1615_v5, %v1604_v59  ;;  %v1627_v55 = vmul.f32 %v1624_v8, %v4414_v11  ;;  %v1633_v61 = vmul.f32 %v1632_v26, %v4408_v28 }
 0x1a1   :  { %v1622_v39 = vadd.f32 %v1616_v29, %v1605_v41  ;;  %v1634_v1 = vmul.f32 %v1632_v26, %v4411_v21  ;;  %v1635_v16 = vmul.f32 %v1632_v26, %v4414_v11  ;;  %v1649_v24 = vstv %s4510_s8  ;;  %s4683_s8 = sld [smem:[#allocation9 + $0x24]] }
 0x1a2   :  { %v1628_v27 = vadd.f32 %v1625_v62, %v1620_v19  ;;  %v1629_v49 = vadd.f32 %v1626_v18, %v1621_v25  ;;  %v1666_v44 = vstv %s4514_s6  ;;  %v1639_v30 = vrot.slane %v1633_v61, 1  ;;  %s4688_s6 = sld [smem:[#allocation9 + $0x25]] }
 0x1a3   :  { %v1630_v36 = vadd.f32 %v1627_v55, %v1622_v39  ;;  %v1640_v2 = vrot.slane %v1634_v1, 1  ;;  %v1641_v57 = vrot.slane %v1635_v16, 1  ;;  %v1650_v46 = vmul.f32 %v1649_v24, %v4408_v28 }
 0x1a4   :  { %v1651_v47 = vmul.f32 %v1649_v24, %v4411_v21  ;;  %v1652_v42 = vmul.f32 %v1649_v24, %v4414_v11  ;;  %v1667_v60 = vmul.f32 0.0, %v1666_v44  ;;  %v1645_v13 = vadd.f32 %v1639_v30, %v1628_v27 }
 0x1a5   :  { %v1646_v32 = vadd.f32 %v1640_v2, %v1629_v49  ;;  %v1647_v50 = vadd.f32 %v1641_v57, %v1630_v36  ;;  %v1668_v33 = vmul.f32 %v1666_v44, %v4477_v0  ;;  %v1656_v56 = vrot.slane %v1650_v46, 2 }
 0x1a6   :  { %v1657_v9 = vrot.slane %v1651_v47, 2  ;;  %v1658_v54 = vrot.slane %v1652_v42, 2  ;;  %v1669_v45 = vmul.f32 %v1666_v44, %v4480_v7  ;;  %v1674_v35 = vstv %s4519_s9  ;;  %s4698_s9 = sld [smem:[#allocation9 + $0x26]] }
 0x1a7   :  { %v1691_v6 = vstv %s4522_s2  ;;  %v1708_v40 = vstv %s4525_s4  ;;  %v1716_v52 = vstv %s4529_s10  ;;  %v1662_v3 = vadd.f32 %v1656_v56, %v1645_v13  ;;  %s4700_s2 = sld [smem:[#allocation9 + $0x27]] }
 0x1a8   :  { %v1663_v10 = vadd.f32 %v1657_v9, %v1646_v32  ;;  %v1664_v23 = vadd.f32 %v1658_v54, %v1647_v50  ;;  %v1675_v48 = vmul.f32 0.0, %v1674_v35  ;;  %v1676_v15 = vmul.f32 %v1674_v35, %v4477_v0  ;;  %s4707_s4 = sld [smem:[#allocation9 + $0x28]] }
 0x1a9   :  { %v1677_v31 = vmul.f32 %v1674_v35, %v4480_v7  ;;  %v1692_v51 = vmul.f32 0.0, %v1691_v6  ;;  %v1693_v22 = vmul.f32 %v1691_v6, %v4477_v0  ;;  %v1670_v43 = vadd.f32 %v1667_v60, %v1662_v3  ;;  %s4711_s10 = sld [smem:[#allocation9 + $0x29]] }
 0x1aa   :  { %v1671_v38 = vadd.f32 %v1668_v33, %v1663_v10  ;;  %v1672_v34 = vadd.f32 %v1669_v45, %v1664_v23  ;;  %v1681_v20 = vrot.slane %v1675_v48, 1  ;;  %v1682_v17 = vrot.slane %v1676_v15, 1 }
 0x1ab   :  { %v1683_v4 = vrot.slane %v1677_v31, 1  ;;  %v1694_v63 = vmul.f32 %v1691_v6, %v4480_v7  ;;  %v1698_v53 = vrot.slane %v1692_v51, 2  ;;  %v1699_v59 = vrot.slane %v1693_v22, 2 }
 0x1ac   :  { %v1687_v14 = vadd.f32 %v1681_v20, %v1670_v43  ;;  %v1709_v5 = vmul.f32 %v1708_v40, %v4477_v0  ;;  %v1710_v8 = vmul.f32 %v1708_v40, %v4480_v7  ;;  %v1688_v41 = vadd.f32 %v1682_v17, %v1671_v38 }
 0x1ad   :  { %v1689_v29 = vadd.f32 %v1683_v4, %v1672_v34  ;;  %v1700_v62 = vrot.slane %v1694_v63, 2  ;;  %v1711_v18 = vmul.f32 %v1708_v40, %v4483_v58  ;;  %v1717_v25 = vmul.f32 %v1716_v52, %v4477_v0 }
 0x1ae   :  { %v1704_v19 = vadd.f32 %v1698_v53, %v1687_v14  ;;  %v1718_v55 = vmul.f32 %v1716_v52, %v4480_v7  ;;  %v1719_v26 = vmul.f32 %v1716_v52, %v4483_v58  ;;  %v1705_v39 = vadd.f32 %v1699_v59, %v1688_v41 }
 0x1af   :  { %v1706_v61 = vadd.f32 %v1700_v62, %v1689_v29  ;;  %v1733_v1 = vstv %s4543_s11  ;;  %v1750_v16 = vstv %s4549_s12  ;;  %v1723_v49 = vrot.slane %v1717_v25, 1  ;;  %s4717_s11 = sld [smem:[#allocation9 + $0x2a]] }
 0x1b0   :  { %v1712_v27 = vadd.f32 %v1709_v5, %v1704_v19  ;;  %v1724_v24 = vrot.slane %v1718_v55, 1  ;;  %v1725_v44 = vrot.slane %v1719_v26, 1  ;;  %v1713_v36 = vadd.f32 %v1710_v8, %v1705_v39  ;;  %s4723_s12 = sld [smem:[#allocation9 + $0x2b]] }
 0x1b1   :  { %v1714_v30 = vadd.f32 %v1711_v18, %v1706_v61  ;;  %v1734_v2 = vmul.f32 %v1733_v1, %v4477_v0  ;;  %v1735_v57 = vmul.f32 %v1733_v1, %v4480_v7  ;;  %v1736_v47 = vmul.f32 %v1733_v1, %v4483_v58 }
 0x1b2   :  { %v1729_v46 = vadd.f32 %v1723_v49, %v1712_v27  ;;  %v1751_v42 = vmul.f32 %v1750_v16, %v4480_v7  ;;  %v1752_v60 = vmul.f32 %v1750_v16, %v4483_v58  ;;  %v1730_v13 = vadd.f32 %v1724_v24, %v1713_v36 }
 0x1b3   :  { %v1731_v32 = vadd.f32 %v1725_v44, %v1714_v30  ;;  %v1740_v50 = vrot.slane %v1734_v2, 2  ;;  %v1741_v33 = vrot.slane %v1735_v57, 2  ;;  %v1742_v56 = vrot.slane %v1736_v47, 2 }
 0x1b4   :  { %v1753_v9 = vmul.f32 %v1750_v16, %v4488_v37  ;;  %v1758_v54 = vstv %s4555_s13  ;;  %v1775_v45 = vstv %s4559_s14  ;;  %v1804_v53 = vstv %s4567_s15  ;;  %s4734_s13 = sld [smem:[#allocation9 + $0x2c]] }
 0x1b5   :  { %v1746_v35 = vadd.f32 %v1740_v50, %v1729_v46  ;;  %v1747_v6 = vadd.f32 %v1741_v33, %v1730_v13  ;;  %v1759_v40 = vmul.f32 %v1758_v54, %v4480_v7  ;;  %v1760_v52 = vmul.f32 %v1758_v54, %v4483_v58  ;;  %s4739_s14 = sld [smem:[#allocation9 + $0x2d]] }
 0x1b6   :  { %v1748_v3 = vadd.f32 %v1742_v56, %v1731_v32  ;;  %v1761_v10 = vmul.f32 %v1758_v54, %v4488_v37  ;;  %v1776_v23 = vmul.f32 %v1775_v45, %v4480_v7  ;;  %v1777_v48 = vmul.f32 %v1775_v45, %v4483_v58  ;;  %s4744_s15 = sld [smem:[#allocation9 + $0x2e]] }
 0x1b7   :  { %v1754_v15 = vadd.f32 %v1751_v42, %v1746_v35  ;;  %v1755_v31 = vadd.f32 %v1752_v60, %v1747_v6  ;;  %v1765_v51 = vrot.slane %v1759_v40, 1  ;;  %v1766_v22 = vrot.slane %v1760_v52, 1 }
 0x1b8   :  { %v1756_v43 = vadd.f32 %v1753_v9, %v1748_v3  ;;  %v1767_v38 = vrot.slane %v1761_v10, 1  ;;  %v1778_v34 = vmul.f32 %v1775_v45, %v4488_v37  ;;  %v1782_v20 = vrot.slane %v1776_v23, 2 }
 0x1b9   :  { %v1771_v17 = vadd.f32 %v1765_v51, %v1754_v15  ;;  %v1772_v4 = vadd.f32 %v1766_v22, %v1755_v31  ;;  %v1783_v63 = vrot.slane %v1777_v48, 2  ;;  %v1806_v5 = vstv %s4571_s16  ;;  %s4748_s16 = sld [smem:[#allocation9 + $0x2f]] }
 0x1ba   :  { %v1773_v14 = vadd.f32 %v1767_v38, %v1756_v43  ;;  %v1784_v59 = vrot.slane %v1778_v34, 2  ;;  %v1814_v8 = vstv %s4576_s17  ;;  %v1807_v62 = vmul.f32 0.0, %v1806_v5  ;;  %s4752_s17 = sld [smem:[#allocation9 + $0x30]] }
 0x1bb   :  { %v1788_v41 = vadd.f32 %v1782_v20, %v1771_v17  ;;  %v1789_v29 = vadd.f32 %v1783_v63, %v1772_v4  ;;  %v1808_v18 = vmul.f32 %v1806_v5, %v4405_v12  ;;  %v1809_v25 = vmul.f32 %v1806_v5, %v4408_v28 }
 0x1bc   :  { %v1790_v19 = vadd.f32 %v1784_v59, %v1773_v14  ;;  %v1815_v55 = vmul.f32 0.0, %v1814_v8  ;;  %v1816_v26 = vmul.f32 %v1814_v8, %v4405_v12  ;;  %v1810_v1 = vadd.f32 %v1807_v62, %v1804_v53 }
 0x1bd   :  { %v1791_v39 = vmax.f32 %v1788_v41, 0.0  ;;  %v1792_v61 = vmax.f32 %v1789_v29, 0.0  ;;  %v1811_v16 = vadd.f32 %v1808_v18, %v1804_v53  ;;  %v1812_v49 = vadd.f32 %v1809_v25, %v1804_v53 }
 0x1be   :  { %v1793_v27 = vmax.f32 %v1790_v19, 0.0  ;;  %v1817_v24 = vmul.f32 %v1814_v8, %v4408_v28  ;;  %v1821_v44 = vrot.slane %v1815_v55, 1  ;;  %v1822_v30 = vrot.slane %v1816_v26, 1 }
 0x1bf   :  { %v1794_v36 = vmax.f32 %v1791_v39, %v1792_v61  ;;  %v1831_v2 = vstv %s4586_s18  ;;  %v1848_v57 = vstv %s4588_s19  ;;  %v1856_v10 = vstv %s4595_s1  ;;  %s4755_s18 = sld [smem:[#allocation9 + $0x31]] }
 0x1c0   :  { %v1823_v46 = vrot.slane %v1817_v24, 1  ;;  %v1827_v47 = vadd.f32 %v1821_v44, %v1810_v1  ;;  %v1832_v42 = vmul.f32 0.0, %v1831_v2  ;;  %v1833_v60 = vmul.f32 %v1831_v2, %v4405_v12  ;;  %s4769_s19 = sld [smem:[#allocation9 + $0x32]] }
 0x1c1   :  { %v4607_v13 = vmax.f32 %v1794_v36, %v1793_v27  ;;  %v1828_v32 = vadd.f32 %v1822_v30, %v1811_v16  ;;  %v1834_v50 = vmul.f32 %v1831_v2, %v4408_v28  ;;  %v1849_v33 = vmul.f32 %v1848_v57, %v4405_v12  ;;  %s4775_s1 = sld [smem:[#allocation9 + $0x33]] }
 0x1c2   :  { %v1829_v56 = vadd.f32 %v1823_v46, %v1812_v49  ;;  %v1838_v9 = vrot.slane %v1832_v42, 2  ;;  %v1839_v54 = vrot.slane %v1833_v60, 2  ;;  %v1850_v45 = vmul.f32 %v1848_v57, %v4408_v28 }
 0x1c3   :  { %v1797_v35 = vrot.slane %v4607_v13, 1  ;;  %v1840_v6 = vrot.slane %v1834_v50, 2  ;;  %v1851_v40 = vmul.f32 %v1848_v57, %v4411_v21  ;;  %v1873_v23 = vstv %s4599_s20  ;;  %s4781_s20 = sld [smem:[#allocation9 + $0x34]] }
 0x1c4   :  { %v1844_v52 = vadd.f32 %v1838_v9, %v1827_v47  ;;  %v1845_v3 = vadd.f32 %v1839_v54, %v1828_v32  ;;  %v1800_v48 = vrot.slane %v4607_v13, 2  ;;  %v1857_v31 = vmul.f32 %v1856_v10, %v4405_v12 }
 0x1c5   :  { %v1846_v15 = vadd.f32 %v1840_v6, %v1829_v56  ;;  %v1858_v51 = vmul.f32 %v1856_v10, %v4408_v28  ;;  %v1859_v38 = vmul.f32 %v1856_v10, %v4411_v21  ;;  %v1874_v34 = vmul.f32 %v1873_v23, %v4405_v12 }
 0x1c6   :  { %v1852_v22 = vadd.f32 %v1849_v33, %v1844_v52  ;;  %v1853_v43 = vadd.f32 %v1850_v45, %v1845_v3  ;;  %v4628_v20 = vmax.f32 %v4607_v13, %v1797_v35  ;;  %v1863_v4 = vrot.slane %v1857_v31, 1 }
 0x1c7   :  { %v1854_v17 = vadd.f32 %v1851_v40, %v1846_v15  ;;  %v1864_v63 = vrot.slane %v1858_v51, 1  ;;  %v1865_v53 = vrot.slane %v1859_v38, 1  ;;  %v1875_v14 = vmul.f32 %v1873_v23, %v4408_v28 }
 0x1c8   :  { %v1876_v59 = vmul.f32 %v1873_v23, %v4411_v21  ;;  %v1880_v5 = vrot.slane %v1874_v34, 2  ;;  %v1869_v8 = vadd.f32 %v1863_v4, %v1852_v22  ;;  %v1890_v29 = vstv %s4605_s21  ;;  %s4785_s21 = sld [smem:[#allocation9 + $0x35]] }
 0x1c9   :  { %v1870_v41 = vadd.f32 %v1864_v63, %v1853_v43  ;;  %v1898_v62 = vstv %s4611_s22  ;;  %v1871_v18 = vadd.f32 %v1865_v53, %v1854_v17  ;;  %v1881_v19 = vrot.slane %v1875_v14, 2  ;;  %s4793_s22 = sld [smem:[#allocation10 + $0x3]] }
 0x1ca   :  { %v1882_v25 = vrot.slane %v1876_v59, 2  ;;  %v1891_v55 = vmul.f32 %v1890_v29, %v4408_v28  ;;  %v1886_v26 = vadd.f32 %v1880_v5, %v1869_v8  ;;  %v1892_v39 = vmul.f32 %v1890_v29, %v4411_v21 }
 0x1cb   :  { %v1893_v61 = vmul.f32 %v1890_v29, %v4414_v11  ;;  %v1899_v1 = vmul.f32 %v1898_v62, %v4408_v28  ;;  %v1887_v16 = vadd.f32 %v1881_v19, %v1870_v41  ;;  %v1900_v49 = vmul.f32 %v1898_v62, %v4411_v21 }
 0x1cc   :  { %v1888_v27 = vadd.f32 %v1882_v25, %v1871_v18  ;;  %v1901_v24 = vmul.f32 %v1898_v62, %v4414_v11  ;;  %v1894_v44 = vadd.f32 %v1891_v55, %v1886_v26  ;;  %v1915_v30 = vstv %s4618_s23  ;;  %s4797_s23 = sld [smem:[#allocation9 + $0x36]] }
 0x1cd   :  { %v1905_v36 = vrot.slane %v1899_v1, 1  ;;  %v1932_v2 = vstv %s4623_s24  ;;  %v1895_v57 = vadd.f32 %v1892_v39, %v1887_v16  ;;  %v1906_v47 = vrot.slane %v1900_v49, 1  ;;  %s4802_s24 = sld [smem:[#allocation9 + $0x37]] }
 0x1ce   :  { %v1896_v46 = vadd.f32 %v1893_v61, %v1888_v27  ;;  %v1907_v42 = vrot.slane %v1901_v24, 1  ;;  %v1916_v32 = vmul.f32 %v1915_v30, %v4408_v28  ;;  %v1917_v50 = vmul.f32 %v1915_v30, %v4411_v21 }
 0x1cf   :  { %v1911_v60 = vadd.f32 %v1905_v36, %v1894_v44  ;;  %v1918_v33 = vmul.f32 %v1915_v30, %v4414_v11  ;;  %v1912_v56 = vadd.f32 %v1906_v47, %v1895_v57  ;;  %v1933_v54 = vmul.f32 0.0, %v1932_v2 }
 0x1d0   :  { %v1913_v9 = vadd.f32 %v1907_v42, %v1896_v46  ;;  %v1934_v45 = vmul.f32 %v1932_v2, %v4477_v0  ;;  %v1922_v35 = vrot.slane %v1916_v32, 2  ;;  %v1923_v6 = vrot.slane %v1917_v50, 2 }
 0x1d1   :  { %v1924_v40 = vrot.slane %v1918_v33, 2  ;;  %v1935_v52 = vmul.f32 %v1932_v2, %v4480_v7  ;;  %v1940_v3 = vstv %s4630_s25  ;;  %v1957_v10 = vstv %s4634_s0  ;;  %s4812_s25 = sld [smem:[#allocation9 + $0x38]] }
 0x1d2   :  { %v1974_v23 = vstv %s4638_s26  ;;  %v1982_v15 = vstv %s4641_s27  ;;  %v1928_v31 = vadd.f32 %v1922_v35, %v1911_v60  ;;  %v1929_v51 = vadd.f32 %v1923_v6, %v1912_v56  ;;  %s4814_s0 = sld [smem:[#allocation9 + $0x39]] }
 0x1d3   :  { %v1930_v22 = vadd.f32 %v1924_v40, %v1913_v9  ;;  %v1941_v43 = vmul.f32 0.0, %v1940_v3  ;;  %v1942_v38 = vmul.f32 %v1940_v3, %v4477_v0  ;;  %v1943_v34 = vmul.f32 %v1940_v3, %v4480_v7  ;;  %s4821_s26 = sld [smem:[#allocation9 + $0x3a]] }
 0x1d4   :  { %v1958_v17 = vmul.f32 0.0, %v1957_v10  ;;  %v1959_v4 = vmul.f32 %v1957_v10, %v4477_v0  ;;  %v1936_v63 = vadd.f32 %v1933_v54, %v1928_v31  ;;  %v1937_v53 = vadd.f32 %v1934_v45, %v1929_v51  ;;  %s4825_s27 = sld [smem:[#allocation9 + $0x3b]] }
 0x1d5   :  { %v1938_v14 = vadd.f32 %v1935_v52, %v1930_v22  ;;  %v1947_v59 = vrot.slane %v1941_v43, 1  ;;  %v1948_v5 = vrot.slane %v1942_v38, 1  ;;  %v1949_v8 = vrot.slane %v1943_v34, 1 }
 0x1d6   :  { %v1960_v41 = vmul.f32 %v1957_v10, %v4480_v7  ;;  %v1964_v29 = vrot.slane %v1958_v17, 2  ;;  %v1965_v18 = vrot.slane %v1959_v4, 2  ;;  %v1975_v19 = vmul.f32 %v1974_v23, %v4477_v0 }
 0x1d7   :  { %v1953_v62 = vadd.f32 %v1947_v59, %v1936_v63  ;;  %v1976_v25 = vmul.f32 %v1974_v23, %v4480_v7  ;;  %v1954_v55 = vadd.f32 %v1948_v5, %v1937_v53  ;;  %v1955_v26 = vadd.f32 %v1949_v8, %v1938_v14 }
 0x1d8   :  { %v1966_v39 = vrot.slane %v1960_v41, 2  ;;  %v1977_v61 = vmul.f32 %v1974_v23, %v4483_v58  ;;  %v1983_v16 = vmul.f32 %v1982_v15, %v4477_v0  ;;  %v1984_v27 = vmul.f32 %v1982_v15, %v4480_v7 }
 0x1d9   :  { %v1970_v1 = vadd.f32 %v1964_v29, %v1953_v62  ;;  %v1985_v49 = vmul.f32 %v1982_v15, %v4483_v58  ;;  %v1971_v24 = vadd.f32 %v1965_v18, %v1954_v55  ;;  %v1999_v36 = vstv %s4655_s3  ;;  %s4831_s3 = sld [smem:[#allocation9 + $0x3c]] }
 0x1da   :  { %v1972_v44 = vadd.f32 %v1966_v39, %v1955_v26  ;;  %v2016_v30 = vstv %s4661_s5  ;;  %v1989_v57 = vrot.slane %v1983_v16, 1  ;;  %v1990_v46 = vrot.slane %v1984_v27, 1  ;;  %s4837_s5 = sld [smem:[#allocation9 + $0x3d]] }
 0x1db   :  { %v1978_v2 = vadd.f32 %v1975_v19, %v1970_v1  ;;  %v1991_v47 = vrot.slane %v1985_v49, 1  ;;  %v1979_v42 = vadd.f32 %v1976_v25, %v1971_v24  ;;  %v2000_v32 = vmul.f32 %v1999_v36, %v4477_v0 }
 0x1dc   :  { %v1980_v60 = vadd.f32 %v1977_v61, %v1972_v44  ;;  %v2001_v50 = vmul.f32 %v1999_v36, %v4480_v7  ;;  %v2002_v56 = vmul.f32 %v1999_v36, %v4483_v58  ;;  %v2017_v9 = vmul.f32 %v2016_v30, %v4480_v7 }
 0x1dd   :  { %v1995_v33 = vadd.f32 %v1989_v57, %v1978_v2  ;;  %v2018_v54 = vmul.f32 %v2016_v30, %v4483_v58  ;;  %v1996_v45 = vadd.f32 %v1990_v46, %v1979_v42  ;;  %v2006_v6 = vrot.slane %v2000_v32, 2 }
 0x1de   :  { %v1997_v35 = vadd.f32 %v1991_v47, %v1980_v60  ;;  %v2007_v40 = vrot.slane %v2001_v50, 2  ;;  %v2008_v52 = vrot.slane %v2002_v56, 2  ;;  %v2019_v3 = vmul.f32 %v2016_v30, %v4488_v37 }
 0x1df   :  { %v2024_v10 = vstv %s4667_s28  ;;  %v2041_v23 = vstv %s4671_s29  ;;  %v2012_v15 = vadd.f32 %v2006_v6, %v1995_v33  ;;  %v2070_v19 = vstv %s4679_s30  ;;  %s4849_s28 = sld [smem:[#allocation9 + $0x3e]] }
 0x1e0   :  { %v2013_v31 = vadd.f32 %v2007_v40, %v1996_v45  ;;  %v2025_v51 = vmul.f32 %v2024_v10, %v4480_v7  ;;  %v2026_v22 = vmul.f32 %v2024_v10, %v4483_v58  ;;  %v2014_v43 = vadd.f32 %v2008_v52, %v1997_v35  ;;  %s4854_s29 = sld [smem:[#allocation9 + $0x3f]] }
 0x1e1   :  { %v2027_v38 = vmul.f32 %v2024_v10, %v4488_v37  ;;  %v2042_v34 = vmul.f32 %v2041_v23, %v4480_v7  ;;  %v2043_v17 = vmul.f32 %v2041_v23, %v4483_v58  ;;  %v2020_v4 = vadd.f32 %v2017_v9, %v2012_v15  ;;  %s4861_s30 = sld [smem:[#allocation9 + $0x40]] }
 0x1e2   :  { %v2021_v63 = vadd.f32 %v2018_v54, %v2013_v31  ;;  %v2031_v53 = vrot.slane %v2025_v51, 1  ;;  %v2032_v14 = vrot.slane %v2026_v22, 1  ;;  %v2022_v59 = vadd.f32 %v2019_v3, %v2014_v43 }
 0x1e3   :  { %v2033_v5 = vrot.slane %v2027_v38, 1  ;;  %v2044_v8 = vmul.f32 %v2041_v23, %v4488_v37  ;;  %v2048_v41 = vrot.slane %v2042_v34, 2  ;;  %v2049_v18 = vrot.slane %v2043_v17, 2 }
 0x1e4   :  { %v2037_v29 = vadd.f32 %v2031_v53, %v2020_v4  ;;  %v2038_v62 = vadd.f32 %v2032_v14, %v2021_v63  ;;  %v2072_v26 = vstv %s4683_s8  ;;  %v2080_v39 = vstv %s4688_s6  ;;  %s4865_s8 = sld [smem:[#allocation9 + $0x41]] }
 0x1e5   :  { %v2039_v25 = vadd.f32 %v2033_v5, %v2022_v59  ;;  %v2050_v55 = vrot.slane %v2044_v8, 2  ;;  %v2073_v16 = vmul.f32 0.0, %v2072_v26  ;;  %v2074_v27 = vmul.f32 %v2072_v26, %v4405_v12  ;;  %s4869_s6 = sld [smem:[#allocation9 + $0x42]] }
 0x1e6   :  { %v2054_v61 = vadd.f32 %v2048_v41, %v2037_v29  ;;  %v2055_v1 = vadd.f32 %v2049_v18, %v2038_v62  ;;  %v2075_v24 = vmul.f32 %v2072_v26, %v4408_v28  ;;  %v2081_v44 = vmul.f32 0.0, %v2080_v39 }
 0x1e7   :  { %v2056_v49 = vadd.f32 %v2050_v55, %v2039_v25  ;;  %v2082_v36 = vmul.f32 %v2080_v39, %v4405_v12  ;;  %v2076_v57 = vadd.f32 %v2073_v16, %v2070_v19  ;;  %v2077_v46 = vadd.f32 %v2074_v27, %v2070_v19 }
 0x1e8   :  { %v2057_v30 = vmax.f32 %v2054_v61, 0.0  ;;  %v2058_v2 = vmax.f32 %v2055_v1, 0.0  ;;  %v2078_v42 = vadd.f32 %v2075_v24, %v2070_v19  ;;  %v2083_v60 = vmul.f32 %v2080_v39, %v4408_v28 }
 0x1e9   :  { %v2059_v47 = vmax.f32 %v2056_v49, 0.0  ;;  %v2087_v32 = vrot.slane %v2081_v44, 1  ;;  %v2088_v33 = vrot.slane %v2082_v36, 1  ;;  %v2097_v56 = vstv %s4698_s9  ;;  %s4872_s9 = sld [smem:[#allocation9 + $0x43]] }
 0x1ea   :  { %v2060_v50 = vmax.f32 %v2057_v30, %v2058_v2  ;;  %v2114_v9 = vstv %s4700_s2  ;;  %v2089_v54 = vrot.slane %v2083_v60, 1  ;;  %v2098_v35 = vmul.f32 0.0, %v2097_v56  ;;  %s4886_s2 = sld [smem:[#allocation9 + $0x44]] }
 0x1eb   :  { %v2093_v45 = vadd.f32 %v2087_v32, %v2076_v57  ;;  %v2099_v6 = vmul.f32 %v2097_v56, %v4405_v12  ;;  %v2094_v52 = vadd.f32 %v2088_v33, %v2077_v46  ;;  %v2100_v3 = vmul.f32 %v2097_v56, %v4408_v28 }
 0x1ec   :  { %v4719_v40 = vmax.f32 %v2060_v50, %v2059_v47  ;;  %v2115_v10 = vmul.f32 %v2114_v9, %v4405_v12  ;;  %v2095_v23 = vadd.f32 %v2089_v54, %v2078_v42  ;;  %v2104_v15 = vrot.slane %v2098_v35, 2 }
 0x1ed   :  { %v2105_v31 = vrot.slane %v2099_v6, 2  ;;  %v2116_v51 = vmul.f32 %v2114_v9, %v4408_v28  ;;  %v4729_v22 = vmax.f32 %v4628_v20, %v1800_v48  ;;  %v2106_v43 = vrot.slane %v2100_v3, 2 }
 0x1ee   :  { %v2117_v38 = vmul.f32 %v2114_v9, %v4411_v21  ;;  %v2110_v34 = vadd.f32 %v2104_v15, %v2093_v45  ;;  %v2122_v4 = vstv %s4707_s4  ;;  %v2139_v63 = vstv %s4711_s10  ;;  %s4892_s4 = sld [smem:[#allocation9 + $0x45]] }
 0x1ef   :  { %v2111_v17 = vadd.f32 %v2105_v31, %v2094_v52  ;;  %v2063_v53 = vrot.slane %v4719_v40, 1  ;;  %v2112_v14 = vadd.f32 %v2106_v43, %v2095_v23  ;;  %v2123_v59 = vmul.f32 %v2122_v4, %v4405_v12  ;;  %s4898_s10 = sld [smem:[#allocation9 + $0x46]] }
 0x1f0   :  { %v2124_v5 = vmul.f32 %v2122_v4, %v4408_v28  ;;  %v2118_v13 = vadd.f32 %v2115_v10, %v2110_v34  ;;  %v2125_v20 = vmul.f32 %v2122_v4, %v4411_v21  ;;  %v2140_v8 = vmul.f32 %v2139_v63, %v4405_v12 }
 0x1f1   :  { %v2119_v48 = vadd.f32 %v2116_v51, %v2111_v17  ;;  %v2066_v41 = vrot.slane %v4719_v40, 2  ;;  %v2120_v29 = vadd.f32 %v2117_v38, %v2112_v14  ;;  %v2129_v62 = vrot.slane %v2123_v59, 1 }
 0x1f2   :  { %v2130_v18 = vrot.slane %v2124_v5, 1  ;;  %v2131_v19 = vrot.slane %v2125_v20, 1  ;;  %v2141_v25 = vmul.f32 %v2139_v63, %v4408_v28  ;;  %v2142_v55 = vmul.f32 %v2139_v63, %v4411_v21 }
 0x1f3   :  { %v2146_v26 = vrot.slane %v2140_v8, 2  ;;  %v2135_v39 = vadd.f32 %v2129_v62, %v2118_v13  ;;  %v2156_v1 = vstv %s4717_s11  ;;  %v2164_v16 = vstv %s4723_s12  ;;  %s4902_s11 = sld [smem:[#allocation9 + $0x47]] }
 0x1f4   :  { %v2136_v61 = vadd.f32 %v2130_v18, %v2119_v48  ;;  %v2137_v27 = vadd.f32 %v2131_v19, %v2120_v29  ;;  %v2147_v49 = vrot.slane %v2141_v25, 2  ;;  %v2148_v24 = vrot.slane %v2142_v55, 2  ;;  %s4910_s12 = sld [smem:[#allocation12 + $0x4]] }
 0x1f5   :  { %v2157_v44 = vmul.f32 %v2156_v1, %v4408_v28  ;;  %v2152_v36 = vadd.f32 %v2146_v26, %v2135_v39  ;;  %v2158_v30 = vmul.f32 %v2156_v1, %v4411_v21  ;;  %v2159_v2 = vmul.f32 %v2156_v1, %v4414_v11 }
 0x1f6   :  { %v2165_v57 = vmul.f32 %v2164_v16, %v4408_v28  ;;  %v2153_v46 = vadd.f32 %v2147_v49, %v2136_v61  ;;  %v2154_v47 = vadd.f32 %v2148_v24, %v2137_v27  ;;  %v2166_v42 = vmul.f32 %v2164_v16, %v4411_v21 }
 0x1f7   :  { %v2167_v60 = vmul.f32 %v2164_v16, %v4414_v11  ;;  %v2160_v32 = vadd.f32 %v2157_v44, %v2152_v36  ;;  %v2181_v33 = vstv %s4734_s13  ;;  %v2198_v56 = vstv %s4739_s14  ;;  %s4912_s13 = sld [smem:[#allocation12 + $0x8]] }
 0x1f8   :  { %v2171_v50 = vrot.slane %v2165_v57, 1  ;;  %v2161_v9 = vadd.f32 %v2158_v30, %v2153_v46  ;;  %v2162_v54 = vadd.f32 %v2159_v2, %v2154_v47  ;;  %v2172_v45 = vrot.slane %v2166_v42, 1  ;;  %s4916_s14 = sld [smem:[#allocation12]] }
 0x1f9   :  { %v2173_v35 = vrot.slane %v2167_v60, 1  ;;  %v2182_v52 = vmul.f32 %v2181_v33, %v4408_v28  ;;  %v2183_v3 = vmul.f32 %v2181_v33, %v4411_v21  ;;  %v2184_v10 = vmul.f32 %v2181_v33, %v4414_v11 }
 0x1fa   :  { %v2177_v6 = vadd.f32 %v2171_v50, %v2160_v32  ;;  %v2178_v23 = vadd.f32 %v2172_v45, %v2161_v9  ;;  %v2199_v31 = vmul.f32 0.0, %v2198_v56  ;;  %v2200_v51 = vmul.f32 %v2198_v56, %v4477_v0 }
 0x1fb   :  { %v2179_v15 = vadd.f32 %v2173_v35, %v2162_v54  ;;  %v2188_v43 = vrot.slane %v2182_v52, 2  ;;  %v2189_v38 = vrot.slane %v2183_v3, 2  ;;  %v2190_v34 = vrot.slane %v2184_v10, 2 }
 0x1fc   :  { %v2201_v17 = vmul.f32 %v2198_v56, %v4480_v7  ;;  %v2206_v4 = vstv %s4744_s15  ;;  %v2223_v63 = vstv %s4748_s16  ;;  %v2240_v14 = vstv %s4752_s17  ;;  %s4921_s15 = sld [smem:[#allocation12 + $0x1]] }
 0x1fd   :  { %v2248_v59 = vstv %s4755_s18  ;;  %v2194_v5 = vadd.f32 %v2188_v43, %v2177_v6  ;;  %v2195_v13 = vadd.f32 %v2189_v38, %v2178_v23  ;;  %v2196_v48 = vadd.f32 %v2190_v34, %v2179_v15  ;;  %s4923_s16 = sld [smem:[#allocation13]] }
 0x1fe   :  { %v2207_v20 = vmul.f32 0.0, %v2206_v4  ;;  %v2208_v8 = vmul.f32 %v2206_v4, %v4477_v0  ;;  %v2209_v29 = vmul.f32 %v2206_v4, %v4480_v7  ;;  %v2224_v62 = vmul.f32 0.0, %v2223_v63  ;;  %s4928_s17 = sld [smem:[#allocation13 + $0x1]] }
 0x1ff   :  { %v2225_v18 = vmul.f32 %v2223_v63, %v4477_v0  ;;  %v2202_v19 = vadd.f32 %v2199_v31, %v2194_v5  ;;  %v2203_v25 = vadd.f32 %v2200_v51, %v2195_v13  ;;  %v2204_v55 = vadd.f32 %v2201_v17, %v2196_v48  ;;  %s4932_s18 = sld [smem:[#allocation12 + $0x2]] }
 0x200   :  { %v2213_v26 = vrot.slane %v2207_v20, 1  ;;  %v2214_v39 = vrot.slane %v2208_v8, 1  ;;  %v2215_v61 = vrot.slane %v2209_v29, 1  ;;  %v2226_v1 = vmul.f32 %v2223_v63, %v4480_v7 }
 0x201   :  { %v2230_v16 = vrot.slane %v2224_v62, 2  ;;  %v2231_v49 = vrot.slane %v2225_v18, 2  ;;  %v2241_v24 = vmul.f32 %v2240_v14, %v4477_v0  ;;  %v2242_v44 = vmul.f32 %v2240_v14, %v4480_v7 }
 0x202   :  { %v2219_v27 = vadd.f32 %v2213_v26, %v2202_v19  ;;  %v2220_v36 = vadd.f32 %v2214_v39, %v2203_v25  ;;  %v2221_v30 = vadd.f32 %v2215_v61, %v2204_v55  ;;  %v2232_v2 = vrot.slane %v2226_v1, 2 }
 0x203   :  { %v2243_v57 = vmul.f32 %v2240_v14, %v4483_v58  ;;  %v2249_v47 = vmul.f32 %v2248_v59, %v4477_v0  ;;  %v2250_v42 = vmul.f32 %v2248_v59, %v4480_v7  ;;  %v2251_v60 = vmul.f32 %v2248_v59, %v4483_v58 }
 0x204   :  { %v2236_v46 = vadd.f32 %v2230_v16, %v2219_v27  ;;  %v2237_v32 = vadd.f32 %v2231_v49, %v2220_v36  ;;  %v2238_v50 = vadd.f32 %v2232_v2, %v2221_v30  ;;  %v2265_v33 = vstv %s4769_s19  ;;  %s4937_s19 = sld [smem:[#allocation12 + $0x5]] }
 0x205   :  { %v2282_v56 = vstv %s4775_s1  ;;  %v2255_v54 = vrot.slane %v2249_v47, 1  ;;  %v2256_v45 = vrot.slane %v2250_v42, 1  ;;  %v2257_v35 = vrot.slane %v2251_v60, 1  ;;  %s4939_s1 = sld [smem:[#allocation12 + $0x6]] }
 0x206   :  { %v2244_v9 = vadd.f32 %v2241_v24, %v2236_v46  ;;  %v2245_v6 = vadd.f32 %v2242_v44, %v2237_v32  ;;  %v2246_v52 = vadd.f32 %v2243_v57, %v2238_v50  ;;  %v2266_v3 = vmul.f32 %v2265_v33, %v4477_v0 }
 0x207   :  { %v2267_v10 = vmul.f32 %v2265_v33, %v4480_v7  ;;  %v2268_v15 = vmul.f32 %v2265_v33, %v4483_v58  ;;  %v2283_v31 = vmul.f32 %v2282_v56, %v4480_v7  ;;  %v2284_v51 = vmul.f32 %v2282_v56, %v4483_v58 }
 0x208   :  { %v2261_v23 = vadd.f32 %v2255_v54, %v2244_v9  ;;  %v2262_v43 = vadd.f32 %v2256_v45, %v2245_v6  ;;  %v2263_v38 = vadd.f32 %v2257_v35, %v2246_v52  ;;  %v2272_v34 = vrot.slane %v2266_v3, 2 }
 0x209   :  { %v2273_v17 = vrot.slane %v2267_v10, 2  ;;  %v2274_v4 = vrot.slane %v2268_v15, 2  ;;  %v2285_v63 = vmul.f32 %v2282_v56, %v4488_v37  ;;  %v2290_v14 = vstv %s4781_s20  ;;  %s4942_s20 = sld [smem:[#allocation13 + $0x2]] }
 0x20a   :  { %v2307_v59 = vstv %s4785_s21  ;;  %v2278_v5 = vadd.f32 %v2272_v34, %v2261_v23  ;;  %v2291_v48 = vmul.f32 %v2290_v14, %v4480_v7  ;;  %v2292_v20 = vmul.f32 %v2290_v14, %v4483_v58  ;;  %s4947_s21 = sld [smem:[#allocation12 + $0x9]] }
 0x20b   :  { %v2279_v13 = vadd.f32 %v2273_v17, %v2262_v43  ;;  %v2280_v8 = vadd.f32 %v2274_v4, %v2263_v38  ;;  %v2293_v29 = vmul.f32 %v2290_v14, %v4488_v37  ;;  %v2308_v62 = vmul.f32 %v2307_v59, %v4480_v7 }
 0x20c   :  { %v2309_v18 = vmul.f32 %v2307_v59, %v4483_v58  ;;  %v2286_v19 = vadd.f32 %v2283_v31, %v2278_v5  ;;  %v2297_v55 = vrot.slane %v2291_v48, 1  ;;  %v2298_v26 = vrot.slane %v2292_v20, 1 }
 0x20d   :  { %v2287_v25 = vadd.f32 %v2284_v51, %v2279_v13  ;;  %v2288_v39 = vadd.f32 %v2285_v63, %v2280_v8  ;;  %v2299_v61 = vrot.slane %v2293_v29, 1  ;;  %v2310_v1 = vmul.f32 %v2307_v59, %v4488_v37 }
 0x20e   :  { %v2314_v16 = vrot.slane %v2308_v62, 2  ;;  %v2303_v27 = vadd.f32 %v2297_v55, %v2286_v19  ;;  %v2315_v24 = vrot.slane %v2309_v18, 2  ;;  %v2336_v44 = vstv %s4793_s22  ;;  %s4951_s22 = sld [smem:[#allocation12 + $0xa]] }
 0x20f   :  { %v2304_v49 = vadd.f32 %v2298_v26, %v2287_v25  ;;  %v2305_v36 = vadd.f32 %v2299_v61, %v2288_v39  ;;  %v2316_v30 = vrot.slane %v2310_v1, 2  ;;  %v2338_v2 = vstv %s4797_s23  ;;  %s4958_s23 = sld [smem:[#allocation12 + $0x3]] }
 0x210   :  { %v2346_v57 = vstv %s4802_s24  ;;  %v2320_v46 = vadd.f32 %v2314_v16, %v2303_v27  ;;  %v2339_v42 = vmul.f32 0.0, %v2338_v2  ;;  %v2340_v60 = vmul.f32 %v2338_v2, %v4405_v12  ;;  %s4962_s24 = sld [smem:[#allocation12 + $0x7]] }
 0x211   :  { %v2321_v47 = vadd.f32 %v2315_v24, %v2304_v49  ;;  %v2322_v32 = vadd.f32 %v2316_v30, %v2305_v36  ;;  %v2341_v50 = vmul.f32 %v2338_v2, %v4408_v28  ;;  %v2347_v33 = vmul.f32 0.0, %v2346_v57 }
 0x212   :  { %v2348_v56 = vmul.f32 %v2346_v57, %v4405_v12  ;;  %v2323_v9 = vmax.f32 %v2320_v46, 0.0  ;;  %v2342_v45 = vadd.f32 %v2339_v42, %v2336_v44  ;;  %v2343_v35 = vadd.f32 %v2340_v60, %v2336_v44 }
 0x213   :  { %v2324_v54 = vmax.f32 %v2321_v47, 0.0  ;;  %v2325_v6 = vmax.f32 %v2322_v32, 0.0  ;;  %v2344_v52 = vadd.f32 %v2341_v50, %v2336_v44  ;;  %v2349_v3 = vmul.f32 %v2346_v57, %v4408_v28 }
 0x214   :  { %v2353_v10 = vrot.slane %v2347_v33, 1  ;;  %v2354_v15 = vrot.slane %v2348_v56, 1  ;;  %v2363_v31 = vstv %s4812_s25  ;;  %v2380_v51 = vstv %s4814_s0  ;;  %s4966_s25 = sld [smem:[#allocation12 + $0xb]]  ;;  %s2957_s0 = smov [#allocation15]  }
 0x215   :  { %v2326_v23 = vmax.f32 %v2323_v9, %v2324_v54  ;;  %v2355_v43 = vrot.slane %v2349_v3, 1  ;;  %v2364_v34 = vmul.f32 0.0, %v2363_v31  ;;  %v2365_v17 = vmul.f32 %v2363_v31, %v4405_v12 }
 0x216   :  { %v2359_v38 = vadd.f32 %v2353_v10, %v2342_v45  ;;  %v2360_v63 = vadd.f32 %v2354_v15, %v2343_v35  ;;  %v2366_v14 = vmul.f32 %v2363_v31, %v4408_v28  ;;  %v2381_v59 = vmul.f32 %v2380_v51, %v4405_v12 }
 0x217   :  { %v4833_v4 = vmax.f32 %v2326_v23, %v2325_v6  ;;  %v2361_v5 = vadd.f32 %v2355_v43, %v2344_v52  ;;  %v2370_v13 = vrot.slane %v2364_v34, 2  ;;  %v2371_v48 = vrot.slane %v2365_v17, 2 }
 0x218   :  { %v2382_v20 = vmul.f32 %v2380_v51, %v4408_v28  ;;  %v4843_v8 = vmax.f32 %v4719_v40, %v2063_v53  ;;  %v2372_v62 = vrot.slane %v2366_v14, 2  ;;  %v2383_v18 = vmul.f32 %v2380_v51, %v4411_v21 }
 0x219   :  { %v2329_v29 = vrot.slane %v4833_v4, 1  ;;  %v2376_v19 = vadd.f32 %v2370_v13, %v2359_v38  ;;  %v2377_v25 = vadd.f32 %v2371_v48, %v2360_v63  ;;  %v2388_v55 = vstv %s4821_s26  ;;  %s2670_s26 = sshll.u32 %s2957_s0, 4  ;;  %s2671_s26 = int_to_ptr.vmem [resolvable:$true] %s2670_s26 }
 0x21a   :  { %v2405_v26 = vstv %s4825_s27  ;;  %v2332_v39 = vrot.slane %v4833_v4, 2  ;;  %v2378_v61 = vadd.f32 %v2372_v62, %v2361_v5  ;;  %v2389_v1 = vmul.f32 %v2388_v55, %v4405_v12  ;;  %s2916_s27 = scalar_lea.vmem %s2671_s26, 64  ;;  %p2921_p8 = scmp.lt.s32.totalorder %s2671_s26, %s2671_s26 }
 0x21b   :  { %v2390_v16 = vmul.f32 %v2388_v55, %v4408_v28  ;;  %v2384_v53 = vadd.f32 %v2381_v59, %v2376_v19  ;;  %v2385_v27 = vadd.f32 %v2382_v20, %v2377_v25  ;;  %v2391_v49 = vmul.f32 %v2388_v55, %v4411_v21  ;;  %p2917_p7 = scmp.ne.s32.totalorder %s2671_s26, %s2916_s27  ;;  %p2922_p9 = scmp.lt.s32.totalorder %s2916_s27, %s2916_s27 }
 0x21c   :  { %v2406_v24 = vmul.f32 %v2405_v26, %v4405_v12  ;;  %v4859_v44 = vmax.f32 %v4833_v4, %v2329_v29  ;;  %v2386_v36 = vadd.f32 %v2383_v18, %v2378_v61  ;;  %v2395_v30 = vrot.slane %v2389_v1, 1 }
 0x21d   :  { %v2396_v2 = vrot.slane %v2390_v16, 1  ;;  %v2397_v57 = vrot.slane %v2391_v49, 1  ;;  %v2407_v46 = vmul.f32 %v2405_v26, %v4408_v28  ;;  %v2408_v47 = vmul.f32 %v2405_v26, %v4411_v21  ;;  %p2923_p10 = por %p2922_p9, %p2921_p8 }
 0x21e   :  { %v2412_v42 = vrot.slane %v2406_v24, 2  ;;  %v2401_v60 = vadd.f32 %v2395_v30, %v2384_v53  ;;  %v2422_v50 = vstv %s4831_s3  ;;  %v2430_v12 = vstv %s4837_s5 }
 0x21f   :  { %v2402_v32 = vadd.f32 %v2396_v2, %v2385_v27  ;;  %v2403_v33 = vadd.f32 %v2397_v57, %v2386_v36  ;;  %v2413_v56 = vrot.slane %v2407_v46, 2  ;;  %v2414_v9 = vrot.slane %v2408_v47, 2  ;;  %p2924_p11 = pnand %p2923_p10, %p2917_p7 }
 0x220   :  { %v2423_v54 = vmul.f32 %v2422_v50, %v4408_v28  ;;  %v2418_v45 = vadd.f32 %v2412_v42, %v2401_v60  ;;  %v2424_v35 = vmul.f32 %v2422_v50, %v4411_v21  ;;  %v2425_v6 = vmul.f32 %v2422_v50, %v4414_v11 }
 0x221   :  { %v2431_v52 = vmul.f32 %v2430_v12, %v4408_v28  ;;  %v2419_v3 = vadd.f32 %v2413_v56, %v2402_v32  ;;  %v2420_v10 = vadd.f32 %v2414_v9, %v2403_v33  ;;  %v2432_v23 = vmul.f32 %v2430_v12, %v4411_v21 }
 0x222   :  { %v2433_v15 = vmul.f32 %v2430_v12, %v4414_v11  ;;  %v2426_v31 = vadd.f32 %v2423_v54, %v2418_v45  ;;  %v2447_v43 = vstv %s4849_s28  ;;  %v2464_v38 = vstv %s4854_s29 }
 0x223   :  { %v2437_v51 = vrot.slane %v2431_v52, 1  ;;  %v2427_v34 = vadd.f32 %v2424_v35, %v2419_v3  ;;  %v2428_v17 = vadd.f32 %v2425_v6, %v2420_v10  ;;  %v2438_v63 = vrot.slane %v2432_v23, 1 }
 0x224   :  { %v2439_v14 = vrot.slane %v2433_v15, 1  ;;  %v2448_v5 = vmul.f32 %v2447_v43, %v4408_v28  ;;  %v2449_v13 = vmul.f32 %v2447_v43, %v4411_v21  ;;  %v2450_v48 = vmul.f32 %v2447_v43, %v4414_v11 }
 0x225   :  { %v2443_v59 = vadd.f32 %v2437_v51, %v2426_v31  ;;  %v2444_v20 = vadd.f32 %v2438_v63, %v2427_v34  ;;  %v2465_v62 = vmul.f32 0.0, %v2464_v38  ;;  %v2466_v18 = vmul.f32 %v2464_v38, %v4477_v0 }
 0x226   :  { %v2445_v29 = vadd.f32 %v2439_v14, %v2428_v17  ;;  %v2454_v19 = vrot.slane %v2448_v5, 2  ;;  %v2455_v25 = vrot.slane %v2449_v13, 2  ;;  %v2456_v55 = vrot.slane %v2450_v48, 2 }
 0x227   :  { %v2467_v26 = vmul.f32 %v2464_v38, %v4480_v7  ;;  %v2472_v61 = vstv %s4861_s30  ;;  %v2489_v1 = vstv %s4865_s8  ;;  %v2506_v16 = vstv %s4869_s6 }
 0x228   :  { %v2514_v28 = vstv %s4872_s9  ;;  %v2460_v21 = vadd.f32 %v2454_v19, %v2443_v59  ;;  %v2461_v11 = vadd.f32 %v2455_v25, %v2444_v20  ;;  %v2462_v53 = vadd.f32 %v2456_v55, %v2445_v29 }
 0x229   :  { %v2473_v27 = vmul.f32 0.0, %v2472_v61  ;;  %v2474_v49 = vmul.f32 %v2472_v61, %v4477_v0  ;;  %v2475_v24 = vmul.f32 %v2472_v61, %v4480_v7  ;;  %v2490_v36 = vmul.f32 0.0, %v2489_v1 }
 0x22a   :  { %v2491_v30 = vmul.f32 %v2489_v1, %v4477_v0  ;;  %v2468_v2 = vadd.f32 %v2465_v62, %v2460_v21  ;;  %v2469_v57 = vadd.f32 %v2466_v18, %v2461_v11  ;;  %v2470_v46 = vadd.f32 %v2467_v26, %v2462_v53 }
 0x22b   :  { %v2479_v47 = vrot.slane %v2473_v27, 1  ;;  %v2480_v42 = vrot.slane %v2474_v49, 1  ;;  %v2481_v60 = vrot.slane %v2475_v24, 1  ;;  %v2492_v32 = vmul.f32 %v2489_v1, %v4480_v7 }
 0x22c   :  { %v2496_v50 = vrot.slane %v2490_v36, 2  ;;  %v2497_v33 = vrot.slane %v2491_v30, 2  ;;  %v2507_v56 = vmul.f32 %v2506_v16, %v4477_v0  ;;  %v2508_v9 = vmul.f32 %v2506_v16, %v4480_v7 }
 0x22d   :  { %v2485_v12 = vadd.f32 %v2479_v47, %v2468_v2  ;;  %v2486_v54 = vadd.f32 %v2480_v42, %v2469_v57  ;;  %v2487_v45 = vadd.f32 %v2481_v60, %v2470_v46  ;;  %v2498_v35 = vrot.slane %v2492_v32, 2 }
 0x22e   :  { %v2509_v6 = vmul.f32 %v2506_v16, %v4483_v58  ;;  %v2515_v3 = vmul.f32 %v2514_v28, %v4477_v0  ;;  %v2516_v10 = vmul.f32 %v2514_v28, %v4480_v7  ;;  %v2517_v23 = vmul.f32 %v2514_v28, %v4483_v58 }
 0x22f   :  { %v2502_v52 = vadd.f32 %v2496_v50, %v2485_v12  ;;  %v2503_v15 = vadd.f32 %v2497_v33, %v2486_v54  ;;  %v2504_v31 = vadd.f32 %v2498_v35, %v2487_v45  ;;  %v2531_v51 = vstv %s4886_s2 }
 0x230   :  { %v2548_v43 = vstv %s4892_s4  ;;  %v2521_v34 = vrot.slane %v2515_v3, 1  ;;  %v2522_v17 = vrot.slane %v2516_v10, 1  ;;  %v2523_v63 = vrot.slane %v2517_v23, 1 }
 0x231   :  { %v2510_v38 = vadd.f32 %v2507_v56, %v2502_v52  ;;  %v2511_v14 = vadd.f32 %v2508_v9, %v2503_v15  ;;  %v2512_v59 = vadd.f32 %v2509_v6, %v2504_v31  ;;  %v2532_v5 = vmul.f32 %v2531_v51, %v4477_v0 }
 0x232   :  { %v2533_v13 = vmul.f32 %v2531_v51, %v4480_v7  ;;  %v2534_v20 = vmul.f32 %v2531_v51, %v4483_v58  ;;  %v2549_v29 = vmul.f32 %v2548_v43, %v4480_v7  ;;  %v2550_v62 = vmul.f32 %v2548_v43, %v4483_v58 }
 0x233   :  { %v2527_v48 = vadd.f32 %v2521_v34, %v2510_v38  ;;  %v2528_v18 = vadd.f32 %v2522_v17, %v2511_v14  ;;  %v2529_v19 = vadd.f32 %v2523_v63, %v2512_v59  ;;  %v2538_v25 = vrot.slane %v2532_v5, 2 }
 0x234   :  { %v2539_v55 = vrot.slane %v2533_v13, 2  ;;  %v2540_v0 = vrot.slane %v2534_v20, 2  ;;  %v2551_v26 = vmul.f32 %v2548_v43, %v4488_v37  ;;  %v2556_v61 = vstv %s4898_s10 }
 0x235   :  { %v2573_v1 = vstv %s4902_s11  ;;  %v2544_v16 = vadd.f32 %v2538_v25, %v2527_v48  ;;  %v2557_v21 = vmul.f32 %v2556_v61, %v4480_v7  ;;  %v2558_v11 = vmul.f32 %v2556_v61, %v4483_v58 }
 0x236   :  { %v2545_v28 = vadd.f32 %v2539_v55, %v2528_v18  ;;  %v2546_v53 = vadd.f32 %v2540_v0, %v2529_v19  ;;  %v2559_v27 = vmul.f32 %v2556_v61, %v4488_v37  ;;  %v2574_v49 = vmul.f32 %v2573_v1, %v4480_v7 }
 0x237   :  { %v2575_v24 = vmul.f32 %v2573_v1, %v4483_v58  ;;  %v2552_v36 = vadd.f32 %v2549_v29, %v2544_v16  ;;  %v2563_v2 = vrot.slane %v2557_v21, 1  ;;  %v2564_v57 = vrot.slane %v2558_v11, 1 }
 0x238   :  { %v2553_v30 = vadd.f32 %v2550_v62, %v2545_v28  ;;  %v2554_v46 = vadd.f32 %v2551_v26, %v2546_v53  ;;  %v2565_v47 = vrot.slane %v2559_v27, 1  ;;  %v2576_v42 = vmul.f32 %v2573_v1, %v4488_v37 }
 0x239   :  { %v2580_v60 = vrot.slane %v2574_v49, 2  ;;  %v2068_v7 = vmax.f32 %v4843_v8, %v2066_v41  ;;  %v2569_v58 = vadd.f32 %v2563_v2, %v2552_v36  ;;  %v2581_v50 = vrot.slane %v2575_v24, 2 }
 0x23a   :  { %v2570_v32 = vadd.f32 %v2564_v57, %v2553_v30  ;;  %v2571_v12 = vadd.f32 %v2565_v47, %v2554_v46  ;;  %v2582_v33 = vrot.slane %v2576_v42, 2  ;;  %v2604_v56 = vstv %s4916_s14 }
 0x23b   :  { %v2608_v9 = vstv %s4921_s15  ;;  %v2586_v37 = vadd.f32 %v2580_v60, %v2569_v58  ;;  %v2602_v40 = vstv %s4923_s16  ;;  %v2605_v41 = vmul.f32 %v2604_v56, %v4729_v22 }
 0x23c   :  { %v2587_v54 = vadd.f32 %v2581_v50, %v2570_v32  ;;  %v2334_v8 = vmax.f32 %v4859_v44, %v2332_v39  ;;  %v2588_v45 = vadd.f32 %v2582_v33, %v2571_v12  ;;  %v2609_v35 = vmul.f32 %v2608_v9, %v2068_v7 }
 0x23d   :  { %v2589_v6 = vmax.f32 %v2586_v37, 0.0  ;;  %v2612_v3 = vstv %s4932_s18  ;;  %v2620_v10 = vstv %s4928_s17  ;;  %v2606_v15 = vadd.f32 %v2605_v41, %v2602_v40 }
 0x23e   :  { %v2590_v52 = vmax.f32 %v2587_v54, 0.0  ;;  %v2591_v23 = vmax.f32 %v2588_v45, 0.0  ;;  %v2622_v31 = vstv %s4910_s12  ;;  %v2626_v4 = vstv %s4937_s19 }
 0x23f   :  { %v2623_v44 = vmul.f32 %v2622_v31, %v4729_v22  ;;  %v2627_v51 = vmul.f32 %v2626_v4, %v2068_v7  ;;  %v2630_v43 = vstv %s4939_s1  ;;  %v2638_v38 = vstv %s4942_s20 }
 0x240   :  { %v2592_v39 = vmax.f32 %v2589_v6, %v2590_v52  ;;  %v2640_v34 = vstv %s4912_s13  ;;  %v2613_v63 = vmul.f32 %v2612_v3, %v2334_v8  ;;  %v2610_v5 = vadd.f32 %v2609_v35, %v2606_v15 }
 0x241   :  { %v2624_v14 = vadd.f32 %v2623_v44, %v2620_v10  ;;  %v2641_v59 = vmul.f32 %v2640_v34, %v4729_v22  ;;  %v2631_v13 = vmul.f32 %v2630_v43, %v2334_v8  ;;  %v2644_v48 = vstv %s4947_s21 }
 0x242   :  { %v2593_v17 = vmax.f32 %v2592_v39, %v2591_v23  ;;  %v2648_v20 = vstv %s4951_s22  ;;  %v2645_v25 = vmul.f32 %v2644_v48, %v2068_v7  ;;  %v2616_v26 = vstv %s4958_s23 }
 0x243   :  { %v2628_v18 = vadd.f32 %v2627_v51, %v2624_v14  ;;  %v2642_v19 = vadd.f32 %v2641_v59, %v2638_v38  ;;  %v2649_v55 = vmul.f32 %v2648_v20, %v2334_v8  ;;  %v2634_v61 = vstv %s4962_s24 }
 0x244   :  { %v2595_v29 = vrot.slane %v2593_v17, 1  ;;  %v2598_v62 = vrot.slane %v2593_v17, 2  ;;  %v2652_v16 = vstv %s4966_s25  ;;  %v2614_v21 = vadd.f32 %v2613_v63, %v2610_v5 }
 0x245   :  { %v2646_v1 = vadd.f32 %v2645_v25, %v2642_v19  ;;  %v2632_v11 = vadd.f32 %v2631_v13, %v2628_v18 }
 0x246   :  { %v2597_v0 = vmax.f32 %v2593_v17, %v2595_v29 }
 0x247   :  { %v2650_v53 = vadd.f32 %v2649_v55, %v2646_v1 }
 0x248   :  { %v2600_v28 = vmax.f32 %v2597_v0, %v2598_v62 }
 0x24a   :  { %v2617_v22 = vmul.f32 %v2616_v26, %v2600_v28  ;;  %v2635_v27 = vmul.f32 %v2634_v61, %v2600_v28  ;;  %v2653_v49 = vmul.f32 %v2652_v16, %v2600_v28 }
 0x24c   :  { %v2618_v24 = vadd.f32 %v2617_v22, %v2614_v21  ;;  %v2636_v36 = vadd.f32 %v2635_v27, %v2632_v11  ;;  %v2654_v30 = vadd.f32 %v2653_v49, %v2650_v53 }
 0x24e   :  { %v2656_v2 = vrot.slane %v2636_v36, 7  ;;  %v2659_v57 = vrot.slane %v2654_v30, 6 }
 0x250   :  { %v2661_v46 = vsel %vm164_vm0, %v2618_v24, %v2656_v2 }
 0x251   :  { %v2662_v47 = vsel %vm1386_vm2, %v2661_v46, %v2659_v57 }
 0x252   :  { %2663 = vst [vmem:[#allocation15] sm:$0x7] %v2662_v47 }
 0x253   :  { %2927 = shalt.err (!%p2924_p11)
}
 0x254   :  { %2673 = dma.vmem_to_hbm [thread:$0]  %s2671_s26, 64, %s4990_s7, [#allocation4]  }
 0x255   :  { %2946 = dma.done.wait [#allocation4], 64  }
 0x256   :  { %2947 = vsyncadd [#allocation4], 4294967232 }
 0x257   :  { %2677 = vsyncpa [#allocation3], 1 }
 0x258   :  { %2678 = vsyncpa [#allocation4], 1 }
 0x259   :  { %2679 = vsyncpa [#allocation5], 1 }
 0x25a   :  { %2680 = vsyncpa [#allocation8], 1 }
 0x25b   :  { %2681 = vsyncpa [#allocation11], 1 }
 0x25c   :  { %2682 = vsyncpa [#allocation14], 1 }

</bundles_post_ra>
